<compile_context>
chip_gen: v6e
topology: v6e:2x2x1
jax: 0.10.0
libtpu: 0.0.40
codegen_flags: <defaults>
</compile_context>

<pallas_src>
import functools

import jax
import jax.numpy as jnp
from jax.experimental import pallas as pl
from jax.experimental.pallas import tpu as pltpu

EPS = 1e-5  # BatchNorm2d eps


# ---------------------------------------------------------------------------
# VMEM budgeting helpers
# ---------------------------------------------------------------------------

def _padded_bytes(shape, dtype):
    itemsize = jnp.dtype(dtype).itemsize
    dims = list(shape)
    if not dims:
        return 4
    dims[-1] = -(-dims[-1] // 128) * 128
    if len(dims) >= 2:
        sub = 8 * max(4 // itemsize, 1)          # f32 -> 8 sublanes, bf16 -> 16
        dims[-2] = -(-dims[-2] // sub) * sub
    n = 1
    for d in dims:
        n *= d
    return n * itemsize


def _vmem_limit_bytes(entries):
    """entries: list of (block_shape, dtype, num_buffers)."""
    total = 0
    for shape, dtype, nbuf in entries:
        total += _padded_bytes(shape, dtype) * nbuf
    return int(min(max(2 * total + (2 << 20), 16 << 20), 100 << 20))


# ---------------------------------------------------------------------------
# Kernel 1: cls_feature + encoder_map + 3 fused Conv3x3/BN/PReLU
#   grid = (branch, layer); weights streamed per (branch, layer)
# ---------------------------------------------------------------------------

def _make_encoder_kernel(B, H, W, C):
    HW = H * W
    R = B * HW
    PAD = W + 1  # covers the largest |row shift| of a 3x3 tap

    def kernel(fm_ref, mavg_ref, pavg_ref, m_ref, w_ref, s_ref, t_ref, a_ref,
               cls_ref, h_ref, x_scr, im_scr):
        l = pl.program_id(1)

        # ---- layer-0 prologue: AvgPool (cls) + encoder_map via constant matmuls.
        # pavg (B,R) averages each batch's HW rows; mavg (R,R) is the
        # block-diagonal 1/HW matrix, so fm + mavg@fm == fm + per-batch-mean.
        @pl.when(l == 0)
        def _():
            fm = fm_ref[...]                                          # (R, C)
            cls_ref[0] = jnp.dot(pavg_ref[...], fm,
                                 preferred_element_type=jnp.float32)  # (B, C)
            x_scr[...] = fm + jnp.dot(mavg_ref[...], fm,
                                      preferred_element_type=jnp.float32)

        x = x_scr[...]                                                # (R, C)

        # ---- in-VMEM im2col: 9 masked row-shifted taps, stored lane-contiguous.
        # The flat row shift may cross image boundaries; every such row is an
        # out-of-image tap and is zeroed by the (R,1) mask (lane-broadcast).
        zpad = jnp.zeros((PAD, C), jnp.float32)
        xpad = jnp.concatenate([zpad, x, zpad], axis=0)               # (R+2*PAD, C)
        for k in range(9):
            kh, kw = divmod(k, 3)
            off = (kh - 1) * W + (kw - 1)
            if kh == 1 and kw == 1:
                sh = x                                                # center tap
            else:
                sh = xpad[PAD + off:PAD + off + R, :]
                sh = sh * m_ref[k]                                    # (R, 1) mask
            im_scr[:, k * C:(k + 1) * C] = sh

        # ---- one big-K MXU matmul + fused BatchNorm(eval stats) + PReLU.
        # TODO(synk): train-mode batch statistics are not reproduced.
        w = w_ref[0, 0].astype(jnp.float32)                           # (9C, C)
        y = jnp.dot(im_scr[...], w, preferred_element_type=jnp.float32)
        y = y * s_ref[0, 0] + t_ref[0, 0]                             # BN
        y = jnp.where(y >= 0.0, y, a_ref[0, 0] * y)                   # PReLU
        x_scr[...] = y

        @pl.when(l == pl.num_programs(1) - 1)
        def _():
            h_ref[0] = y

    return kernel


def encoder_stack(fm2, mavg, pavg, masks, convw, bn_s, bn_t, pre_a,
                  *, B, H, W, C):
    HW = H * W
    R = B * HW
    K9 = 9 * C
    kernel = _make_encoder_kernel(B, H, W, C)
    vmem = _vmem_limit_bytes([
        ((R, C), jnp.float32, 2),            # feature map
        ((R, R), jnp.float32, 2),            # mavg
        ((B, R), jnp.float32, 2),            # pavg
        ((9, R, 1), jnp.float32, 2),         # tap masks
        ((1, 1, K9, C), jnp.bfloat16, 2),    # per-layer conv weights (streamed)
        ((1, 1, 1, C), jnp.float32, 6),      # BN scale/shift + PReLU slope
        ((1, B, C), jnp.float32, 2),         # cls out
        ((1, R, C), jnp.float32, 2),         # final activation out
        ((R, C), jnp.float32, 1),            # activation carry scratch
        ((R, K9), jnp.float32, 1),           # im2col scratch
    ])
    cls2, hout = pl.pallas_call(
        kernel,
        grid=(2, 3),                                                  # (branch, layer)
        in_specs=[
            pl.BlockSpec((R, C), lambda e, l: (0, 0)),                # feature map (shared)
            pl.BlockSpec((R, R), lambda e, l: (0, 0)),                # mavg (shared)
            pl.BlockSpec((B, R), lambda e, l: (0, 0)),                # pavg (shared)
            pl.BlockSpec((9, R, 1), lambda e, l: (0, 0, 0)),          # tap masks (shared)
            pl.BlockSpec((1, 1, K9, C), lambda e, l: (e, l, 0, 0)),   # conv weights
            pl.BlockSpec((1, 1, 1, C), lambda e, l: (e, l, 0, 0)),    # BN scale
            pl.BlockSpec((1, 1, 1, C), lambda e, l: (e, l, 0, 0)),    # BN shift
            pl.BlockSpec((1, 1, 1, C), lambda e, l: (e, l, 0, 0)),    # PReLU slope
        ],
        out_specs=[
            pl.BlockSpec((1, B, C), lambda e, l: (e, 0, 0)),          # cls feature
            pl.BlockSpec((1, R, C), lambda e, l: (e, 0, 0)),          # final activation
        ],
        out_shape=(
            jax.ShapeDtypeStruct((2, B, C), jnp.float32),
            jax.ShapeDtypeStruct((2, R, C), jnp.float32),
        ),
        scratch_shapes=[
            pltpu.VMEM((R, C), jnp.float32),
            pltpu.VMEM((R, K9), jnp.float32),
        ],
        compiler_params=pltpu.CompilerParams(
            dimension_semantics=("parallel", "arbitrary"),
            vmem_limit_bytes=vmem),
    )(fm2, mavg, pavg, masks, convw, bn_s, bn_t, pre_a)
    return cls2, hout


# ---------------------------------------------------------------------------
# Kernel 2: fused (mu | logvar) linear heads, K-tiled over the contraction dim
# ---------------------------------------------------------------------------

def _vae_head_kernel(f_ref, w_ref, b_ref, o_ref, acc_ref):
    k = pl.program_id(1)

    @pl.when(k == 0)
    def _():
        acc_ref[...] = jnp.zeros_like(acc_ref)

    acc_ref[...] += jnp.dot(f_ref[0], w_ref[0].astype(jnp.float32),
                            preferred_element_type=jnp.float32)

    @pl.when(k == pl.num_programs(1) - 1)
    def _():
        o_ref[0] = acc_ref[...] + b_ref[0]


def _choose_ktile(D, target=2048):
    """Largest multiple of 128 that divides D and is <= target; else D (one block)."""
    best = D
    for t in range(128, min(D, target) + 1, 128):
        if D % t == 0:
            best = t
    return best


def vae_heads(feat, w, b):
    E, Bn, D = feat.shape
    F2 = w.shape[2]
    tk = _choose_ktile(D)
    nk = D // tk
    vmem = _vmem_limit_bytes([
        ((1, Bn, tk), jnp.float32, 2),
        ((1, tk, F2), jnp.bfloat16, 2),
        ((1, 1, F2), jnp.float32, 2),
        ((1, Bn, F2), jnp.float32, 2),
        ((Bn, F2), jnp.float32, 1),
    ])
    return pl.pallas_call(
        _vae_head_kernel,
        grid=(E, nk),
        in_specs=[
            pl.BlockSpec((1, Bn, tk), lambda e, k: (e, 0, k)),
            pl.BlockSpec((1, tk, F2), lambda e, k: (e, k, 0)),
            pl.BlockSpec((1, 1, F2), lambda e, k: (e, 0, 0)),
        ],
        out_specs=pl.BlockSpec((1, Bn, F2), lambda e, k: (e, 0, 0)),
        out_shape=jax.ShapeDtypeStruct((E, Bn, F2), jnp.float32),
        scratch_shapes=[pltpu.VMEM((Bn, F2), jnp.float32)],
        compiler_params=pltpu.CompilerParams(
            dimension_semantics=("parallel", "arbitrary"),
            vmem_limit_bytes=vmem),
    )(feat, w, b)


# ---------------------------------------------------------------------------
# Trace-time parameter / constant packing (constant-folded under jit)
# ---------------------------------------------------------------------------

def _tap_masks(B, H, W):
    """(9, B*HW, 1) f32 validity masks for each 3x3 tap (lane-broadcast in kernel)."""
    HW = H * W
    r = jnp.arange(B * HW)
    i = (r % HW) // W
    j = r % W
    ms = []
    for kh in range(3):
        for kw in range(3):
            valid = ((i + kh - 1 >= 0) & (i + kh - 1 < H) &
                     (j + kw - 1 >= 0) & (j + kw - 1 < W))
            ms.append(valid.astype(jnp.float32)[:, None])
    return jnp.stack(ms, axis=0)


def _pool_mats(B, HW):
    """pavg (B,R): per-batch mean; mavg (R,R): broadcast of that mean to each row."""
    eye = jnp.eye(B, dtype=jnp.float32)
    pavg = jnp.repeat(eye, HW, axis=1) / float(HW)      # (B, R)
    pbc = jnp.repeat(eye, HW, axis=0)                   # (R, B)
    mavg = pbc @ pavg                                   # (R, R)
    return mavg, pavg


def _prep_conv_params(blocks, C):
    ws, ss, ts, aas = [], [], [], []
    for p in blocks:
        # (Cout, Cin, kh, kw) -> (kh, kw, Cin, Cout) -> (9*Cin, Cout), tap-major
        ws.append(jnp.transpose(p['w'], (2, 3, 1, 0)).reshape(9 * C, C))
        inv = 1.0 / jnp.sqrt(p['rvar'] + EPS)
        s = p['gamma'] * inv
        ss.append(s.reshape(1, C))
        ts.append((p['beta'] - p['rmean'] * s).reshape(1, C))
        aas.append(p['a'].reshape(1, C))
    return (jnp.stack(ws, axis=0),       # (3, 9C, C)
            jnp.stack(ss, axis=0),       # (3, 1, C)
            jnp.stack(ts, axis=0),
            jnp.stack(aas, axis=0))


def _prep_vae_head(mean_p, var_p, C, HW):
    """Concatenate mu/logvar weights (lane-dense 2F output) and fold the PyTorch
    NCHW flatten order (d = c*HW + p) into the weights so the kernel consumes
    the channels-last activation (index p*C + c) with no runtime transpose."""
    F = mean_p['w'].shape[0]
    wcat = jnp.concatenate([mean_p['w'], var_p['w']], axis=0)          # (2F, C*HW)
    wfold = wcat.reshape(2 * F, C, HW).transpose(2, 1, 0).reshape(HW * C, 2 * F)
    bcat = jnp.concatenate([mean_p['b'], var_p['b']], axis=0).reshape(1, 2 * F)
    return wfold, bcat


# ---------------------------------------------------------------------------
# Parameter init (shapes from DWNet.__init__ with use_conv=False, scaled down)
# ---------------------------------------------------------------------------

def init_params(key, channel, pool_size, feature_dim):
    D = channel * pool_size * pool_size
    keys = jax.random.split(key, 10)

    def conv_block_params(k):
        fan_in = channel * 9
        w = jax.random.normal(k, (channel, channel, 3, 3), jnp.float32) * (2.0 / fan_in) ** 0.5
        return dict(w=w,
                    gamma=jnp.ones((channel,), jnp.float32),
                    beta=jnp.zeros((channel,), jnp.float32),
                    rmean=jnp.zeros((channel,), jnp.float32),
                    rvar=jnp.ones((channel,), jnp.float32),
                    a=jnp.full((channel,), 0.25, jnp.float32))       # nn.PReLU default

    def linear_params(k):
        k1, k2 = jax.random.split(k)
        bound = 1.0 / (D ** 0.5)
        return dict(w=jax.random.uniform(k1, (feature_dim, D), jnp.float32, -bound, bound),
                    b=jax.random.uniform(k2, (feature_dim,), jnp.float32, -bound, bound))

    return dict(
        encoder=[conv_block_params(keys[i]) for i in range(3)],
        encoder2=[conv_block_params(keys[3 + i]) for i in range(3)],
        vae_mean=linear_params(keys[6]),
        vae_var=linear_params(keys[7]),
        vae_mean2=linear_params(keys[8]),
        vae_var2=linear_params(keys[9]),
    )


# ---------------------------------------------------------------------------
# DWNet.forward(x, target=None)
# ---------------------------------------------------------------------------

def dwnet_forward(x_nchw, params):
    # TODO(synk): backbone model_func is injected externally and undefined in the
    #             reference; treated as identity (x is the backbone feature map, NCHW).
    B, C, H, W = x_nchw.shape
    HW = H * W
    R = B * HW
    feature_map = x_nchw
    fm2 = jnp.transpose(feature_map, (0, 2, 3, 1)).reshape(R, C)

    # Trace-time weight packing (constant-folded; bf16 storage for big weights).
    e1 = _prep_conv_params(params['encoder'], C)
    e2 = _prep_conv_params(params['encoder2'], C)
    convw = jnp.stack([e1[0], e2[0]], axis=0).astype(jnp.bfloat16)   # (2, 3, 9C, C)
    bn_s = jnp.stack([e1[1], e2[1]], axis=0)                         # (2, 3, 1, C)
    bn_t = jnp.stack([e1[2], e2[2]], axis=0)
    pre_a = jnp.stack([e1[3], e2[3]], axis=0)
    masks = _tap_masks(B, H, W)                                      # (9, R, 1)
    mavg, pavg = _pool_mats(B, HW)                                   # (R,R), (B,R)

    w1, b1 = _prep_vae_head(params['vae_mean'], params['vae_var'], C, HW)
    w2, b2 = _prep_vae_head(params['vae_mean2'], params['vae_var2'], C, HW)
    wl = jnp.stack([w1, w2], axis=0).astype(jnp.bfloat16)            # (2, HW*C, 2F)
    bl = jnp.stack([b1, b2], axis=0)                                 # (2, 1, 2F)

    # Kernel 1: cls feature + encoder_map + both conv stacks (one launch).
    cls2, hout = encoder_stack(fm2, mavg, pavg, masks, convw, bn_s, bn_t, pre_a,
                               B=B, H=H, W=W, C=C)
    cls_feature = cls2[0]                                            # (B, C)

    # Kernel 2: fused (mu | logvar) heads for both branches (one launch).
    feat = hout.reshape(2, B, HW * C)                                # row-major reshape
    ml = vae_heads(feat, wl, bl)                                     # (2, B, 2F)
    F = params['vae_mean']['w'].shape[0]
    mu, logvar = ml[0, :, :F], ml[0, :, F:]
    mu2, logvar2 = ml[1, :, :F], ml[1, :, F:]
    return cls_feature, mu, logvar, mu2, logvar2, feature_map


# ---------------------------------------------------------------------------
# Pure-JAX reference (independent path) for correctness checking
# ---------------------------------------------------------------------------

def _reference_forward(x_nchw, params):
    B, C, H, W = x_nchw.shape
    hp = jax.lax.Precision.HIGHEST
    q = lambda w: w.astype(jnp.bfloat16).astype(jnp.float32)   # match kernel bf16 storage
    fm = jnp.transpose(x_nchw, (0, 2, 3, 1))
    cls = jnp.mean(fm, axis=(1, 2))
    em = fm + cls[:, None, None, :]

    def block(h, p):
        w = jnp.transpose(q(p['w']), (2, 3, 1, 0))             # HWIO
        y = jax.lax.conv_general_dilated(
            h, w, (1, 1), 'SAME',
            dimension_numbers=('NHWC', 'HWIO', 'NHWC'), precision=hp)
        s = p['gamma'] / jnp.sqrt(p['rvar'] + EPS)
        y = y * s + (p['beta'] - p['rmean'] * s)
        return jnp.where(y >= 0.0, y, p['a'] * y)

    def enc(blocks):
        h = em
        for p in blocks:
            h = block(h, p)
        return jnp.transpose(h, (0, 3, 1, 2)).reshape(B, C * H * W)

    f1, f2 = enc(params['encoder']), enc(params['encoder2'])

    def lin(f, p):
        return jnp.dot(f, q(p['w']).T, precision=hp) + p['b']

    return (cls, lin(f1, params['vae_mean']), lin(f1, params['vae_var']),
            lin(f2, params['vae_mean2']), lin(f2, params['vae_var2']), x_nchw)


if __name__ == "__main__":
    # Module config uses channel=640, pool_size=5 (use_conv=False); scaled to C=64.
    B, C, P = 2, 64, 5
    key = jax.random.PRNGKey(0)
    kx, kp = jax.random.split(key)
    x = jax.random.normal(kx, (B, C, P, P), jnp.float32)     # backbone feature map (NCHW)
    params = init_params(kp, channel=C, pool_size=P, feature_dim=C)

    fwd = jax.jit(functools.partial(dwnet_forward, params=params))
    outs = jax.block_until_ready(fwd(x))
    cls_feature, mu, logvar, mu2, logvar2, feature_map = outs

    assert cls_feature.shape == (B, C)
    assert mu.shape == (B, C) and logvar.shape == (B, C)
    assert mu2.shape == (B, C) and logvar2.shape == (B, C)
    assert feature_map.shape == (B, C, P, P)

    ref = jax.block_until_ready(
        jax.jit(functools.partial(_reference_forward, params=params))(x))
    names = ("cls_feature", "mu", "logvar", "mu2", "logvar2", "feature_map")
    for got, want, name in zip(outs, ref, names):
        err = float(jnp.max(jnp.abs(got - want)))
        assert bool(jnp.allclose(got, want, rtol=5e-2, atol=5e-2)), (name, err)

    print("KERNEL_OK")
</pallas_src>

<mosaic_0001>
module attributes {stable_mosaic.version = 11 : i64} {
  func.func @kernel(%arg0: i32, %arg1: i32, %arg2: memref<50x64xf32, #tpu.memory_space<vmem>>, %arg3: memref<50x50xf32, #tpu.memory_space<vmem>>, %arg4: memref<2x50xf32, #tpu.memory_space<vmem>>, %arg5: memref<9x50x1xf32, #tpu.memory_space<vmem>>, %arg6: memref<1x1x576x64xbf16, #tpu.memory_space<vmem>>, %arg7: memref<1x1x1x64xf32, #tpu.memory_space<vmem>>, %arg8: memref<1x1x1x64xf32, #tpu.memory_space<vmem>>, %arg9: memref<1x1x1x64xf32, #tpu.memory_space<vmem>>, %arg10: memref<1x2x64xf32, #tpu.memory_space<vmem>>, %arg11: memref<1x50x64xf32, #tpu.memory_space<vmem>>, %arg12: memref<50x64xf32, #tpu.memory_space<vmem>>, %arg13: memref<50x576xf32, #tpu.memory_space<vmem>>) attributes {dimension_semantics = [#tpu.dimension_semantics<parallel>, #tpu.dimension_semantics<arbitrary>], iteration_bounds = array<i64: 2, 3>, scalar_prefetch = 0 : i64, scratch_operands = 2 : i64, tpu.core_type = #tpu.core_type<tc>, window_params = [{pipeline_mode = #tpu.pipeline_mode<synchronous>, transform_indices = @transform_0, window_bounds = array<i64: 50, 64>}, {pipeline_mode = #tpu.pipeline_mode<synchronous>, transform_indices = @transform_1, window_bounds = array<i64: 50, 50>}, {pipeline_mode = #tpu.pipeline_mode<synchronous>, transform_indices = @transform_2, window_bounds = array<i64: 2, 50>}, {pipeline_mode = #tpu.pipeline_mode<synchronous>, transform_indices = @transform_3, window_bounds = array<i64: 9, 50, 1>}, {transform_indices = @transform_4, window_bounds = array<i64: 1, 1, 576, 64>}, {transform_indices = @transform_5, window_bounds = array<i64: 1, 1, 1, 64>}, {transform_indices = @transform_6, window_bounds = array<i64: 1, 1, 1, 64>}, {transform_indices = @transform_7, window_bounds = array<i64: 1, 1, 1, 64>}, {transform_indices = @transform_8, window_bounds = array<i64: 1, 2, 64>}, {transform_indices = @transform_9, window_bounds = array<i64: 1, 50, 64>}]} {
    %c0_i32 = arith.constant 0 : i32
    %0 = arith.cmpi eq, %arg1, %c0_i32 : i32
    %1 = arith.extui %0 : i1 to i32
    %c0_i32_0 = arith.constant 0 : i32
    %2 = arith.cmpi ne, %1, %c0_i32_0 : i32
    scf.if %2 {
      %c0_52 = arith.constant 0 : index
      %c0_53 = arith.constant 0 : index
      %79 = vector.load %arg2[%c0_52, %c0_53] : memref<50x64xf32, #tpu.memory_space<vmem>>, vector<50x64xf32>
      %c0_54 = arith.constant 0 : index
      %c0_55 = arith.constant 0 : index
      %80 = vector.load %arg4[%c0_54, %c0_55] : memref<2x50xf32, #tpu.memory_space<vmem>>, vector<2x50xf32>
      %cst_56 = arith.constant dense<0.000000e+00> : vector<2x64xf32>
      %81 = tpu.matmul %80, %79, %cst_56 {dimension_numbers = #tpu.dot_dimension_numbers<[1], [0], [0], [1], [0, 0, 1, 1], [], []>} : vector<2x50xf32>, vector<50x64xf32>, vector<2x64xf32> -> vector<2x64xf32>
      %c0_57 = arith.constant 0 : index
      %c0_58 = arith.constant 0 : index
      %c0_59 = arith.constant 0 : index
      %82 = vector.load %arg10[%c0_57, %c0_58, %c0_59] : memref<1x2x64xf32, #tpu.memory_space<vmem>>, vector<1x2x64xf32>
      %83 = vector.shape_cast %82 : vector<1x2x64xf32> to vector<2x64xf32>
      %84 = vector.shape_cast %81 : vector<2x64xf32> to vector<1x2x64xf32>
      tpu.vector_store %arg10[%c0_57, %c0_58, %c0_59], %84 {strides = array<i32>} : memref<1x2x64xf32, #tpu.memory_space<vmem>>, vector<1x2x64xf32>,
      %c0_60 = arith.constant 0 : index
      %c0_61 = arith.constant 0 : index
      %85 = vector.load %arg3[%c0_60, %c0_61] : memref<50x50xf32, #tpu.memory_space<vmem>>, vector<50x50xf32>
      %cst_62 = arith.constant dense<0.000000e+00> : vector<50x64xf32>
      %86 = tpu.matmul %85, %79, %cst_62 {dimension_numbers = #tpu.dot_dimension_numbers<[1], [0], [0], [1], [0, 0, 1, 1], [], []>} : vector<50x50xf32>, vector<50x64xf32>, vector<50x64xf32> -> vector<50x64xf32>
      %87 = arith.addf %79, %86 : vector<50x64xf32>
      %c0_63 = arith.constant 0 : index
      %c0_64 = arith.constant 0 : index
      %88 = vector.load %arg12[%c0_63, %c0_64] : memref<50x64xf32, #tpu.memory_space<vmem>>, vector<50x64xf32>
      tpu.vector_store %arg12[%c0_63, %c0_64], %87 {strides = array<i32>} : memref<50x64xf32, #tpu.memory_space<vmem>>, vector<50x64xf32>,
    } else {
    }
    %c0 = arith.constant 0 : index
    %c0_1 = arith.constant 0 : index
    %3 = vector.load %arg12[%c0, %c0_1] : memref<50x64xf32, #tpu.memory_space<vmem>>, vector<50x64xf32>
    %cst = arith.constant 0.000000e+00 : f32
    %4 = vector.broadcast %cst : f32 to vector<6x64xf32>
    %5 = tpu.concatenate %4, %3, %4 in 0 : vector<6x64xf32>, vector<50x64xf32>, vector<6x64xf32> -> vector<62x64xf32>
    %6 = vector.extract_strided_slice %5 {offsets = [0, 0], sizes = [50, 64], strides = [1, 1]} : vector<62x64xf32> to vector<50x64xf32>
    %c0_2 = arith.constant 0 : index
    %c0_3 = arith.constant 0 : index
    %c0_4 = arith.constant 0 : index
    %7 = vector.load %arg5[%c0_2, %c0_3, %c0_4] : memref<9x50x1xf32, #tpu.memory_space<vmem>>, vector<1x50x1xf32>
    %8 = vector.shape_cast %7 : vector<1x50x1xf32> to vector<50x1xf32>
    %9 = vector.broadcast %8 : vector<50x1xf32> to vector<50x64xf32>
    %10 = arith.mulf %6, %9 : vector<50x64xf32>
    %c0_5 = arith.constant 0 : index
    %c0_6 = arith.constant 0 : index
    %11 = vector.load %arg13[%c0_5, %c0_6] : memref<50x576xf32, #tpu.memory_space<vmem>>, vector<50x64xf32>
    tpu.vector_store %arg13[%c0_5, %c0_6], %10 {strides = array<i32>} : memref<50x576xf32, #tpu.memory_space<vmem>>, vector<50x64xf32>,
    %12 = vector.extract_strided_slice %5 {offsets = [1, 0], sizes = [50, 64], strides = [1, 1]} : vector<62x64xf32> to vector<50x64xf32>
    %c1 = arith.constant 1 : index
    %c0_7 = arith.constant 0 : index
    %c0_8 = arith.constant 0 : index
    %13 = vector.load %arg5[%c1, %c0_7, %c0_8] : memref<9x50x1xf32, #tpu.memory_space<vmem>>, vector<1x50x1xf32>
    %14 = vector.shape_cast %13 : vector<1x50x1xf32> to vector<50x1xf32>
    %15 = vector.broadcast %14 : vector<50x1xf32> to vector<50x64xf32>
    %16 = arith.mulf %12, %15 : vector<50x64xf32>
    %c0_9 = arith.constant 0 : index
    %c64 = arith.constant 64 : index
    %17 = vector.load %arg13[%c0_9, %c64] : memref<50x576xf32, #tpu.memory_space<vmem>>, vector<50x64xf32>
    tpu.vector_store %arg13[%c0_9, %c64], %16 {strides = array<i32>} : memref<50x576xf32, #tpu.memory_space<vmem>>, vector<50x64xf32>,
    %18 = vector.extract_strided_slice %5 {offsets = [2, 0], sizes = [50, 64], strides = [1, 1]} : vector<62x64xf32> to vector<50x64xf32>
    %c2 = arith.constant 2 : index
    %c0_10 = arith.constant 0 : index
    %c0_11 = arith.constant 0 : index
    %19 = vector.load %arg5[%c2, %c0_10, %c0_11] : memref<9x50x1xf32, #tpu.memory_space<vmem>>, vector<1x50x1xf32>
    %20 = vector.shape_cast %19 : vector<1x50x1xf32> to vector<50x1xf32>
    %21 = vector.broadcast %20 : vector<50x1xf32> to vector<50x64xf32>
    %22 = arith.mulf %18, %21 : vector<50x64xf32>
    %c0_12 = arith.constant 0 : index
    %c128 = arith.constant 128 : index
    %23 = vector.load %arg13[%c0_12, %c128] : memref<50x576xf32, #tpu.memory_space<vmem>>, vector<50x64xf32>
    tpu.vector_store %arg13[%c0_12, %c128], %22 {strides = array<i32>} : memref<50x576xf32, #tpu.memory_space<vmem>>, vector<50x64xf32>,
    %24 = vector.extract_strided_slice %5 {offsets = [5, 0], sizes = [50, 64], strides = [1, 1]} : vector<62x64xf32> to vector<50x64xf32>
    %c3 = arith.constant 3 : index
    %c0_13 = arith.constant 0 : index
    %c0_14 = arith.constant 0 : index
    %25 = vector.load %arg5[%c3, %c0_13, %c0_14] : memref<9x50x1xf32, #tpu.memory_space<vmem>>, vector<1x50x1xf32>
    %26 = vector.shape_cast %25 : vector<1x50x1xf32> to vector<50x1xf32>
    %27 = vector.broadcast %26 : vector<50x1xf32> to vector<50x64xf32>
    %28 = arith.mulf %24, %27 : vector<50x64xf32>
    %c0_15 = arith.constant 0 : index
    %c192 = arith.constant 192 : index
    %29 = vector.load %arg13[%c0_15, %c192] : memref<50x576xf32, #tpu.memory_space<vmem>>, vector<50x64xf32>
    tpu.vector_store %arg13[%c0_15, %c192], %28 {strides = array<i32>} : memref<50x576xf32, #tpu.memory_space<vmem>>, vector<50x64xf32>,
    %c0_16 = arith.constant 0 : index
    %c256 = arith.constant 256 : index
    %30 = vector.load %arg13[%c0_16, %c256] : memref<50x576xf32, #tpu.memory_space<vmem>>, vector<50x64xf32>
    tpu.vector_store %arg13[%c0_16, %c256], %3 {strides = array<i32>} : memref<50x576xf32, #tpu.memory_space<vmem>>, vector<50x64xf32>,
    %31 = vector.extract_strided_slice %5 {offsets = [7, 0], sizes = [50, 64], strides = [1, 1]} : vector<62x64xf32> to vector<50x64xf32>
    %c5 = arith.constant 5 : index
    %c0_17 = arith.constant 0 : index
    %c0_18 = arith.constant 0 : index
    %32 = vector.load %arg5[%c5, %c0_17, %c0_18] : memref<9x50x1xf32, #tpu.memory_space<vmem>>, vector<1x50x1xf32>
    %33 = vector.shape_cast %32 : vector<1x50x1xf32> to vector<50x1xf32>
    %34 = vector.broadcast %33 : vector<50x1xf32> to vector<50x64xf32>
    %35 = arith.mulf %31, %34 : vector<50x64xf32>
    %c0_19 = arith.constant 0 : index
    %c320 = arith.constant 320 : index
    %36 = vector.load %arg13[%c0_19, %c320] : memref<50x576xf32, #tpu.memory_space<vmem>>, vector<50x64xf32>
    tpu.vector_store %arg13[%c0_19, %c320], %35 {strides = array<i32>} : memref<50x576xf32, #tpu.memory_space<vmem>>, vector<50x64xf32>,
    %37 = vector.extract_strided_slice %5 {offsets = [10, 0], sizes = [50, 64], strides = [1, 1]} : vector<62x64xf32> to vector<50x64xf32>
    %c6 = arith.constant 6 : index
    %c0_20 = arith.constant 0 : index
    %c0_21 = arith.constant 0 : index
    %38 = vector.load %arg5[%c6, %c0_20, %c0_21] : memref<9x50x1xf32, #tpu.memory_space<vmem>>, vector<1x50x1xf32>
    %39 = vector.shape_cast %38 : vector<1x50x1xf32> to vector<50x1xf32>
    %40 = vector.broadcast %39 : vector<50x1xf32> to vector<50x64xf32>
    %41 = arith.mulf %37, %40 : vector<50x64xf32>
    %c0_22 = arith.constant 0 : index
    %c384 = arith.constant 384 : index
    %42 = vector.load %arg13[%c0_22, %c384] : memref<50x576xf32, #tpu.memory_space<vmem>>, vector<50x64xf32>
    tpu.vector_store %arg13[%c0_22, %c384], %41 {strides = array<i32>} : memref<50x576xf32, #tpu.memory_space<vmem>>, vector<50x64xf32>,
    %43 = vector.extract_strided_slice %5 {offsets = [11, 0], sizes = [50, 64], strides = [1, 1]} : vector<62x64xf32> to vector<50x64xf32>
    %c7 = arith.constant 7 : index
    %c0_23 = arith.constant 0 : index
    %c0_24 = arith.constant 0 : index
    %44 = vector.load %arg5[%c7, %c0_23, %c0_24] : memref<9x50x1xf32, #tpu.memory_space<vmem>>, vector<1x50x1xf32>
    %45 = vector.shape_cast %44 : vector<1x50x1xf32> to vector<50x1xf32>
    %46 = vector.broadcast %45 : vector<50x1xf32> to vector<50x64xf32>
    %47 = arith.mulf %43, %46 : vector<50x64xf32>
    %c0_25 = arith.constant 0 : index
    %c448 = arith.constant 448 : index
    %48 = vector.load %arg13[%c0_25, %c448] : memref<50x576xf32, #tpu.memory_space<vmem>>, vector<50x64xf32>
    tpu.vector_store %arg13[%c0_25, %c448], %47 {strides = array<i32>} : memref<50x576xf32, #tpu.memory_space<vmem>>, vector<50x64xf32>,
    %49 = vector.extract_strided_slice %5 {offsets = [12, 0], sizes = [50, 64], strides = [1, 1]} : vector<62x64xf32> to vector<50x64xf32>
    %c8 = arith.constant 8 : index
    %c0_26 = arith.constant 0 : index
    %c0_27 = arith.constant 0 : index
    %50 = vector.load %arg5[%c8, %c0_26, %c0_27] : memref<9x50x1xf32, #tpu.memory_space<vmem>>, vector<1x50x1xf32>
    %51 = vector.shape_cast %50 : vector<1x50x1xf32> to vector<50x1xf32>
    %52 = vector.broadcast %51 : vector<50x1xf32> to vector<50x64xf32>
    %53 = arith.mulf %49, %52 : vector<50x64xf32>
    %c0_28 = arith.constant 0 : index
    %c512 = arith.constant 512 : index
    %54 = vector.load %arg13[%c0_28, %c512] : memref<50x576xf32, #tpu.memory_space<vmem>>, vector<50x64xf32>
    tpu.vector_store %arg13[%c0_28, %c512], %53 {strides = array<i32>} : memref<50x576xf32, #tpu.memory_space<vmem>>, vector<50x64xf32>,
    %c0_29 = arith.constant 0 : index
    %c0_30 = arith.constant 0 : index
    %c0_31 = arith.constant 0 : index
    %c0_32 = arith.constant 0 : index
    %55 = vector.load %arg6[%c0_29, %c0_30, %c0_31, %c0_32] : memref<1x1x576x64xbf16, #tpu.memory_space<vmem>>, vector<1x1x576x64xbf16>
    %56 = vector.shape_cast %55 : vector<1x1x576x64xbf16> to vector<576x64xbf16>
    %57 = arith.extf %56 : vector<576x64xbf16> to vector<576x64xf32>
    %c0_33 = arith.constant 0 : index
    %c0_34 = arith.constant 0 : index
    %58 = vector.load %arg13[%c0_33, %c0_34] : memref<50x576xf32, #tpu.memory_space<vmem>>, vector<50x576xf32>
    %cst_35 = arith.constant dense<0.000000e+00> : vector<50x64xf32>
    %59 = tpu.matmul %58, %57, %cst_35 {dimension_numbers = #tpu.dot_dimension_numbers<[1], [0], [0], [1], [0, 0, 1, 1], [], []>} : vector<50x576xf32>, vector<576x64xf32>, vector<50x64xf32> -> vector<50x64xf32>
    %c0_36 = arith.constant 0 : index
    %c0_37 = arith.constant 0 : index
    %c0_38 = arith.constant 0 : index
    %c0_39 = arith.constant 0 : index
    %60 = vector.load %arg7[%c0_36, %c0_37, %c0_38, %c0_39] : memref<1x1x1x64xf32, #tpu.memory_space<vmem>>, vector<1x1x1x64xf32>
    %61 = vector.shape_cast %60 : vector<1x1x1x64xf32> to vector<1x64xf32>
    %62 = vector.broadcast %61 : vector<1x64xf32> to vector<50x64xf32>
    %63 = arith.mulf %59, %62 : vector<50x64xf32>
    %c0_40 = arith.constant 0 : index
    %c0_41 = arith.constant 0 : index
    %c0_42 = arith.constant 0 : index
    %c0_43 = arith.constant 0 : index
    %64 = vector.load %arg8[%c0_40, %c0_41, %c0_42, %c0_43] : memref<1x1x1x64xf32, #tpu.memory_space<vmem>>, vector<1x1x1x64xf32>
    %65 = vector.shape_cast %64 : vector<1x1x1x64xf32> to vector<1x64xf32>
    %66 = vector.broadcast %65 : vector<1x64xf32> to vector<50x64xf32>
    %67 = arith.addf %63, %66 : vector<50x64xf32>
    %cst_44 = arith.constant 0.000000e+00 : f32
    %68 = vector.broadcast %cst_44 : f32 to vector<50x64xf32>
    %69 = arith.cmpf oge, %67, %68 : vector<50x64xf32>
    %c0_45 = arith.constant 0 : index
    %c0_46 = arith.constant 0 : index
    %c0_47 = arith.constant 0 : index
    %c0_48 = arith.constant 0 : index
    %70 = vector.load %arg9[%c0_45, %c0_46, %c0_47, %c0_48] : memref<1x1x1x64xf32, #tpu.memory_space<vmem>>, vector<1x1x1x64xf32>
    %71 = vector.shape_cast %70 : vector<1x1x1x64xf32> to vector<1x64xf32>
    %72 = vector.broadcast %71 : vector<1x64xf32> to vector<50x64xf32>
    %73 = arith.mulf %72, %67 : vector<50x64xf32>
    %74 = arith.select %69, %67, %73 : vector<50x64xi1>, vector<50x64xf32>
    %c0_49 = arith.constant 0 : index
    %c0_50 = arith.constant 0 : index
    %75 = vector.load %arg12[%c0_49, %c0_50] : memref<50x64xf32, #tpu.memory_space<vmem>>, vector<50x64xf32>
    tpu.vector_store %arg12[%c0_49, %c0_50], %74 {strides = array<i32>} : memref<50x64xf32, #tpu.memory_space<vmem>>, vector<50x64xf32>,
    %c2_i32 = arith.constant 2 : i32
    %76 = arith.cmpi eq, %arg1, %c2_i32 : i32
    %77 = arith.extui %76 : i1 to i32
    %c0_i32_51 = arith.constant 0 : i32
    %78 = arith.cmpi ne, %77, %c0_i32_51 : i32
    scf.if %78 {
      %c0_52 = arith.constant 0 : index
      %c0_53 = arith.constant 0 : index
      %c0_54 = arith.constant 0 : index
      %79 = vector.load %arg11[%c0_52, %c0_53, %c0_54] : memref<1x50x64xf32, #tpu.memory_space<vmem>>, vector<1x50x64xf32>
      %80 = vector.shape_cast %79 : vector<1x50x64xf32> to vector<50x64xf32>
      %81 = vector.shape_cast %74 : vector<50x64xf32> to vector<1x50x64xf32>
      tpu.vector_store %arg11[%c0_52, %c0_53, %c0_54], %81 {strides = array<i32>} : memref<1x50x64xf32, #tpu.memory_space<vmem>>, vector<1x50x64xf32>,
    } else {
    }
    return
  }
  func.func @transform_0(%arg0: i32, %arg1: i32) -> (i32, i32) {
    %c0_i32 = arith.constant 0 : i32
    %c0_i32_0 = arith.constant 0 : i32
    %c0_i32_1 = arith.constant 0 : i32
    return %c0_i32, %c0_i32_0 : i32, i32
  }
  func.func @transform_1(%arg0: i32, %arg1: i32) -> (i32, i32) {
    %c0_i32 = arith.constant 0 : i32
    %c0_i32_0 = arith.constant 0 : i32
    %c0_i32_1 = arith.constant 0 : i32
    return %c0_i32, %c0_i32_0 : i32, i32
  }
  func.func @transform_2(%arg0: i32, %arg1: i32) -> (i32, i32) {
    %c0_i32 = arith.constant 0 : i32
    %c0_i32_0 = arith.constant 0 : i32
    %c0_i32_1 = arith.constant 0 : i32
    return %c0_i32, %c0_i32_0 : i32, i32
  }
  func.func @transform_3(%arg0: i32, %arg1: i32) -> (i32, i32, i32) {
    %c0_i32 = arith.constant 0 : i32
    %c0_i32_0 = arith.constant 0 : i32
    %c0_i32_1 = arith.constant 0 : i32
    %c0_i32_2 = arith.constant 0 : i32
    return %c0_i32, %c0_i32_0, %c0_i32_1 : i32, i32, i32
  }
  func.func @transform_4(%arg0: i32, %arg1: i32) -> (i32, i32, i32, i32) {
    %c0_i32 = arith.constant 0 : i32
    %c0_i32_0 = arith.constant 0 : i32
    %c0_i32_1 = arith.constant 0 : i32
    return %arg0, %arg1, %c0_i32, %c0_i32_0 : i32, i32, i32, i32
  }
  func.func @transform_5(%arg0: i32, %arg1: i32) -> (i32, i32, i32, i32) {
    %c0_i32 = arith.constant 0 : i32
    %c0_i32_0 = arith.constant 0 : i32
    %c0_i32_1 = arith.constant 0 : i32
    return %arg0, %arg1, %c0_i32, %c0_i32_0 : i32, i32, i32, i32
  }
  func.func @transform_6(%arg0: i32, %arg1: i32) -> (i32, i32, i32, i32) {
    %c0_i32 = arith.constant 0 : i32
    %c0_i32_0 = arith.constant 0 : i32
    %c0_i32_1 = arith.constant 0 : i32
    return %arg0, %arg1, %c0_i32, %c0_i32_0 : i32, i32, i32, i32
  }
  func.func @transform_7(%arg0: i32, %arg1: i32) -> (i32, i32, i32, i32) {
    %c0_i32 = arith.constant 0 : i32
    %c0_i32_0 = arith.constant 0 : i32
    %c0_i32_1 = arith.constant 0 : i32
    return %arg0, %arg1, %c0_i32, %c0_i32_0 : i32, i32, i32, i32
  }
  func.func @transform_8(%arg0: i32, %arg1: i32) -> (i32, i32, i32) {
    %c0_i32 = arith.constant 0 : i32
    %c0_i32_0 = arith.constant 0 : i32
    %c0_i32_1 = arith.constant 0 : i32
    return %arg0, %c0_i32, %c0_i32_0 : i32, i32, i32
  }
  func.func @transform_9(%arg0: i32, %arg1: i32) -> (i32, i32, i32) {
    %c0_i32 = arith.constant 0 : i32
    %c0_i32_0 = arith.constant 0 : i32
    %c0_i32_1 = arith.constant 0 : i32
    return %arg0, %c0_i32, %c0_i32_0 : i32, i32, i32
  }
}

module attributes {stable_mosaic.version = 11 : i64} {
  func.func @_vae_head_kernel(%arg0: i32, %arg1: i32, %arg2: memref<1x2x1600xf32, #tpu.memory_space<vmem>>, %arg3: memref<1x1600x128xbf16, #tpu.memory_space<vmem>>, %arg4: memref<1x1x128xf32, #tpu.memory_space<vmem>>, %arg5: memref<1x2x128xf32, #tpu.memory_space<vmem>>, %arg6: memref<2x128xf32, #tpu.memory_space<vmem>>) attributes {dimension_semantics = [#tpu.dimension_semantics<parallel>, #tpu.dimension_semantics<arbitrary>], iteration_bounds = array<i64: 2, 1>, scalar_prefetch = 0 : i64, scratch_operands = 1 : i64, tpu.core_type = #tpu.core_type<tc>, window_params = [{transform_indices = @transform_0, window_bounds = array<i64: 1, 2, 1600>}, {transform_indices = @transform_1, window_bounds = array<i64: 1, 1600, 128>}, {transform_indices = @transform_2, window_bounds = array<i64: 1, 1, 128>}, {transform_indices = @transform_3, window_bounds = array<i64: 1, 2, 128>}]} {
    %c0_i32 = arith.constant 0 : i32
    %0 = arith.cmpi eq, %arg1, %c0_i32 : i32
    %1 = arith.extui %0 : i1 to i32
    %c0_i32_0 = arith.constant 0 : i32
    %2 = arith.cmpi ne, %1, %c0_i32_0 : i32
    scf.if %2 {
      %cst_12 = arith.constant 0.000000e+00 : f32
      %15 = vector.broadcast %cst_12 : f32 to vector<2x128xf32>
      %c0_13 = arith.constant 0 : index
      %c0_14 = arith.constant 0 : index
      %16 = vector.load %arg6[%c0_13, %c0_14] : memref<2x128xf32, #tpu.memory_space<vmem>>, vector<2x128xf32>
      tpu.vector_store %arg6[%c0_13, %c0_14], %15 {strides = array<i32>} : memref<2x128xf32, #tpu.memory_space<vmem>>, vector<2x128xf32>,
    } else {
    }
    %c0 = arith.constant 0 : index
    %c0_1 = arith.constant 0 : index
    %3 = vector.load %arg6[%c0, %c0_1] : memref<2x128xf32, #tpu.memory_space<vmem>>, vector<2x128xf32>
    %c0_2 = arith.constant 0 : index
    %c0_3 = arith.constant 0 : index
    %c0_4 = arith.constant 0 : index
    %4 = vector.load %arg2[%c0_2, %c0_3, %c0_4] : memref<1x2x1600xf32, #tpu.memory_space<vmem>>, vector<1x2x1600xf32>
    %5 = vector.shape_cast %4 : vector<1x2x1600xf32> to vector<2x1600xf32>
    %c0_5 = arith.constant 0 : index
    %c0_6 = arith.constant 0 : index
    %c0_7 = arith.constant 0 : index
    %6 = vector.load %arg3[%c0_5, %c0_6, %c0_7] : memref<1x1600x128xbf16, #tpu.memory_space<vmem>>, vector<1x1600x128xbf16>
    %7 = vector.shape_cast %6 : vector<1x1600x128xbf16> to vector<1600x128xbf16>
    %8 = arith.extf %7 : vector<1600x128xbf16> to vector<1600x128xf32>
    %cst = arith.constant dense<0.000000e+00> : vector<2x128xf32>
    %9 = tpu.matmul %5, %8, %cst {dimension_numbers = #tpu.dot_dimension_numbers<[1], [0], [0], [1], [0, 0, 1, 1], [], []>} : vector<2x1600xf32>, vector<1600x128xf32>, vector<2x128xf32> -> vector<2x128xf32>
    %10 = arith.addf %3, %9 : vector<2x128xf32>
    %c0_8 = arith.constant 0 : index
    %c0_9 = arith.constant 0 : index
    %11 = vector.load %arg6[%c0_8, %c0_9] : memref<2x128xf32, #tpu.memory_space<vmem>>, vector<2x128xf32>
    tpu.vector_store %arg6[%c0_8, %c0_9], %10 {strides = array<i32>} : memref<2x128xf32, #tpu.memory_space<vmem>>, vector<2x128xf32>,
    %c0_i32_10 = arith.constant 0 : i32
    %12 = arith.cmpi eq, %arg1, %c0_i32_10 : i32
    %13 = arith.extui %12 : i1 to i32
    %c0_i32_11 = arith.constant 0 : i32
    %14 = arith.cmpi ne, %13, %c0_i32_11 : i32
    scf.if %14 {
      %c0_12 = arith.constant 0 : index
      %c0_13 = arith.constant 0 : index
      %15 = vector.load %arg6[%c0_12, %c0_13] : memref<2x128xf32, #tpu.memory_space<vmem>>, vector<2x128xf32>
      %c0_14 = arith.constant 0 : index
      %c0_15 = arith.constant 0 : index
      %c0_16 = arith.constant 0 : index
      %16 = vector.load %arg4[%c0_14, %c0_15, %c0_16] : memref<1x1x128xf32, #tpu.memory_space<vmem>>, vector<1x1x128xf32>
      %17 = vector.shape_cast %16 : vector<1x1x128xf32> to vector<1x128xf32>
      %18 = vector.broadcast %17 : vector<1x128xf32> to vector<2x128xf32>
      %19 = arith.addf %15, %18 : vector<2x128xf32>
      %c0_17 = arith.constant 0 : index
      %c0_18 = arith.constant 0 : index
      %c0_19 = arith.constant 0 : index
      %20 = vector.load %arg5[%c0_17, %c0_18, %c0_19] : memref<1x2x128xf32, #tpu.memory_space<vmem>>, vector<1x2x128xf32>
      %21 = vector.shape_cast %20 : vector<1x2x128xf32> to vector<2x128xf32>
      %22 = vector.shape_cast %19 : vector<2x128xf32> to vector<1x2x128xf32>
      tpu.vector_store %arg5[%c0_17, %c0_18, %c0_19], %22 {strides = array<i32>} : memref<1x2x128xf32, #tpu.memory_space<vmem>>, vector<1x2x128xf32>,
    } else {
    }
    return
  }
  func.func @transform_0(%arg0: i32, %arg1: i32) -> (i32, i32, i32) {
    %c0_i32 = arith.constant 0 : i32
    %c0_i32_0 = arith.constant 0 : i32
    return %arg0, %c0_i32, %arg1 : i32, i32, i32
  }
  func.func @transform_1(%arg0: i32, %arg1: i32) -> (i32, i32, i32) {
    %c0_i32 = arith.constant 0 : i32
    %c0_i32_0 = arith.constant 0 : i32
    return %arg0, %arg1, %c0_i32 : i32, i32, i32
  }
  func.func @transform_2(%arg0: i32, %arg1: i32) -> (i32, i32, i32) {
    %c0_i32 = arith.constant 0 : i32
    %c0_i32_0 = arith.constant 0 : i32
    %c0_i32_1 = arith.constant 0 : i32
    return %arg0, %c0_i32, %c0_i32_0 : i32, i32, i32
  }
  func.func @transform_3(%arg0: i32, %arg1: i32) -> (i32, i32, i32) {
    %c0_i32 = arith.constant 0 : i32
    %c0_i32_0 = arith.constant 0 : i32
    %c0_i32_1 = arith.constant 0 : i32
    return %arg0, %c0_i32, %c0_i32_0 : i32, i32, i32
  }
}

</mosaic_0001>

<bundles_post_ra>
// kernel: dwnet_forward.2
= control target key start
LH: loop header
LB: loop body
LE: loop exit
PB: predicated region body
PF: predicated region fallthrough
CT: control target
= control target key end

     0   :  { %s4012_s0 = inlined_call_operand.vmem [shape: f32[50,64], index: 0, kind: input, shape index: {}]   ;;  %s4013_s1 = inlined_call_operand.vmem [shape: f32[50,50], index: 1, kind: input, shape index: {}]   ;;  %s4014_s2 = inlined_call_operand.vmem [shape: f32[2,50], index: 2, kind: input, shape index: {}]   ;;  %s4015_s3 = inlined_call_operand.vmem [shape: f32[9,50,1], index: 3, kind: input, shape index: {}]   ;;  %s4016_s4 = inlined_call_operand.hbm [shape: bf16[2,3,576,64], index: 4, kind: input, shape index: {}]   ;;  %s4017_s5 = inlined_call_operand.vmem [shape: f32[2,3,1,64], index: 5, kind: input, shape index: {}]   ;;  %s4018_s6 = inlined_call_operand.vmem [shape: f32[2,3,1,64], index: 6, kind: input, shape index: {}]   ;;  %s4019_s7 = inlined_call_operand.vmem [shape: f32[2,3,1,64], index: 7, kind: input, shape index: {}]   ;;  %s4020_s8 = inlined_call_operand.vmem [shape: f32[2,2,64], index: 8, kind: output, shape index: {0}]   ;;  %s4021_s9 = inlined_call_operand.vmem [shape: f32[2,50,64], index: 9, kind: output, shape index: {1}]  }
   0x1   :  { %4027 = sst [smem:[#allocation10_spill]] %s4013_s1 }
   0x2   :  { %4028 = sst [smem:[#allocation11_spill]] %s4014_s2 }
   0x3   :  { %4029 = sst [smem:[#allocation12_spill]] %s4015_s3 }
   0x4   :  { %15 = vsyncpa [#allocation5], 0 }
   0x5   :  { %17 = vsyncpa [#allocation5 + $0x1], 0  ;;  %s3043_s30 = smov 0   ;;  %s3045_s10 = smov 0  }
   0x6   :  { %s3047_s11 = smov 0   ;;  %s3049_s12 = smov 0  }
   0x7   :  { %s3051_s13 = smov 0   ;;  %s3053_s14 = smov 0  }
   0x8   :  { %s3055_s15 = smov 0   ;;  %s3057_s16 = smov 0  }
   0x9 LB: > { %4030 = sst [smem:[#allocation7_spill]] %s2974_s14  ;;  %s2279_s17 = sadd.s32 4294967295, %s2982_s16   ;;  %s2982_s16 = sphi %s3057_s16, %s23_s16   ;;  %s2978_s15 = sphi %s3055_s15, %s4045_s15   ;;  %s2974_s14 = sphi %s3053_s14, %s4039_s14   ;;  %s2970_s13 = sphi %s3051_s13, %s4044_s13   ;;  %s2966_s12 = sphi %s3049_s12, %s4038_s12   ;;  %s2962_s11 = sphi %s3047_s11, %s4043_s11   ;;  %s2958_s10 = sphi %s3045_s10, %s4042_s10   ;;  %s2954_s30 = sphi %s3043_s30, %s4041_s30  }
   0xa   : > { %s32_s18 = sadd.s32 1, %s2974_s14  ;;  %s35_s19 = sadd.s32 1, %s2978_s15 }
   0xb   : > { %p33_p0 = scmp.ge.s32.totalorder %s32_s18, 3  ;;  %s128_s20 = sadd.s32 1, %s2962_s11 }
   0xc   : > { %p135_p1 = scmp.ne.s32.totalorder %s2962_s11, %s2958_s10  ;;  %p136_p2 = scmp.eq.s32.totalorder %s2982_s16, 0 }
   0xd   : > { %s4047_s18 = smov (%p33_p0, %s32_s18), 0  ;;  %s4049_s19 = smov (!%p33_p0, %s35_s19), %s2978_s15 }
   0xe   : > { %4031 = sst [smem:[#allocation8_spill]] %s4047_s18  ;;  %s124_s21 = ssub.s32 %s2974_s14, %s4047_s18 }
   0xf   : > { %p37_p3 = scmp.ge.s32.totalorder %s4049_s19, 2  ;;  %p141_p4 = scmp.ne.s32.totalorder %s2958_s10, %s2954_s30 }
  0x10   : > { %p137_p5 = por %p136_p2, %p135_p1  ;;  %p142_p6 = scmp.eq.s32.totalorder %s2279_s17, 0 }
  0x11   : > { %s4051_s19 = smov (%p37_p3, %s4049_s19), 0  ;;  %p2813_p8 = scmp.lt.s32.totalorder %s2982_s16, 6 }
  0x12   : > { %4032 = sst [smem:[#allocation9_spill]] %s4051_s19  ;;  %p3096_p7 = por %p142_p6, %p141_p4 }
  0x13   : > { %s123_s23 = ssub.s32 %s2978_s15, %s4051_s19  ;;  %s313_s25 = sand.u32 1, %s2962_s11  }
  0x14   : > { %s125_s24 = sor.u32 %s124_s21, %s123_s23  ;;  %s2801_s26 = smul.u32 288, %s313_s25 }
  0x15   : > { %p126_p9 = scmp.eq.s32.totalorder %s125_s24, 0  ;;  %p3104_p10 = pnand %p2813_p8, %p137_p5 }
  0x16   : > { %s2802_s29 = smul.u32 72, %s2974_s14  ;;  %s317_s17 = scalar_lea.vmem [#allocation4], %s2801_s26 }
  0x17   : > { %s3109_s28 = scalar_select %p126_p9, %s2962_s11, %s128_s20  }
  0x18   : > { %s2803_s30 = smul.u32 216, %s2978_s15  ;;  %s326_s18 = sshll.u32 %s317_s17, 4  ;;  %s327_s18 = int_to_ptr.vmem [resolvable:$true] %s326_s18 }
  0x19   : > { %p2284_p11 = scmp.ge.s32.totalorder %s2982_s16, 1  ;;  %s314_s23 = scalar_lea.sflag [#allocation5], %s313_s25 }
  0x1a   : > { %s323_s3 = sadd.s32 %s2803_s30, %s2802_s29  ;;  %p2890_p12 = pneg %p3104_p10 }
  0x1b   : > { %s2283_s19 = sshll.u32 %s323_s3, 6  ;;  %s2901_s24 = scalar_lea.vmem %s327_s18, 4608 }
  0x1c   : > { %s325_s21 = scalar_lea.hbm %s4016_s4, %s2283_s19  ;;  %p2902_p13 = scmp.ne.s32.totalorder %s327_s18, %s2901_s24 }
  0x1d   : > { %s2984_s20 = smov [#allocation4]  }
  0x1e   : > { %p2904_p0 = pnand %p2902_p13, %p2890_p12  ;;  %s2906_s14 = sshll.u32 %s2984_s20, 4  ;;  %s2907_s14 = int_to_ptr.vmem [resolvable:$false] %s2906_s14 }
  0x1f   : > { %s2908_s26 = scalar_lea.vmem %s2907_s14, 9216  ;;  %p2909_p2 = scmp.lt.s32.totalorder %s327_s18, %s2907_s14 }
  0x20   : > { %p2905_p1 = pneg %p2904_p0  ;;  %p2910_p3 = scmp.lt.s32.totalorder %s2908_s26, %s2901_s24 }
  0x22   : > { %p2911_p4 = por %p2910_p3, %p2909_p2 }
  0x24   : > { %p2912_p5 = pnand %p2911_p4, %p2905_p1 }
  0x26   : > { %2915 = shalt.err (!%p2912_p5)
}
  0x27   : > { %s2985_s3 = smov 64   ;;  %s2986_s1 = smov 4  }
  0x28   : > { %2812 = dma.hbm_to_vmem [thread:$0]  (!%p3104_p10), %s325_s21, 4608, %s327_s18, %s314_s23, %s2985_s3, %s2985_s3, %s2986_s1  }
  0x29   : > { %p364_p6 = scmp.lt.s32.totalorder %s2982_s16, 7 }
  0x2b   : > { %p365_p8 = pnand %p2284_p11, %p364_p6 }
  0x2c   : > { %s370_s2 = sand.u32 (!%p365_p8), 1, %s2958_s10  }
  0x2d   : > { %368 = sbr.rel (%p365_p8) target bundleno = 856 (0x358), region = 52  ;;  %s371_s14 = scalar_lea.sflag (!%p365_p8), [#allocation5], %s370_s2 }
  0x2e   : > { %s2804_s19 = smul.u32 (!%p365_p8), 288, %s370_s2 }
  0x30   : > { %s3125_s25 = scalar_lea.vmem (!%p365_p8), [#allocation4], %s2804_s19 }
  0x32   : > { %2949 = dma.done.wait (%p3096_p7), %s371_s14, 4608  }
  0x33   : > { %2951 = vsyncadd (%p3096_p7), %s371_s14, 4294962688  ;;  %p434_p9 = scmp.lt.s32.totalorder %s2970_s13, 1  ;;  %p436_p10 = scmp.lt.s32.totalorder %s2966_s12, 2 }
  0x34   : > { %p2287_p7 = scmp.ne.s32.totalorder %s2966_s12, 0 }
  0x35   : > { %s4053_s13 = smov (!%p434_p9, %s2970_s13), 1  ;;  %s4035_s3 = sld [smem:[#allocation10_spill]] (!%p2287_p7) }
  0x36   : > { %s437_s18 = scalar_select %p436_p10, %s2966_s12, 2 }
  0x37   : > { %s2805_s27 = smul.u32 3, %s4053_s13  ;;  %s2285_s29 = sshll.u32 %s4053_s13, 1 }
  0x38   : > { %s3138_s21 = scalar_lea.vmem %s4020_s8, %s2285_s29  ;;  %s2806_s23 = smul.u32 56, %s4053_s13 }
  0x39   : > { %s3140_s24 = sadd.s32 %s2805_s27, %s437_s18  ;;  %467 = sbr.rel (%p2287_p7) target bundleno = 293 (0x125), region = 60 }
  0x3a   : > { %s440_s26 = scalar_lea.vmem %s4017_s5, %s3140_s24  ;;  %s447_s2 = scalar_lea.vmem %s4018_s6, %s3140_s24 }
  0x3b   : > { %s454_s30 = scalar_lea.vmem %s4019_s7, %s3140_s24  ;;  %s3157_s13 = scalar_lea.vmem %s4021_s9, %s2806_s23 }
  0x3c   : > { %s4036_s14 = sld [smem:[#allocation11_spill]] (!%p2287_p7) }
  0x3e   : > { %v3163_v0 = vld [vmem:[%s4012_s0 + $0x30] sm:$0x3]  ;;  %vm480_vm0 = vcmask 1041408   ;;  %v2987_v1 = vmov 0.0   ;;  %v3169_v2 = vld [vmem:[%s4012_s0 + $0x28] sm:$0xff]  ;;  %v3180_v3 = vld [vmem:[%s4012_s0 + $0x20] sm:$0xff] }
  0x3f   : > { %2771 = vmatprep.subr.mxu1 %v2987_v1  ;;  %2682 = vmatprep.subr.mxu0 %v2987_v1  ;;  %v3189_v4 = vld [vmem:[%s4012_s0 + $0x18] sm:$0xff]  ;;  %v3198_v5 = vld [vmem:[%s4012_s0 + $0x10] sm:$0xff]  ;;  %v469_v6 = vld [vmem:[%s4012_s0 + $0x8] sm:$0xff]  ;;  %vm2988_vm1 = vmmov 0   ;;  %vm476_vm2 = vcmask 408576   ;;  %vm691_vm3 = vcmask 523264  }
  0x40   : > { %2778 = vmatpush3.msk.msra.mxu1 %vm480_vm0, %v3163_v0  ;;  %2683 = vmatpush3.msk.msra.mxu0 %vm480_vm0, %v3163_v0  ;;  %v3214_v7 = vld [vmem:[%s4012_s0] sm:$0xff]  ;;  %v557_v8 = vld [vmem:[%s4035_s3 + $0x8] sm:$0xff]  ;;  %v558_v10 = vld [vmem:[%s4035_s3 + $0x10] sm:$0xff]  ;;  %vm554_vm4 = vcmask 517120  }
  0x41   : > { %2772 = vmatprep.subr.mxu1 %v2987_v1  ;;  %2684 = vmatprep.subr.mxu0 %v2987_v1  ;;  %v559_v11 = vld [vmem:[%s4035_s3 + $0x18] sm:$0xff]  ;;  %v560_v12 = vld [vmem:[%s4035_s3 + $0x20] sm:$0xff]  ;;  %v561_v13 = vld [vmem:[%s4035_s3 + $0x28] sm:$0xff] }
  0x42   : > { %2779 = vmatpush3.msra.mxu1 %v3169_v2  ;;  %2685 = vmatpush3.msra.mxu0 %v3169_v2  ;;  %v475_v9 = vld [vmem:[%s4036_s14] sm:$0x3]  ;;  %v562_v15 = vld [vmem:[%s4035_s3 + $0x30] sm:$0x3] }
  0x43   : > { %2773 = vmatprep.subr.mxu1 %v2987_v1  ;;  %2686 = vmatprep.subr.mxu0 %v2987_v1  ;;  %v556_v14 = vld [vmem:[%s4035_s3] sm:$0xff] }
  0x44   : > { %2780 = vmatpush3.msra.mxu1 %v3180_v3  ;;  %2687 = vmatpush3.msra.mxu0 %v3180_v3 }
  0x45   : > { %2774 = vmatprep.subr.mxu1 %v2987_v1  ;;  %2688 = vmatprep.subr.mxu0 %v2987_v1 }
  0x46   : > { %2781 = vmatpush3.msra.mxu1 %v3189_v4  ;;  %2689 = vmatpush3.msra.mxu0 %v3189_v4 }
  0x47   : > { %2775 = vmatprep.subr.mxu1 %v2987_v1  ;;  %2690 = vmatprep.subr.mxu0 %v2987_v1 }
  0x48   : > { %2782 = vmatpush3.msra.mxu1 %v3198_v5  ;;  %2691 = vmatpush3.msra.mxu0 %v3198_v5 }
  0x49   : > { %2776 = vmatprep.subr.mxu1 %v2987_v1  ;;  %2716 = vmatprep.mubr.msk.f32.mxu1 %vm2988_vm1, %v2987_v1 }
  0x4a   : > { %2783 = vmatpush3.msra.mxu1 %v469_v6  ;;  %2692 = vmatprep.subr.mxu0 %v2987_v1 }
  0x4b   : > { %2777 = vmatprep.subr.mxu1 %v2987_v1  ;;  %2693 = vmatpush3.msra.mxu0 %v469_v6 }
  0x4c   : > { %2784 = vmatpush3.msra.mxu1 %v3214_v7  ;;  %2694 = vmatprep.subr.mxu0 %v2987_v1 }
  0x4d   : > { %2717 = vmatmul.mubr.msk.f32.vlgmr.msra.gmra.mxu1 %vm476_vm2, %v557_v8  ;;  %2695 = vmatpush3.msra.mxu0 %v3214_v7 }
  0x4e   : > { %2719 = vmatprep.mubr.msk.f32.mxu1 %vm2988_vm1, %v2987_v1  ;;  %2696 = vmatprep.mubr.msk.f32.mxu0 %vm2988_vm1, %v2987_v1 }
  0x4f   : > { %2699 = vmatprep.subr.mxu0 %v2987_v1  ;;  %2697 = vmatmul.mubr.msk.f32.vlgmr.msra.gmra.mxu0 %vm476_vm2, %v475_v9 }
  0x50   : > { %2700 = vmatpush3.msk.msra.mxu0 %vm480_vm0, %v3163_v0  ;;  %2713 = vmatprep.mubr.msk.f32.mxu0 %vm2988_vm1, %v2987_v1 }
  0x51   : > { %2720 = vmatmul.mubr.msk.f32.gmra.mxu1 %vm476_vm2, %v558_v10  ;;  %2701 = vmatprep.subr.mxu0 %v2987_v1 }
  0x52   : > { %2702 = vmatpush3.msra.mxu0 %v3169_v2  ;;  %2722 = vmatprep.mubr.msk.f32.mxu1 %vm2988_vm1, %v2987_v1 }
  0x53   : > { %2703 = vmatprep.subr.mxu0 %v2987_v1 }
  0x54   : > { %2704 = vmatpush3.msra.mxu0 %v3180_v3 }
  0x55   : > { %2723 = vmatmul.mubr.msk.f32.gmra.mxu1 %vm476_vm2, %v559_v11  ;;  %2705 = vmatprep.subr.mxu0 %v2987_v1 }
  0x56   : > { %2706 = vmatpush3.msra.mxu0 %v3189_v4  ;;  %2725 = vmatprep.mubr.msk.f32.mxu1 %vm2988_vm1, %v2987_v1 }
  0x57   : > { %2707 = vmatprep.subr.mxu0 %v2987_v1 }
  0x58   : > { %2708 = vmatpush3.msra.mxu0 %v3198_v5 }
  0x59   : > { %2726 = vmatmul.mubr.msk.f32.gmra.mxu1 %vm476_vm2, %v560_v12  ;;  %2709 = vmatprep.subr.mxu0 %v2987_v1 }
  0x5a   : > { %2710 = vmatpush3.msra.mxu0 %v469_v6  ;;  %2728 = vmatprep.mubr.msk.f32.mxu1 %vm2988_vm1, %v2987_v1 }
  0x5b   : > { %2711 = vmatprep.subr.mxu0 %v2987_v1 }
  0x5c   : > { %2712 = vmatpush3.msra.mxu0 %v3214_v7 }
  0x5d   : > { %2729 = vmatmul.mubr.msk.f32.gmra.mxu1 %vm476_vm2, %v561_v13  ;;  %2714 = vmatmul.mubr.msk.f32.vlgmr.msra.gmra.mxu0 %vm476_vm2, %v556_v14 }
  0x5e   : > { %2731 = vmatprep.mubr.msk.f32.mxu1 %vm2988_vm1, %v2987_v1 }
  0x61   : > { %2732 = vmatmul.mubr.msk.f32.gmra.mxu1 %vm476_vm2, %v562_v15 }
 0x10d   : > { %v655_v16 = vpop.f32.mrf.mxu1 }
 0x10e   : > { %v685_v17 = vadd.f32 %v655_v16, %v469_v6 }
 0x10f   : > { %v2718_v18 = vpop.f32.mrf.mxu1  ;;  %v550_v19 = vpop.f32.mrf.mxu0 }
 0x110   : > { %693 = vst.msk [vmem:[#allocation2 + $0x8] sm:$0xff] %vm691_vm3, %v685_v17 }
 0x111   : > { %555 = vst.msk [vmem:[%s3138_s21] sm:$0x3] %vm554_vm4, %v550_v19  ;;  %v660_v20 = vpop.f32.mrf.mxu1  ;;  %v2698_v21 = vpop.f32.mrf.mxu0 }
 0x112   : > { %v686_v22 = vadd.f32 %v660_v20, %v3198_v5 }
 0x113   : > { %v2721_v23 = vpop.f32.mrf.mxu1 }
 0x114   : > { %694 = vst.msk [vmem:[#allocation2 + $0x10] sm:$0xff] %vm691_vm3, %v686_v22 }
 0x115   : > { %v665_v24 = vpop.f32.mrf.mxu1 }
 0x116   : > { %v687_v25 = vadd.f32 %v665_v24, %v3189_v4 }
 0x117   : > { %v2724_v26 = vpop.f32.mrf.mxu1 }
 0x118   : > { %695 = vst.msk [vmem:[#allocation2 + $0x18] sm:$0xff] %vm691_vm3, %v687_v25 }
 0x119   : > { %v670_v27 = vpop.f32.mrf.mxu1 }
 0x11a   : > { %v688_v28 = vadd.f32 %v670_v27, %v3180_v3 }
 0x11b   : > { %v2727_v29 = vpop.f32.mrf.mxu1 }
 0x11c   : > { %696 = vst.msk [vmem:[#allocation2 + $0x20] sm:$0xff] %vm691_vm3, %v688_v28 }
 0x11d   : > { %v675_v30 = vpop.f32.mrf.mxu1  ;;  %v650_v31 = vpop.f32.mrf.mxu0 }
 0x11e   : > { %v689_v32 = vadd.f32 %v675_v30, %v3169_v2  ;;  %v684_v33 = vadd.f32 %v650_v31, %v3214_v7 }
 0x11f   : > { %v2730_v34 = vpop.f32.mrf.mxu1  ;;  %v2715_v35 = vpop.f32.mrf.mxu0 }
 0x120   : > { %697 = vst.msk [vmem:[#allocation2 + $0x28] sm:$0xff] %vm691_vm3, %v689_v32  ;;  %692 = vst.msk [vmem:[#allocation2] sm:$0xff] %vm691_vm3, %v684_v33 }
 0x121   : > { %v680_v36 = vpop.f32.mrf.mxu1 }
 0x122   : > { %v690_v37 = vadd.f32 %v680_v36, %v3163_v0 }
 0x123   : > { %v2733_v38 = vpop.f32.mrf.mxu1 }
 0x124   : > { %698 = vst.msk [vmem:[#allocation2 + $0x30] sm:$0x3] %vm554_vm4, %v690_v37 }
 0x125 PF: > { %s4037_s27 = sld [smem:[#allocation12_spill]]  ;;  %v2989_v41 = vmov 0   ;;  %v3396_v9 = vld [vmem:[#allocation2 + $0x8] sm:$0xff]  ;;  %v3398_v10 = vld [vmem:[#allocation2 + $0x10] sm:$0xff]  ;;  %v3400_v11 = vld [vmem:[#allocation2 + $0x18] sm:$0xff]  ;;  %vm784_vm5 = vcmask 523264  }
 0x126   : > { %2887 = vset.pattern.permute.xlu1 %v2989_v41  ;;  %2886 = vset.pattern.permute.xlu0 %v2989_v41  ;;  %v3402_v12 = vld [vmem:[#allocation2 + $0x20] sm:$0xff]  ;;  %1120 = vst.msk [vmem:[#allocation3 + $0x38] sm:$0xff] %vm784_vm5, %v3396_v9  ;;  %1121 = vst.msk [vmem:[#allocation3 + $0x60] sm:$0xff] %vm784_vm5, %v3398_v10  ;;  %vm791_vm6 = vcmask 517120   ;;  %v2518_v33 = vld [vmem:[%s3125_s25 + $0x78] sm:$0xff]   ;;  %vm713_vm7 = vcmask 1045504  }
 0x127   : > { %v3394_v8 = vld [vmem:[#allocation2] sm:$0xff]  ;;  %v3404_v13 = vld [vmem:[#allocation2 + $0x28] sm:$0xff]  ;;  %1122 = vst.msk [vmem:[#allocation3 + $0x88] sm:$0xff] %vm784_vm5, %v3400_v11  ;;  %1123 = vst.msk [vmem:[#allocation3 + $0xb0] sm:$0xff] %vm784_vm5, %v3402_v12  ;;  %v2423_v35 = vunpack.c.h.bf16 %v2518_v33  ;;  %v2422_v38 = vunpack.c.l.bf16 %v2518_v33  ;;  %vm829_vm8 = vcmask 1040384   ;;  %vm1042_vm9 = vcmask 1044480  }
 0x128   : > { %1119 = vst.msk [vmem:[#allocation3 + $0x10] sm:$0xff] %vm784_vm5, %v3394_v8  ;;  %1124 = vst.msk [vmem:[#allocation3 + $0xd8] sm:$0xff] %vm784_vm5, %v3404_v13  ;;  %v2510_v36 = vld [vmem:[%s3125_s25 + $0x38] sm:$0xff]   ;;  %v2509_v41 = vld [vmem:[%s3125_s25 + $0x30] sm:$0xff]   ;;  %vm1077_vm10 = vcmask 1042432   ;;  %vm864_vm11 = vcmask 1046528  }
 0x129   : > { %v2391_v37 = vunpack.c.h.bf16 %v2510_v36  ;;  %2561 = vmatprep.subr.mxu0 %v2423_v35  ;;  %s2990_s22 = smov 64   ;;  %vm944_vm12 = vcmask 1041408   ;;  %vm1486_vm13 = vcmask 1043456   ;;  %vm899_vm14 = vcmask 1048064   ;;  %p2357_p11 = scmp.ne.s32.totalorder %s2966_s12, 2 }
 0x12a   : > { %vm906_vm15 = vcmask 1041920   ;;  %vm2992_vm0 = vmmov 0  }
 0x12b   : > { %v2298_v39 = vld [vmem:[%s4037_s27 + $0x38] sm:$0xff]  ;;  %v2312_v40 = vld [vmem:[%s4037_s27 + $0xa8] sm:$0xff]  ;;  %v2299_v42 = vld [vmem:[%s4037_s27 + $0x40] sm:$0xff]  ;;  %2562 = vmatpush3.msra.mxu0 %v2391_v37 }
 0x12c   : > { %803 = vperm.xlu1 %2887, %v2298_v39   ;;  %1016 = vperm.xlu0 %2886, %v2312_v40   ;;  %v2313_v43 = vld [vmem:[%s4037_s27 + $0xb0] sm:$0xff]  ;;  %v2333_v44 = vld [vmem:[%s4037_s27 + $0x188] sm:$0xff]  ;;  %v2314_v45 = vld [vmem:[%s4037_s27 + $0xb8] sm:$0xff]  ;;  %v2390_v39 = vunpack.c.l.bf16 %v2510_v36 }
 0x12d   : > { %v2300_v46 = vld [vmem:[%s4037_s27 + $0x48] sm:$0xff]  ;;  %v2334_v47 = vld [vmem:[%s4037_s27 + $0x190] sm:$0xff]  ;;  %v2320_v48 = vld [vmem:[%s4037_s27 + $0x120] sm:$0xff]  ;;  %2563 = vmatprep.subr.mxu0 %v2422_v38 }
 0x12e   : > { %v2319_v49 = vld [vmem:[%s4037_s27 + $0x118] sm:$0xff]  ;;  %v2315_v51 = vld [vmem:[%s4037_s27 + $0xc0] sm:$0xff]  ;;  %v2321_v52 = vld [vmem:[%s4037_s27 + $0x128] sm:$0xff]  ;;  %2564 = vmatpush3.msra.mxu0 %v2390_v39 }
 0x12f   : > { %v2335_v50 = vld [vmem:[%s4037_s27 + $0x198] sm:$0xff]  ;;  %v2301_v53 = vld [vmem:[%s4037_s27 + $0x50] sm:$0xff]  ;;  %v2336_v54 = vld [vmem:[%s4037_s27 + $0x1a0] sm:$0xff] }
 0x130   : > { %807 = vperm.xlu1 %2887, %v2299_v42   ;;  %1020 = vperm.xlu0 %2886, %v2313_v43   ;;  %v2316_v55 = vld [vmem:[%s4037_s27 + $0xc8] sm:$0xff]  ;;  %v2322_v56 = vld [vmem:[%s4037_s27 + $0x130] sm:$0xff]  ;;  %v2302_v57 = vld [vmem:[%s4037_s27 + $0x58] sm:$0xff] }
 0x131   : > { %v2337_v58 = vld [vmem:[%s4037_s27 + $0x1a8] sm:$0xff]  ;;  %v2317_v59 = vld [vmem:[%s4037_s27 + $0xd0] sm:$0xff]  ;;  %v2323_v60 = vld [vmem:[%s4037_s27 + $0x138] sm:$0xff] }
 0x132   : > { %v2303_v61 = vld [vmem:[%s4037_s27 + $0x60] sm:$0xff]  ;;  %v2338_v62 = vld [vmem:[%s4037_s27 + $0x1b0] sm:$0xff]  ;;  %v2318_v63 = vld [vmem:[%s4037_s27 + $0xd8] sm:$0x3] }
 0x133   : > { %v2324_v0 = vld [vmem:[%s4037_s27 + $0x140] sm:$0xff]  ;;  %v2304_v1 = vld [vmem:[%s4037_s27 + $0x68] sm:$0x3]  ;;  %v2339_v3 = vld [vmem:[%s4037_s27 + $0x1b8] sm:$0x3] }
 0x134   : > { %1349 = vperm.xlu1 %2887, %v2333_v44   ;;  %1024 = vperm.xlu0 %2886, %v2314_v45   ;;  %v2325_v2 = vld [vmem:[%s4037_s27 + $0x148] sm:$0x3]  ;;  %v2306_v4 = vld [vmem:[%s4037_s27 + $0x78] sm:$0xff]  ;;  %v2305_v5 = vld [vmem:[%s4037_s27 + $0x70] sm:$0xff]  ;;  %v2387_v44 = vunpack.c.h.bf16 %v2509_v41 }
 0x135   : > { %v2326_v6 = vld [vmem:[%s4037_s27 + $0x150] sm:$0xff]  ;;  %v2307_v7 = vld [vmem:[%s4037_s27 + $0x80] sm:$0xff]  ;;  %v2327_v14 = vld [vmem:[%s4037_s27 + $0x158] sm:$0xff] }
 0x136   : > { %v735_v15 = vld [vmem:[%s4037_s27] sm:$0xff]  ;;  %v2308_v16 = vld [vmem:[%s4037_s27 + $0x88] sm:$0xff]  ;;  %v2309_v19 = vld [vmem:[%s4037_s27 + $0x90] sm:$0xff] }
 0x137   : > { %v2328_v17 = vld [vmem:[%s4037_s27 + $0x160] sm:$0xff]  ;;  %v736_v18 = vld [vmem:[%s4037_s27 + $0x8] sm:$0xff]  ;;  %v2330_v21 = vld [vmem:[%s4037_s27 + $0x170] sm:$0xff] }
 0x138   : > { %811 = vperm.xlu1 %2887, %v2300_v46   ;;  %1353 = vperm.xlu0 %2886, %v2334_v47   ;;  %v2329_v20 = vld [vmem:[%s4037_s27 + $0x168] sm:$0xff]  ;;  %v737_v22 = vld [vmem:[%s4037_s27 + $0x10] sm:$0xff]  ;;  %v2311_v23 = vld [vmem:[%s4037_s27 + $0xa0] sm:$0x3] }
 0x139   : > { %v2310_v24 = vld [vmem:[%s4037_s27 + $0x98] sm:$0xff]  ;;  %v739_v25 = vld [vmem:[%s4037_s27 + $0x20] sm:$0xff]  ;;  %v740_v27 = vld [vmem:[%s4037_s27 + $0x28] sm:$0xff] }
 0x13a   : > { %v738_v26 = vld [vmem:[%s4037_s27 + $0x18] sm:$0xff]  ;;  %v3460_v28 = vld [vmem:[#allocation2 + $0x30] sm:$0x3]  ;;  %v2341_v30 = vld [vmem:[%s4037_s27 + $0x1c8] sm:$0xff] }
 0x13b   : > { %1125 = vst.msk [vmem:[#allocation3 + $0x100] sm:$0x3] %vm791_vm6, %v3460_v28  ;;  %v2331_v29 = vld [vmem:[%s4037_s27 + $0x178] sm:$0xff]  ;;  %v2332_v31 = vld [vmem:[%s4037_s27 + $0x180] sm:$0x3]  ;;  %v2534_v46 = vld [vmem:[%s3125_s25 + $0xf8] sm:$0xff]  }
 0x13c   : > { %1140 = vperm.xlu1 %2887, %v2320_v48   ;;  %1136 = vperm.xlu0 %2886, %v2319_v49   ;;  %v2340_v32 = vld [vmem:[%s4037_s27 + $0x1c0] sm:$0xff]  ;;  %v741_v34 = vld [vmem:[%s4037_s27 + $0x30] sm:$0x3]  ;;  %v2516_v42 = vld [vmem:[%s3125_s25 + $0x68] sm:$0xff]   ;;  %v2386_v49 = vunpack.c.l.bf16 %v2509_v41 }
 0x13d   : > { %v2517_v40 = vld [vmem:[%s3125_s25 + $0x70] sm:$0xff]   ;;  %v2508_v47 = vld [vmem:[%s3125_s25 + $0x28] sm:$0xff]   ;;  %v2526_v48 = vld [vmem:[%s3125_s25 + $0xb8] sm:$0xff]  }
 0x13e   : > { %v2419_v43 = vunpack.c.h.bf16 %v2517_v40  ;;  %v2418_v45 = vunpack.c.l.bf16 %v2517_v40  ;;  %v715_v40 = vrot.slane %v3396_v9, 2  ;;  %v2530_v41 = vld [vmem:[%s3125_s25 + $0xd8] sm:$0xff]  }
 0x140   : > { %1357 = vperm.xlu1 %2887, %v2335_v50   ;;  %1028 = vperm.xlu0 %2886, %v2315_v51   ;;  %v2486_v50 = vunpack.c.l.bf16 %v2534_v46  ;;  %v2487_v51 = vunpack.c.h.bf16 %v2534_v46  ;;  %v2504_v46 = vld [vmem:[%s3125_s25 + $0x8] sm:$0xff]  }
 0x141   : > { %2565 = vmatprep.subr.mxu0 %v2419_v43  ;;  %v717_v43 = vrot.slane %v3398_v10, 2  ;;  %v2367_v9 = vunpack.c.h.bf16 %v2504_v46 }
 0x142   : > { %2566 = vmatpush3.msra.mxu0 %v2387_v44  ;;  %2614 = vmatprep.subr.mxu1 %v2487_v51 }
 0x143   : > { %2567 = vmatprep.subr.mxu0 %v2418_v45  ;;  %v2471_v45 = vunpack.c.h.bf16 %v2530_v41 }
 0x144   : > { %1144 = vperm.xlu1 %2887, %v2321_v52   ;;  %815 = vperm.xlu0 %2886, %v2301_v53   ;;  %v2533_v52 = vld [vmem:[%s3125_s25 + $0xf0] sm:$0xff]   ;;  %v2415_v53 = vunpack.c.h.bf16 %v2516_v42 }
 0x145   : > { %2568 = vmatpush3.msra.mxu0 %v2386_v49 }
 0x146   : > { %2569 = vmatprep.subr.mxu0 %v2415_v53  ;;  %v2470_v53 = vunpack.c.l.bf16 %v2530_v41 }
 0x148   : > { %1361 = vperm.xlu1 %2887, %v2336_v54   ;;  %1032 = vperm.xlu0 %2886, %v2316_v55   ;;  %v2454_v54 = vunpack.c.l.bf16 %v2526_v48  ;;  %v2455_v55 = vunpack.c.h.bf16 %v2526_v48 }
 0x14a   : > { %2615 = vmatpush3.msra.mxu1 %v2455_v55 }
 0x14b   : > { %2616 = vmatprep.subr.mxu1 %v2486_v50 }
 0x14c   : > { %1148 = vperm.xlu1 %2887, %v2322_v56   ;;  %819 = vperm.xlu0 %2886, %v2302_v57   ;;  %v2525_v56 = vld [vmem:[%s3125_s25 + $0xb0] sm:$0xff]   ;;  %v2383_v57 = vunpack.c.h.bf16 %v2508_v47 }
 0x14d   : > { %2617 = vmatpush3.msra.mxu1 %v2454_v54  ;;  %v2366_v54 = vunpack.c.l.bf16 %v2504_v46 }
 0x14e   : > { %2570 = vmatpush3.msra.mxu0 %v2383_v57 }
 0x150   : > { %1365 = vperm.xlu1 %2887, %v2337_v58   ;;  %1036 = vperm.xlu0 %2886, %v2317_v59   ;;  %v2515_v58 = vld [vmem:[%s3125_s25 + $0x60] sm:$0xff]   ;;  %v2483_v59 = vunpack.c.h.bf16 %v2533_v52 }
 0x152   : > { %2618 = vmatprep.subr.mxu1 %v2483_v59 }
 0x154   : > { %1152 = vperm.xlu1 %2887, %v2323_v60   ;;  %823 = vperm.xlu0 %2886, %v2303_v61   ;;  %v2414_v60 = vunpack.c.l.bf16 %v2516_v42  ;;  %v2507_v61 = vld [vmem:[%s3125_s25 + $0x20] sm:$0xff]  }
 0x156   : > { %2571 = vmatprep.subr.mxu0 %v2414_v60  ;;  %v2511_v60 = vld [vmem:[%s3125_s25 + $0x40] sm:$0xff]  }
 0x158   : > { %1369 = vperm.xlu1 %2887, %v2338_v62   ;;  %1040 = vperm.xlu0 %2886, %v2318_v63   ;;  %v2451_v62 = vunpack.c.h.bf16 %v2525_v56  ;;  %v2532_v63 = vld [vmem:[%s3125_s25 + $0xe8] sm:$0xff]  }
 0x15a   : > { %2619 = vmatpush3.msra.mxu1 %v2451_v62 }
 0x15c   : > { %1156 = vperm.xlu1 %2887, %v2324_v0   ;;  %827 = vperm.xlu0 %2886, %v2304_v1   ;;  %v2382_v0 = vunpack.c.l.bf16 %v2508_v47  ;;  %v2482_v1 = vunpack.c.l.bf16 %v2533_v52  ;;  %v2522_v47 = vld [vmem:[%s3125_s25 + $0x98] sm:$0xff]  }
 0x15d   : > { %v2439_v49 = vunpack.c.h.bf16 %v2522_v47  ;;  %v2438_v55 = vunpack.c.l.bf16 %v2522_v47  ;;  %v2519_v47 = vld [vmem:[%s3125_s25 + $0x80] sm:$0xff]  }
 0x15e   : > { %2572 = vmatpush3.msra.mxu0 %v2382_v0  ;;  %2620 = vmatprep.subr.mxu1 %v2482_v1  ;;  %v2395_v0 = vunpack.c.h.bf16 %v2511_v60 }
 0x160   : > { %1160 = vperm.xlu1 %2887, %v2325_v2   ;;  %1373 = vperm.xlu0 %2886, %v2339_v3   ;;  %v2524_v2 = vld [vmem:[%s3125_s25 + $0xa8] sm:$0xff]   ;;  %v2411_v3 = vunpack.c.h.bf16 %v2515_v58 }
 0x162   : > { %2573 = vmatprep.subr.mxu0 %v2411_v3  ;;  %v2521_v3 = vld [vmem:[%s3125_s25 + $0x90] sm:$0xff]  }
 0x164   : > { %922 = vperm.xlu1 %2887, %v2306_v4   ;;  %918 = vperm.xlu0 %2886, %v2305_v5   ;;  %v2450_v4 = vunpack.c.l.bf16 %v2525_v56  ;;  %v2379_v5 = vunpack.c.h.bf16 %v2507_v61 }
 0x166   : > { %2621 = vmatpush3.msra.mxu1 %v2450_v4  ;;  %2574 = vmatpush3.msra.mxu0 %v2379_v5 }
 0x168   : > { %1252 = vperm.xlu1 %2887, %v2326_v6   ;;  %926 = vperm.xlu0 %2886, %v2307_v7   ;;  %v2514_v6 = vld [vmem:[%s3125_s25 + $0x58] sm:$0xff]   ;;  %v2479_v7 = vunpack.c.h.bf16 %v2532_v63 }
 0x16a   : > { %2622 = vmatprep.subr.mxu1 %v2479_v7  ;;  %v2435_v7 = vunpack.c.h.bf16 %v2521_v3 }
 0x16c   : > { %1256 = vperm.xlu0 %2886, %v2327_v14   ;;  %744 = vperm.xlu1 %2887, %v735_v15   ;;  %v2410_v14 = vunpack.c.l.bf16 %v2515_v58  ;;  %v2506_v15 = vld [vmem:[%s3125_s25 + $0x18] sm:$0xff]  }
 0x16e   : > { %2575 = vmatprep.subr.mxu0 %v2410_v14 }
 0x170   : > { %930 = vperm.xlu0 %2886, %v2308_v16   ;;  %1260 = vperm.xlu1 %2887, %v2328_v17   ;;  %v2447_v16 = vunpack.c.h.bf16 %v2524_v2  ;;  %v2378_v17 = vunpack.c.l.bf16 %v2507_v61  ;;  %v2529_v61 = vld [vmem:[%s3125_s25 + $0xd0] sm:$0xff]  }
 0x171   : > { %v2467_v1 = vunpack.c.h.bf16 %v2529_v61 }
 0x172   : > { %2623 = vmatpush3.msra.mxu1 %v2447_v16  ;;  %2576 = vmatpush3.msra.mxu0 %v2378_v17 }
 0x174   : > { %749 = vperm.xlu0 %2886, %v736_v18   ;;  %934 = vperm.xlu1 %2887, %v2309_v19   ;;  %v2478_v18 = vunpack.c.l.bf16 %v2532_v63  ;;  %v2407_v19 = vunpack.c.h.bf16 %v2514_v6  ;;  %v3524_v63 = vsel %vm713_vm7, %v715_v40, %v717_v43 }
 0x176   : > { %2624 = vmatprep.subr.mxu1 %v2478_v18  ;;  %2577 = vmatprep.subr.mxu0 %v2407_v19  ;;  %v2394_v18 = vunpack.c.l.bf16 %v2511_v60  ;;  %v2466_v19 = vunpack.c.l.bf16 %v2529_v61  ;;  %v719_v61 = vrot.slane %v3400_v11, 2 }
 0x178   : > { %1264 = vperm.xlu0 %2886, %v2329_v20   ;;  %1268 = vperm.xlu1 %2887, %v2330_v21   ;;  %v2446_v20 = vunpack.c.l.bf16 %v2524_v2  ;;  %v2375_v21 = vunpack.c.h.bf16 %v2506_v15  ;;  %v2361_v2 = vld [vmem:[%s3125_s25] sm:$0xff]   ;;  %v3585_v11 = vsel %vm713_vm7, %v717_v43, %v719_v61 }
 0x17a   : > { %2625 = vmatpush3.msra.mxu1 %v2446_v20  ;;  %2578 = vmatpush3.msra.mxu0 %v2375_v21 }
 0x17c   : > { %754 = vperm.xlu0 %2886, %v737_v22   ;;  %942 = vperm.xlu1 %2887, %v2311_v23   ;;  %v2406_v22 = vunpack.c.l.bf16 %v2514_v6  ;;  %v2374_v23 = vunpack.c.l.bf16 %v2506_v15  ;;  %v2363_v6 = vunpack.c.h.bf16 %v2361_v2 }
 0x17e   : > { %2579 = vmatprep.subr.mxu0 %v2406_v22  ;;  %v2362_v22 = vunpack.c.l.bf16 %v2361_v2 }
 0x17f   : > { %2580 = vmatpush3.msra.mxu0 %v2374_v23  ;;  %v2434_v23 = vunpack.c.l.bf16 %v2521_v3 }
 0x180   : > { %938 = vperm.xlu0 %2886, %v2310_v24   ;;  %764 = vperm.xlu1 %2887, %v739_v25   ;;  %v2513_v24 = vld [vmem:[%s3125_s25 + $0x50] sm:$0xff]   ;;  %v2531_v25 = vld [vmem:[%s3125_s25 + $0xe0] sm:$0xff]  }
 0x181   : > { %v2402_v36 = vunpack.c.l.bf16 %v2513_v24  ;;  %v2474_v37 = vunpack.c.l.bf16 %v2531_v25 }
 0x184   : > { %759 = vperm.xlu0 %2886, %v738_v26   ;;  %769 = vperm.xlu1 %2887, %v740_v27   ;;  %v2403_v26 = vunpack.c.h.bf16 %v2513_v24  ;;  %v2475_v27 = vunpack.c.h.bf16 %v2531_v25  ;;  %v2528_v24 = vld [vmem:[%s3125_s25 + $0xc8] sm:$0xff]  }
 0x186   : > { %2581 = vmatprep.subr.mxu0 %v2403_v26  ;;  %2626 = vmatprep.subr.mxu1 %v2475_v27 }
 0x188   : > { %1272 = vperm.xlu0 %2886, %v2331_v29   ;;  %1464 = vperm.xlu1 %2887, %v2341_v30   ;;  %v2505_v29 = vld [vmem:[%s3125_s25 + $0x10] sm:$0xff]   ;;  %v2523_v30 = vld [vmem:[%s3125_s25 + $0xa0] sm:$0xff]  }
 0x189   : > { %v2443_v33 = vunpack.c.h.bf16 %v2523_v30  ;;  %v2370_v38 = vunpack.c.l.bf16 %v2505_v29  ;;  %v2442_v39 = vunpack.c.l.bf16 %v2523_v30  ;;  %v2520_v30 = vld [vmem:[%s3125_s25 + $0x88] sm:$0xff]  }
 0x18a   : > { %v2430_v41 = vunpack.c.l.bf16 %v2520_v30 }
 0x18b   : > { %2627 = vmatpush3.msra.mxu1 %v2443_v33  ;;  %v2431_v33 = vunpack.c.h.bf16 %v2520_v30 }
 0x18c   : > { %1276 = vperm.xlu0 %2886, %v2332_v31   ;;  %v714_v31 = vrot.slane %v3394_v8, 2  ;;  %v2512_v8 = vld [vmem:[%s3125_s25 + $0x48] sm:$0xff]   ;;  %2628 = vmatprep.subr.mxu1 %v2474_v37 }
 0x18d   : > { %v2399_v44 = vunpack.c.h.bf16 %v2512_v8  ;;  %2629 = vmatpush3.msra.mxu1 %v2442_v39  ;;  %v2398_v52 = vunpack.c.l.bf16 %v2512_v8 }
 0x18e   : > { %v3509_v48 = vsel %vm713_vm7, 0.0, %v714_v31  ;;  %2630 = vmatprep.subr.mxu1 %v2471_v45  ;;  %v3514_v56 = vsel %vm713_vm7, %v714_v31, %v715_v40 }
 0x18f   : > { %2631 = vmatpush3.msra.mxu1 %v2439_v49 }
 0x190   : > { %1460 = vperm.xlu0 %2886, %v2340_v32   ;;  %v2371_v32 = vunpack.c.h.bf16 %v2505_v29  ;;  %2632 = vmatprep.subr.mxu1 %v2470_v53  ;;  %v2463_v29 = vunpack.c.h.bf16 %v2528_v24 }
 0x191   : > { %2633 = vmatpush3.msra.mxu1 %v2438_v55 }
 0x192   : > { %2582 = vmatpush3.msra.mxu0 %v2371_v32  ;;  %2634 = vmatprep.subr.mxu1 %v2467_v1 }
 0x193   : > { %2583 = vmatprep.subr.mxu0 %v2402_v36  ;;  %2635 = vmatpush3.msra.mxu1 %v2435_v7 }
 0x194   : > { %774 = vperm.xlu0 %2886, %v741_v34   ;;  %2584 = vmatpush3.msra.mxu0 %v2370_v38  ;;  %v2462_v38 = vunpack.c.l.bf16 %v2528_v24 }
 0x195   : > { %2585 = vmatprep.subr.mxu0 %v2399_v44  ;;  %2636 = vmatprep.subr.mxu1 %v2466_v19 }
 0x196   : > { %2586 = vmatpush3.msra.mxu0 %v2367_v9  ;;  %2637 = vmatpush3.msra.mxu1 %v2434_v23 }
 0x197   : > { %2587 = vmatprep.subr.mxu0 %v2398_v52  ;;  %2638 = vmatprep.subr.mxu1 %v2463_v29  ;;  %v2427_v52 = vunpack.c.h.bf16 %v2519_v47 }
 0x198   : > { %2588 = vmatpush3.msra.mxu0 %v2366_v54  ;;  %2639 = vmatpush3.msra.mxu1 %v2431_v33 }
 0x199   : > { %2589 = vmatprep.subr.mxu0 %v2395_v0  ;;  %2640 = vmatprep.subr.mxu1 %v2462_v38 }
 0x19a   : > { %2590 = vmatpush3.msra.mxu0 %v2363_v6  ;;  %2641 = vmatpush3.msra.mxu1 %v2430_v41 }
 0x19b   : > { %2591 = vmatprep.subr.mxu0 %v2394_v18 }
 0x19c   : > { %2592 = vmatpush3.msra.mxu0 %v2362_v22 }
 0x1a7   : > { %v3500_v34 = vpop.permute.xlu1 %803  ;;  %v1017_v35 = vpop.permute.xlu0 %1016 }
 0x1a8   : > { %v1043_v42 = vrot.slane %v1017_v35, 3  ;;  %v830_v57 = vrot.slane %v3500_v34, 7 }
 0x1aa   : > { %v1063_v62 = vmul.f32 %v1043_v42, %v3509_v48  ;;  %v850_v20 = vmul.f32 %v830_v57, %v3509_v48 }
 0x1ab   : > { %v3511_v50 = vpop.permute.xlu1 %807  ;;  %v1021_v51 = vpop.permute.xlu0 %1020 }
 0x1ac   : > { %v831_v58 = vrot.slane %v3511_v50, 7  ;;  %v1044_v59 = vrot.slane %v1021_v51, 3  ;;  %v1078_v25 = vrot.slane %v1063_v62, 5  ;;  %v865_v39 = vrot.slane %v850_v20, 1 }
 0x1ad   : > { %v2426_v62 = vunpack.c.l.bf16 %v2519_v47 }
 0x1ae   : > { %v832_v4 = vsel %vm829_vm8, %v830_v57, %v831_v58  ;;  %v1045_v5 = vsel %vm1042_vm9, %v1043_v42, %v1044_v59  ;;  %v2527_v42 = vld [vmem:[%s3125_s25 + $0xc0] sm:$0xff]  }
 0x1af   : > { %v3533_v14 = vmul.f32 %v832_v4, %v3514_v56  ;;  %v1064_v15 = vmul.f32 %v1045_v5, %v3514_v56  ;;  %v1350_v16 = vpop.permute.xlu1 %1349  ;;  %v3536_v17 = vpop.permute.xlu0 %1024  ;;  %v2459_v46 = vunpack.c.h.bf16 %v2527_v42 }
 0x1b0   : > { %v1046_v21 = vrot.slane %v3536_v17, 3  ;;  %v1375_v26 = vrot.slane %v1350_v16, 5  ;;  %v721_v17 = vrot.slane %v3402_v12, 2 }
 0x1b1   : > { %v1079_v27 = vrot.slane %v1064_v15, 5  ;;  %v866_v32 = vrot.slane %v3533_v14, 1  ;;  %2642 = vmatprep.subr.mxu1 %v2459_v46 }
 0x1b2   : > { %v1047_v31 = vsel %vm1042_vm9, %v1044_v59, %v1046_v21  ;;  %v1395_v44 = vmul.f32 %v1375_v26, %v3514_v56  ;;  %2643 = vmatpush3.msra.mxu1 %v2427_v52 }
 0x1b3   : > { %v3547_v34 = vmul.f32 %v1047_v31, %v3524_v63  ;;  %v3549_v35 = vpop.permute.xlu1 %811  ;;  %v1354_v36 = vpop.permute.xlu0 %1353  ;;  %v1080_v37 = vsel %vm1077_vm10, %v1078_v25, %v1079_v27  ;;  %v867_v51 = vsel %vm864_vm11, %v865_v39, %v866_v32 }
 0x1b4   : > { %v833_v40 = vrot.slane %v3549_v35, 7  ;;  %v1376_v8 = vrot.slane %v1354_v36, 5  ;;  %1091 = vrot.lane.b32.xlu1 %v1080_v37, %s2990_s22  ;;  %v1409_v0 = vrot.slane %v1395_v44, 3 }
 0x1b5   : > { %v1081_v45 = vrot.slane %v3547_v34, 5 }
 0x1b6   : > { %v834_v9 = vsel %vm829_vm8, %v831_v58, %v833_v40  ;;  %v1377_v49 = vsel %vm1077_vm10, %v1375_v26, %v1376_v8  ;;  %v2458_v58 = vunpack.c.l.bf16 %v2527_v42 }
 0x1b7   : > { %v3568_v53 = vmul.f32 %v834_v9, %v3524_v63  ;;  %v1396_v54 = vmul.f32 %v1377_v49, %v3524_v63  ;;  %v1141_v55 = vpop.permute.xlu1 %1140  ;;  %v1137_v57 = vpop.permute.xlu0 %1136  ;;  %v1082_v50 = vsel %vm1077_vm10, %v1079_v27, %v1081_v45 }
 0x1b8   : > { %v1163_v59 = vrot.slane %v1141_v55, 1  ;;  %v1162_v60 = vrot.slane %v1137_v57, 1  ;;  %1093 = vrot.lane.b32.xlu0 %v1082_v50, %s2990_s22  ;;  %878 = vrot.lane.b32.xlu1 %v867_v51, %s2990_s22 }
 0x1b9   : > { %v1410_v1 = vrot.slane %v1396_v54, 3  ;;  %2644 = vmatprep.subr.mxu1 %v2458_v58  ;;  %v868_v15 = vrot.slane %v3568_v53, 1  ;;  %v723_v54 = vrot.slane %v3404_v13, 2 }
 0x1ba   : > { %v1164_v2 = vsel %vm864_vm11, %v1162_v60, %v1163_v59  ;;  %v1183_v3 = vmul.f32 %v1162_v60, %v3509_v48  ;;  %2645 = vmatpush3.msra.mxu1 %v2426_v62 }
 0x1bb   : > { %v1184_v4 = vmul.f32 %v1164_v2, %v3514_v56  ;;  %v1358_v5 = vpop.permute.xlu1 %1357  ;;  %v1029_v6 = vpop.permute.xlu0 %1028  ;;  %v1411_v7 = vsel %vm1042_vm9, %v1409_v0, %v1410_v1  ;;  %v869_v27 = vsel %vm864_vm11, %v866_v32, %v868_v15  ;;  %v3632_v2 = vsel %vm713_vm7, %v721_v17, %v723_v54 }
 0x1bc   : > { %v1199_v16 = vrot.slane %v1183_v3, 7  ;;  %v1378_v18 = vrot.slane %v1358_v5, 5  ;;  %v1048_v19 = vrot.slane %v1029_v6, 3  ;;  %1422 = vrot.lane.b32.xlu1 %v1411_v7, %s2990_s22 }
 0x1bd   : > { %v1200_v20 = vrot.slane %v1184_v4, 7 }
 0x1be   : > { %v1379_v22 = vsel %vm1077_vm10, %v1376_v8, %v1378_v18  ;;  %v1049_v23 = vsel %vm1042_vm9, %v1046_v21, %v1048_v19  ;;  %v3612_v8 = vsel %vm713_vm7, %v719_v61, %v721_v17 }
 0x1bf   : > { %v1397_v24 = vmul.f32 %v1379_v22, %v3585_v11  ;;  %v1066_v25 = vmul.f32 %v1049_v23, %v3585_v11  ;;  %v1145_v26 = vpop.permute.xlu1 %1144  ;;  %v816_v10 = vpop.permute.xlu0 %815  ;;  %v1201_v43 = vsel %vm829_vm8, %v1199_v16, %v1200_v20 }
 0x1c0   : > { %v1165_v29 = vrot.slane %v1145_v26, 1  ;;  %v835_v30 = vrot.slane %v816_v10, 7  ;;  %1214 = vrot.lane.b32.xlu0 %v1201_v43, %s2990_s22  ;;  %880 = vrot.lane.b32.xlu1 %v869_v27, %s2990_s22 }
 0x1c1   : > { %v1412_v21 = vrot.slane %v1397_v24, 3  ;;  %v1083_v31 = vrot.slane %v1066_v25, 5  ;;  %v725_v25 = vrot.slane %v3460_v28, 2 }
 0x1c2   : > { %v1166_v33 = vsel %vm864_vm11, %v1163_v59, %v1165_v29  ;;  %v836_v36 = vsel %vm829_vm8, %v833_v40, %v835_v30 }
 0x1c3   : > { %v1185_v14 = vmul.f32 %v1166_v33, %v3524_v63  ;;  %v853_v32 = vmul.f32 %v836_v36, %v3585_v11  ;;  %v1362_v37 = vpop.permute.xlu1 %1361  ;;  %v1033_v38 = vpop.permute.xlu0 %1032  ;;  %v1413_v39 = vsel %vm1042_vm9, %v1410_v1, %v1412_v21  ;;  %v1084_v12 = vsel %vm1077_vm10, %v1081_v45, %v1083_v31 }
 0x1c4   : > { %v1380_v41 = vrot.slane %v1362_v37, 5  ;;  %v1050_v42 = vrot.slane %v1033_v38, 3  ;;  %1424 = vrot.lane.b32.xlu0 %v1413_v39, %s2990_s22  ;;  %1095 = vrot.lane.b32.xlu1 %v1084_v12, %s2990_s22  ;;  %v3656_v28 = vsel %vm713_vm7, %v723_v54, %v725_v25 }
 0x1c5   : > { %v870_v35 = vrot.slane %v853_v32, 1  ;;  %v1202_v40 = vrot.slane %v1185_v14, 7 }
 0x1c6   : > { %v1381_v44 = vsel %vm1077_vm10, %v1378_v18, %v1380_v41  ;;  %v1051_v46 = vsel %vm1042_vm9, %v1048_v19, %v1050_v42 }
 0x1c7   : > { %v1398_v47 = vmul.f32 %v1381_v44, %v3612_v8  ;;  %v1067_v34 = vmul.f32 %v1051_v46, %v3612_v8  ;;  %v1149_v45 = vpop.permute.xlu1 %1148  ;;  %v820_v9 = vpop.permute.xlu0 %819  ;;  %v871_v49 = vsel %vm864_vm11, %v868_v15, %v870_v35  ;;  %v1203_v51 = vsel %vm829_vm8, %v1200_v20, %v1202_v40 }
 0x1c8   : > { %v1167_v52 = vrot.slane %v1149_v45, 1  ;;  %v837_v53 = vrot.slane %v820_v9, 7  ;;  %882 = vrot.lane.b32.xlu0 %v871_v49, %s2990_s22  ;;  %1216 = vrot.lane.b32.xlu1 %v1203_v51, %s2990_s22 }
 0x1c9   : > { %v1414_v55 = vrot.slane %v1398_v47, 3  ;;  %v1085_v57 = vrot.slane %v1067_v34, 5 }
 0x1ca   : > { %v1168_v50 = vsel %vm864_vm11, %v1165_v29, %v1167_v52  ;;  %v838_v58 = vsel %vm829_vm8, %v835_v30, %v837_v53 }
 0x1cb   : > { %v1186_v59 = vmul.f32 %v1168_v50, %v3585_v11  ;;  %v854_v60 = vmul.f32 %v838_v58, %v3612_v8  ;;  %v1366_v61 = vpop.permute.xlu1 %1365  ;;  %v1037_v62 = vpop.permute.xlu0 %1036  ;;  %v1415_v0 = vsel %vm1042_vm9, %v1412_v21, %v1414_v55  ;;  %v1086_v1 = vsel %vm1077_vm10, %v1083_v31, %v1085_v57  ;;  %v2342_v50 = vld [vmem:[%s4037_s27 + $0x1d0] sm:$0xff] }
 0x1cc   : > { %v1382_v13 = vrot.slane %v1366_v61, 5  ;;  %v1052_v3 = vrot.slane %v1037_v62, 3  ;;  %1426 = vrot.lane.b32.xlu0 %v1415_v0, %s2990_s22  ;;  %1097 = vrot.lane.b32.xlu1 %v1086_v1, %s2990_s22 }
 0x1cd   : > { %v872_v4 = vrot.slane %v854_v60, 1  ;;  %v1204_v5 = vrot.slane %v1186_v59, 7 }
 0x1ce   : > { %v1383_v6 = vsel %vm1077_vm10, %v1380_v41, %v1382_v13  ;;  %v1053_v7 = vsel %vm1042_vm9, %v1050_v42, %v1052_v3 }
 0x1cf   : > { %v1399_v15 = vmul.f32 %v1383_v6, %v3632_v2  ;;  %v1068_v16 = vmul.f32 %v1053_v7, %v3632_v2  ;;  %v1153_v18 = vpop.permute.xlu1 %1152  ;;  %v824_v19 = vpop.permute.xlu0 %823  ;;  %v873_v20 = vsel %vm864_vm11, %v870_v35, %v872_v4  ;;  %v1205_v22 = vsel %vm829_vm8, %v1202_v40, %v1204_v5 }
 0x1d0   : > { %v1169_v23 = vrot.slane %v1153_v18, 1  ;;  %v839_v24 = vrot.slane %v824_v19, 7  ;;  %884 = vrot.lane.b32.xlu0 %v873_v20, %s2990_s22  ;;  %1218 = vrot.lane.b32.xlu1 %v1205_v22, %s2990_s22 }
 0x1d1   : > { %v1087_v26 = vrot.slane %v1068_v16, 5  ;;  %v1416_v10 = vrot.slane %v1399_v15, 3 }
 0x1d2   : > { %v1170_v43 = vsel %vm864_vm11, %v1167_v52, %v1169_v23  ;;  %v840_v27 = vsel %vm829_vm8, %v837_v53, %v839_v24 }
 0x1d3   : > { %v3648_v29 = vmul.f32 %v1170_v43, %v3612_v8  ;;  %v3651_v30 = vmul.f32 %v840_v27, %v3632_v2  ;;  %v1370_v17 = vpop.permute.xlu1 %1369  ;;  %v1041_v21 = vpop.permute.xlu0 %1040  ;;  %v1088_v31 = vsel %vm1077_vm10, %v1085_v57, %v1087_v26  ;;  %v1417_v33 = vsel %vm1042_vm9, %v1414_v55, %v1416_v10  ;;  %v2343_v57 = vld [vmem:[%s4037_s27 + $0x1d8] sm:$0xff] }
 0x1d4   : > { %v1384_v36 = vrot.slane %v1370_v17, 5  ;;  %v1054_v14 = vrot.slane %v1041_v21, 3  ;;  %1099 = vrot.lane.b32.xlu0 %v1088_v31, %s2990_s22  ;;  %1428 = vrot.lane.b32.xlu1 %v1417_v33, %s2990_s22 }
 0x1d5   : > { %v1206_v32 = vrot.slane %v3648_v29, 7  ;;  %v874_v37 = vrot.slane %v3651_v30, 1 }
 0x1d6   : > { %v1385_v38 = vsel %vm1077_vm10, %v1382_v13, %v1384_v36  ;;  %v1055_v39 = vsel %vm1042_vm9, %v1052_v3, %v1054_v14  ;;  %v2345_v13 = vld [vmem:[%s4037_s27 + $0x1e8] sm:$0xff]  ;;  %v2344_v3 = vld [vmem:[%s4037_s27 + $0x1e0] sm:$0xff] }
 0x1d7   : > { %v3665_v12 = vmul.f32 %v1385_v38, %v3656_v28  ;;  %v3668_v41 = vmul.f32 %v1055_v39, %v3656_v28  ;;  %v1157_v42 = vpop.permute.xlu1 %1156  ;;  %v828_v35 = vpop.permute.xlu0 %827  ;;  %v1207_v40 = vsel %vm829_vm8, %v1204_v5, %v1206_v32  ;;  %v875_v44 = vsel %vm864_vm11, %v872_v4, %v874_v37 }
 0x1d8   : > { %v1171_v46 = vrot.slane %v1157_v42, 1  ;;  %v841_v47 = vrot.slane %v828_v35, 7  ;;  %1220 = vrot.lane.b32.xlu0 %v1207_v40, %s2990_s22  ;;  %886 = vrot.lane.b32.xlu1 %v875_v44, %s2990_s22 }
 0x1d9   : > { %v1418_v34 = vrot.slane %v3665_v12, 3  ;;  %v1089_v45 = vrot.slane %v3668_v41, 5  ;;  %v2346_v12 = vld [vmem:[%s4037_s27 + $0x1f0] sm:$0x3] }
 0x1da   : > { %v1172_v9 = vsel %vm864_vm11, %v1169_v23, %v1171_v46  ;;  %v842_v54 = vsel %vm829_vm8, %v839_v24, %v841_v47 }
 0x1db   : > { %v3679_v49 = vpop.permute.xlu1 %1160  ;;  %v1374_v51 = vpop.permute.xlu0 %1373  ;;  %v1419_v52 = vsel %vm1042_vm9, %v1416_v10, %v1418_v34  ;;  %v1090_v53 = vsel %vm1077_vm10, %v1087_v26, %v1089_v45  ;;  %v3697_v58 = vmul.f32 %v1172_v9, %v3632_v2  ;;  %v3700_v59 = vmul.f32 %v842_v54, %v3656_v28 }
 0x1dc   : > { %v1386_v55 = vrot.slane %v1374_v51, 5  ;;  %1430 = vrot.lane.b32.xlu0 %v1419_v52, %s2990_s22  ;;  %1101 = vrot.lane.b32.xlu1 %v1090_v53, %s2990_s22  ;;  %v1173_v20 = vrot.slane %v3679_v49, 1  ;;  %v2991_v26 = vmov 0.0  }
 0x1dd   : > { %v1208_v6 = vrot.slane %v3697_v58, 7  ;;  %v876_v19 = vrot.slane %v3700_v59, 1  ;;  %2734 = vmatprep.subr.mxu0 %v2991_v26  ;;  %2785 = vmatprep.subr.mxu1 %v2991_v26 }
 0x1de   : > { %v1387_v62 = vsel %vm1077_vm10, %v1384_v36, %v1386_v55  ;;  %v1174_v36 = vsel %vm864_vm11, %v1171_v46, %v1173_v20  ;;  %v1190_v51 = vmul.f32 0.0, %v1173_v20 }
 0x1df   : > { %v923_v60 = vpop.permute.xlu1 %922  ;;  %v919_v61 = vpop.permute.xlu0 %918  ;;  %v3712_v7 = vmul.f32 0.0, %v1387_v62  ;;  %v1209_v43 = vsel %vm829_vm8, %v1206_v32, %v1208_v6  ;;  %v877_v31 = vsel %vm864_vm11, %v874_v37, %v876_v19  ;;  %v1189_v37 = vmul.f32 %v1174_v36, %v3656_v28 }
 0x1e0   : > { %v946_v0 = vrot.slane %v923_v60, 6  ;;  %v945_v1 = vrot.slane %v919_v61, 6  ;;  %1472 = vperm.xlu0 %2886, %v2343_v57   ;;  %1468 = vperm.xlu1 %2887, %v2342_v50   ;;  %v1212_v62 = vrot.slane %v1190_v51, 7 }
 0x1e1   : > { %v1420_v27 = vrot.slane %v3712_v7, 3 }
 0x1e2   : > { %v947_v4 = vsel %vm944_vm12, %v945_v1, %v946_v0  ;;  %v965_v5 = vmul.f32 %v945_v1, %v3509_v48 }
 0x1e3   : > { %v966_v15 = vmul.f32 %v947_v4, %v3514_v56  ;;  %v1253_v16 = vpop.permute.xlu1 %1252  ;;  %v927_v18 = vpop.permute.xlu0 %926 }
 0x1e4   : > { %v979_v22 = vrot.slane %v965_v5, 2  ;;  %v948_v23 = vrot.slane %v927_v18, 6  ;;  %1480 = vperm.xlu0 %2886, %v2345_v13   ;;  %1476 = vperm.xlu1 %2887, %v2344_v3   ;;  %v1278_v25 = vrot.slane %v1253_v16, 6 }
 0x1e5   : > { %v980_v24 = vrot.slane %v966_v15, 2 }
 0x1e6   : > { %v949_v10 = vsel %vm944_vm12, %v946_v0, %v948_v23  ;;  %v1298_v32 = vmul.f32 %v1278_v25, %v3514_v56 }
 0x1e7   : > { %v967_v29 = vmul.f32 %v949_v10, %v3524_v63  ;;  %v1257_v17 = vpop.permute.xlu0 %1256  ;;  %v745_v21 = vpop.permute.xlu1 %744  ;;  %v981_v33 = vsel %vm713_vm7, %v979_v22, %v980_v24 }
 0x1e8   : > { %v1279_v14 = vrot.slane %v1257_v17, 6  ;;  %v777_v38 = vmul.f32 %v745_v21, %v3509_v48  ;;  %1222 = vrot.lane.b32.xlu0 %v1209_v43, %s2990_s22  ;;  %888 = vrot.lane.b32.xlu1 %v877_v31, %s2990_s22  ;;  %999 = vst.msk [vmem:[#allocation3 + $0x8] sm:$0xff] %vm784_vm5, %v981_v33  ;;  %v1421_v48 = vsel %vm1042_vm9, %v1418_v34, %v1420_v27  ;;  %v1312_v9 = vrot.slane %v1298_v32, 2 }
 0x1e9   : > { %v982_v39 = vrot.slane %v967_v29, 2 }
 0x1ea   : > { %v1280_v30 = vsel %vm944_vm12, %v1278_v25, %v1279_v14  ;;  %785 = vst.msk [vmem:[#allocation3] sm:$0xff] %vm784_vm5, %v777_v38 }
 0x1eb   : > { %v1299_v42 = vmul.f32 %v1280_v30, %v3524_v63  ;;  %v931_v35 = vpop.permute.xlu0 %930  ;;  %v1261_v40 = vpop.permute.xlu1 %1260  ;;  %v983_v44 = vsel %vm713_vm7, %v980_v24, %v982_v39 }
 0x1ec   : > { %v950_v46 = vrot.slane %v931_v35, 6  ;;  %v1281_v47 = vrot.slane %v1261_v40, 6  ;;  %1432 = vrot.lane.b32.xlu0 %v1421_v48, %s2990_s22  ;;  %1103 = vrot.lane.b32.xlu1 %v1089_v45, %s2990_s22  ;;  %1000 = vst.msk [vmem:[#allocation3 + $0x30] sm:$0xff] %vm784_vm5, %v983_v44  ;;  %v1210_v45 = vrot.slane %v1189_v37, 7 }
 0x1ed   : > { %v1313_v49 = vrot.slane %v1299_v42, 2 }
 0x1ee   : > { %v951_v34 = vsel %vm944_vm12, %v948_v23, %v950_v46  ;;  %v1282_v52 = vsel %vm944_vm12, %v1279_v14, %v1281_v47  ;;  %v1211_v4 = vsel %vm829_vm8, %v1208_v6, %v1210_v45  ;;  %v1213_v24 = vsel %vm829_vm8, %v1210_v45, %v1212_v62 }
 0x1ef   : > { %v968_v53 = vmul.f32 %v951_v34, %v3585_v11  ;;  %v1300_v54 = vmul.f32 %v1282_v52, %v3585_v11  ;;  %v750_v55 = vpop.permute.xlu0 %749  ;;  %v935_v41 = vpop.permute.xlu1 %934  ;;  %v1314_v57 = vsel %vm713_vm7, %v1312_v9, %v1313_v49 }
 0x1f0   : > { %v778_v50 = vmul.f32 %v750_v55, %v3514_v56  ;;  %v952_v59 = vrot.slane %v935_v41, 6  ;;  %890 = vrot.lane.b32.xlu0 %v876_v19, %s2990_s22  ;;  %1484 = vperm.xlu1 %2887, %v2346_v12   ;;  %1332 = vst.msk [vmem:[#allocation3 + $0x18] sm:$0xff] %vm784_vm5, %v1314_v57 }
 0x1f1   : > { %v984_v60 = vrot.slane %v968_v53, 2  ;;  %v1315_v61 = vrot.slane %v1300_v54, 2 }
 0x1f2   : > { %786 = vst.msk [vmem:[#allocation3 + $0x28] sm:$0xff] %vm784_vm5, %v778_v50  ;;  %v953_v0 = vsel %vm944_vm12, %v950_v46, %v952_v59 }
 0x1f3   : > { %v969_v1 = vmul.f32 %v953_v0, %v3612_v8  ;;  %v1265_v13 = vpop.permute.xlu0 %1264  ;;  %v1269_v3 = vpop.permute.xlu1 %1268  ;;  %v1316_v5 = vsel %vm713_vm7, %v1313_v49, %v1315_v61  ;;  %v985_v7 = vsel %vm713_vm7, %v982_v39, %v984_v60 }
 0x1f4   : > { %v1283_v15 = vrot.slane %v1265_v13, 6  ;;  %v1285_v16 = vrot.slane %v1269_v3, 6  ;;  %1434 = vrot.lane.b32.xlu0 %v1420_v27, %s2990_s22  ;;  %1224 = vrot.lane.b32.xlu1 %v1211_v4, %s2990_s22  ;;  %1333 = vst.msk [vmem:[#allocation3 + $0x40] sm:$0xff] %vm784_vm5, %v1316_v5  ;;  %1001 = vst.msk [vmem:[#allocation3 + $0x58] sm:$0xff] %vm784_vm5, %v985_v7 }
 0x1f5   : > { %v986_v18 = vrot.slane %v969_v1, 2 }
 0x1f6   : > { %v1284_v19 = vsel %vm944_vm12, %v1281_v47, %v1283_v15  ;;  %v1286_v58 = vsel %vm944_vm12, %v1283_v15, %v1285_v16 }
 0x1f7   : > { %v1301_v6 = vmul.f32 %v1284_v19, %v3612_v8  ;;  %v1302_v20 = vmul.f32 %v1286_v58, %v3632_v2  ;;  %v755_v22 = vpop.permute.xlu0 %754  ;;  %v943_v23 = vpop.permute.xlu1 %942  ;;  %v987_v25 = vsel %vm713_vm7, %v984_v60, %v986_v18 }
 0x1f8   : > { %v779_v10 = vmul.f32 %v755_v22, %v3524_v63  ;;  %1226 = vrot.lane.b32.xlu1 %v1213_v24, %s2990_s22  ;;  %1002 = vst.msk [vmem:[#allocation3 + $0x80] sm:$0xff] %vm784_vm5, %v987_v25  ;;  %v956_v33 = vrot.slane %v943_v23, 6 }
 0x1f9   : > { %v1317_v43 = vrot.slane %v1301_v6, 2  ;;  %v1319_v27 = vrot.slane %v1302_v20, 2  ;;  %v3831_v6 = vld [vmem:[%s3125_s25 + $0x110] sm:$0xff]  }
 0x1fa   : > { %787 = vst.msk [vmem:[#allocation3 + $0x50] sm:$0xff] %vm784_vm5, %v779_v10  ;;  %v2499_v10 = vunpack.c.h.bf16 %v3831_v6 }
 0x1fb   : > { %v939_v29 = vpop.permute.xlu0 %938  ;;  %v765_v17 = vpop.permute.xlu1 %764  ;;  %v1318_v21 = vsel %vm713_vm7, %v1315_v61, %v1317_v43  ;;  %v1320_v31 = vsel %vm713_vm7, %v1317_v43, %v1319_v27 }
 0x1fc   : > { %v954_v36 = vrot.slane %v939_v29, 6  ;;  %v781_v14 = vmul.f32 %v765_v17, %v3612_v8  ;;  %1334 = vst.msk [vmem:[#allocation3 + $0x68] sm:$0xff] %vm784_vm5, %v1318_v21  ;;  %1335 = vst.msk [vmem:[#allocation3 + $0x90] sm:$0xff] %vm784_vm5, %v1320_v31  ;;  %v2498_v17 = vunpack.c.l.bf16 %v3831_v6  ;;  %v3839_v21 = vld [vmem:[%s3125_s25 + $0x108] sm:$0xff]  }
 0x1fd   : > { %v2495_v31 = vunpack.c.h.bf16 %v3839_v21 }
 0x1fe   : > { %v955_v38 = vsel %vm944_vm12, %v952_v59, %v954_v36  ;;  %v957_v32 = vsel %vm944_vm12, %v954_v36, %v956_v33  ;;  %789 = vst.msk [vmem:[#allocation3 + $0xa0] sm:$0xff] %vm784_vm5, %v781_v14 }
 0x1ff   : > { %v970_v39 = vmul.f32 %v955_v38, %v3632_v2  ;;  %v971_v30 = vmul.f32 %v957_v32, %v3656_v28  ;;  %v760_v37 = vpop.permute.xlu0 %759  ;;  %v770_v42 = vpop.permute.xlu1 %769  ;;  %v2535_v32 = vld [vmem:[%s3125_s25 + $0x100] sm:$0xff]  }
 0x200   : > { %v780_v35 = vmul.f32 %v760_v37, %v3585_v11  ;;  %v782_v40 = vmul.f32 %v770_v42, %v3632_v2 }
 0x201   : > { %v988_v48 = vrot.slane %v970_v39, 2  ;;  %v990_v44 = vrot.slane %v971_v30, 2  ;;  %v2494_v39 = vunpack.c.l.bf16 %v3839_v21 }
 0x202   : > { %788 = vst.msk [vmem:[#allocation3 + $0x78] sm:$0xff] %vm784_vm5, %v780_v35  ;;  %790 = vst.msk [vmem:[#allocation3 + $0xc8] sm:$0xff] %vm784_vm5, %v782_v40  ;;  %v2491_v40 = vunpack.c.h.bf16 %v2535_v32 }
 0x203   : > { %v1273_v46 = vpop.permute.xlu0 %1272  ;;  %1005 = vst.msk [vmem:[#allocation3 + $0xf8] sm:$0x3] %vm791_vm6, %v990_v44  ;;  %v989_v47 = vsel %vm713_vm7, %v986_v18, %v988_v48  ;;  %v991_v9 = vsel %vm713_vm7, %v988_v48, %v990_v44  ;;  %v3802_v54 = vpop.permute.xlu1 %1464  ;;  %v2490_v48 = vunpack.c.l.bf16 %v2535_v32 }
 0x204   : > { %v1287_v49 = vrot.slane %v1273_v46, 6  ;;  %1003 = vst.msk [vmem:[#allocation3 + $0xa8] sm:$0xff] %vm784_vm5, %v989_v47  ;;  %1004 = vst.msk [vmem:[#allocation3 + $0xd0] sm:$0xff] %vm784_vm5, %v991_v9  ;;  %v1488_v50 = vrot.slane %v3802_v54, 4 }
 0x206   : > { %v1288_v12 = vsel %vm944_vm12, %v1285_v16, %v1287_v49  ;;  %v2538_v16 = vld [vmem:[%s3125_s25 + $0x118] sm:$0xff]  }
 0x207   : > { %v1303_v51 = vmul.f32 %v1288_v12, %v3656_v28  ;;  %v1277_v34 = vpop.permute.xlu0 %1276  ;;  %v2503_v58 = vunpack.c.h.bf16 %v2538_v16  ;;  %v2502_v25 = vunpack.c.l.bf16 %v2538_v16 }
 0x208   : > { %v1289_v52 = vrot.slane %v1277_v34, 6 }
 0x209   : > { %v1321_v53 = vrot.slane %v1303_v51, 2 }
 0x20a   : > { %v1290_v55 = vsel %vm944_vm12, %v1287_v49, %v1289_v52 }
 0x20b   : > { %v1304_v41 = vmul.f32 0.0, %v1290_v55  ;;  %v1461_v45 = vpop.permute.xlu0 %1460  ;;  %v1322_v57 = vsel %vm713_vm7, %v1319_v27, %v1321_v53 }
 0x20c   : > { %v1487_v59 = vrot.slane %v1461_v45, 4  ;;  %1336 = vst.msk [vmem:[#allocation3 + $0xb8] sm:$0xff] %vm784_vm5, %v1322_v57 }
 0x20d   : > { %v1323_v60 = vrot.slane %v1304_v41, 2 }
 0x20e   : > { %v1489_v61 = vsel %vm1486_vm13, %v1487_v59, %v1488_v50  ;;  %v1507_v62 = vmul.f32 %v1487_v59, %v3514_v56 }
 0x20f   : > { %v3813_v0 = vmul.f32 %v1489_v61, %v3524_v63  ;;  %v775_v1 = vpop.permute.xlu0 %774  ;;  %1338 = vst.msk [vmem:[#allocation3 + $0x108] sm:$0x3] %vm791_vm6, %v1323_v60  ;;  %v1324_v13 = vsel %vm713_vm7, %v1321_v53, %v1323_v60 }
 0x210   : > { %v1521_v3 = vrot.slane %v1507_v62, 4  ;;  %v783_v4 = vmul.f32 %v775_v1, %v3656_v28  ;;  %1337 = vst.msk [vmem:[#allocation3 + $0xe0] sm:$0xff] %vm784_vm5, %v1324_v13 }
 0x211   : > { %v1522_v5 = vrot.slane %v3813_v0, 4 }
 0x212   : > { %792 = vst.msk [vmem:[#allocation3 + $0xf0] sm:$0x3] %vm791_vm6, %v783_v4 }
 0x213   : > { %v1523_v56 = vsel %vm1486_vm13, %v1521_v3, %v1522_v5 }
 0x214   : > { %1541 = vst.msk [vmem:[#allocation3 + $0x20] sm:$0xff] %vm784_vm5, %v1523_v56 }
 0x226   : > { %v1092_v63 = vpop.permute.xlu1 %1091 }
 0x227   : > { %1112 = vst.msk [vmem:[#allocation3 + $0x8] sm:$0xff] %vm899_vm14, %v1092_v63 }
 0x22a   : > { %v1094_v7 = vpop.permute.xlu0 %1093  ;;  %v879_v15 = vpop.permute.xlu1 %878 }
 0x22b   : > { %1113 = vst.msk [vmem:[#allocation3 + $0x30] sm:$0xff] %vm899_vm14, %v1094_v7  ;;  %900 = vst.msk [vmem:[#allocation3] sm:$0xff] %vm899_vm14, %v879_v15 }
 0x22e   : > { %v1423_v18 = vpop.permute.xlu1 %1422  ;;  %v1693_v19 = vld [vmem:[#allocation3 + $0x8] sm:$0xff] }
 0x22f   : > { %1443 = vst.msk [vmem:[#allocation3 + $0x18] sm:$0xff] %vm899_vm14, %v1423_v18  ;;  %1812 = vmatprep.mubr.f32.mxu0 %v1693_v19 }
 0x232   : > { %v1215_v20 = vpop.permute.xlu0 %1214  ;;  %v881_v22 = vpop.permute.xlu1 %880  ;;  %v1692_v23 = vld [vmem:[#allocation3] sm:$0xff]  ;;  %v1698_v24 = vld [vmem:[#allocation3 + $0x30] sm:$0xff] }
 0x233   : > { %1235 = vst.msk [vmem:[#allocation3 + $0x10] sm:$0xff] %vm899_vm14, %v1215_v20  ;;  %901 = vst.msk [vmem:[#allocation3 + $0x28] sm:$0xff] %vm899_vm14, %v881_v22  ;;  %1813 = vmatmul.mubr.f32.vlgmr.msra.gmra.mxu0 %v1692_v23 }
 0x234   : > { %1817 = vmatprep.mubr.f32.mxu0 %v1698_v24  ;;  %2735 = vmatpush3.msra.mxu0 %v2503_v58 }
 0x235   : > { %2736 = vmatprep.subr.mxu0 %v2991_v26 }
 0x236   : > { %v1425_v43 = vpop.permute.xlu0 %1424  ;;  %v1096_v27 = vpop.permute.xlu1 %1095  ;;  %v1695_v29 = vld [vmem:[#allocation3 + $0x18] sm:$0xff]  ;;  %2737 = vmatpush3.msra.mxu0 %v2502_v25 }
 0x237   : > { %1444 = vst.msk [vmem:[#allocation3 + $0x40] sm:$0xff] %vm899_vm14, %v1425_v43  ;;  %1114 = vst.msk [vmem:[#allocation3 + $0x58] sm:$0xff] %vm899_vm14, %v1096_v27  ;;  %1912 = vmatprep.mubr.f32.mxu1 %v1695_v29  ;;  %2738 = vmatprep.subr.mxu0 %v2991_v26 }
 0x238   : > { %2739 = vmatpush3.msra.mxu0 %v2499_v10 }
 0x239   : > { %2740 = vmatprep.subr.mxu0 %v2991_v26 }
 0x23a   : > { %v883_v33 = vpop.permute.xlu0 %882  ;;  %v1217_v36 = vpop.permute.xlu1 %1216  ;;  %v1697_v14 = vld [vmem:[#allocation3 + $0x28] sm:$0xff]  ;;  %v1694_v38 = vld [vmem:[#allocation3 + $0x10] sm:$0xff]  ;;  %2741 = vmatpush3.msra.mxu0 %v2498_v17 }
 0x23b   : > { %902 = vst.msk [vmem:[#allocation3 + $0x50] sm:$0xff] %vm899_vm14, %v883_v33  ;;  %1236 = vst.msk [vmem:[#allocation3 + $0x38] sm:$0xff] %vm899_vm14, %v1217_v36  ;;  %1818 = vmatmul.mubr.f32.gmra.mxu0 %v1697_v14  ;;  %1913 = vmatmul.mubr.f32.vlgmr.msra.gmra.mxu1 %v1694_v38 }
 0x23c   : > { %2793 = vmatpush3.msra.mxu1 %v2503_v58  ;;  %2742 = vmatprep.subr.mxu0 %v2991_v26 }
 0x23d   : > { %2786 = vmatprep.subr.mxu1 %v2991_v26  ;;  %2743 = vmatpush3.msra.mxu0 %v2495_v31 }
 0x23e   : > { %v1427_v30 = vpop.permute.xlu0 %1426  ;;  %v1098_v37 = vpop.permute.xlu1 %1097  ;;  %v1703_v42 = vld [vmem:[#allocation3 + $0x58] sm:$0xff]  ;;  %v1700_v35 = vld [vmem:[#allocation3 + $0x40] sm:$0xff]  ;;  %2794 = vmatpush3.msra.mxu1 %v2502_v25  ;;  %2744 = vmatprep.subr.mxu0 %v2991_v26 }
 0x23f   : > { %1445 = vst.msk [vmem:[#allocation3 + $0x68] sm:$0xff] %vm899_vm14, %v1427_v30  ;;  %1115 = vst.msk [vmem:[#allocation3 + $0x80] sm:$0xff] %vm899_vm14, %v1098_v37  ;;  %1822 = vmatprep.mubr.f32.mxu0 %v1703_v42  ;;  %1917 = vmatprep.mubr.f32.mxu1 %v1700_v35 }
 0x240   : > { %2787 = vmatprep.subr.mxu1 %v2991_v26  ;;  %2745 = vmatpush3.msra.mxu0 %v2494_v39 }
 0x241   : > { %2795 = vmatpush3.msra.mxu1 %v2499_v10  ;;  %2746 = vmatprep.subr.mxu0 %v2991_v26 }
 0x242   : > { %v885_v44 = vpop.permute.xlu0 %884  ;;  %v1219_v46 = vpop.permute.xlu1 %1218  ;;  %v1702_v47 = vld [vmem:[#allocation3 + $0x50] sm:$0xff]  ;;  %v1699_v9 = vld [vmem:[#allocation3 + $0x38] sm:$0xff]  ;;  %2788 = vmatprep.subr.mxu1 %v2991_v26  ;;  %2747 = vmatpush3.msra.mxu0 %v2491_v40 }
 0x243   : > { %903 = vst.msk [vmem:[#allocation3 + $0x78] sm:$0xff] %vm899_vm14, %v885_v44  ;;  %1237 = vst.msk [vmem:[#allocation3 + $0x60] sm:$0xff] %vm899_vm14, %v1219_v46  ;;  %1823 = vmatmul.mubr.f32.gmra.mxu0 %v1702_v47  ;;  %1918 = vmatmul.mubr.f32.gmra.mxu1 %v1699_v9  ;;  %v1696_v46 = vld [vmem:[#allocation3 + $0x20] sm:$0xff] }
 0x244   : > { %2796 = vmatpush3.msra.mxu1 %v2498_v17  ;;  %2748 = vmatprep.subr.mxu0 %v2991_v26 }
 0x245   : > { %2789 = vmatprep.subr.mxu1 %v2991_v26  ;;  %2749 = vmatpush3.msra.mxu0 %v2490_v48 }
 0x246   : > { %v1100_v49 = vpop.permute.xlu0 %1099  ;;  %v1429_v12 = vpop.permute.xlu1 %1428  ;;  %v1708_v51 = vld [vmem:[#allocation3 + $0x80] sm:$0xff]  ;;  %v1705_v34 = vld [vmem:[#allocation3 + $0x68] sm:$0xff]  ;;  %2797 = vmatpush3.msra.mxu1 %v2495_v31 }
 0x247   : > { %1116 = vst.msk [vmem:[#allocation3 + $0xa8] sm:$0xff] %vm899_vm14, %v1100_v49  ;;  %1446 = vst.msk [vmem:[#allocation3 + $0x90] sm:$0xff] %vm899_vm14, %v1429_v12  ;;  %1827 = vmatprep.mubr.f32.mxu0 %v1708_v51  ;;  %1922 = vmatprep.mubr.f32.mxu1 %v1705_v34 }
 0x248   : > { %2790 = vmatprep.subr.mxu1 %v2991_v26 }
 0x249   : > { %2798 = vmatpush3.msra.mxu1 %v2494_v39 }
 0x24a   : > { %v1221_v52 = vpop.permute.xlu0 %1220  ;;  %v887_v53 = vpop.permute.xlu1 %886  ;;  %v1707_v55 = vld [vmem:[#allocation3 + $0x78] sm:$0xff]  ;;  %v1704_v41 = vld [vmem:[#allocation3 + $0x60] sm:$0xff]  ;;  %2791 = vmatprep.subr.mxu1 %v2991_v26 }
 0x24b   : > { %1238 = vst.msk [vmem:[#allocation3 + $0x88] sm:$0xff] %vm899_vm14, %v1221_v52  ;;  %904 = vst.msk [vmem:[#allocation3 + $0xa0] sm:$0xff] %vm899_vm14, %v887_v53  ;;  %1828 = vmatmul.mubr.f32.gmra.mxu0 %v1707_v55  ;;  %1923 = vmatmul.mubr.f32.gmra.mxu1 %v1704_v41 }
 0x24c   : > { %2799 = vmatpush3.msra.mxu1 %v2491_v40 }
 0x24d   : > { %2792 = vmatprep.subr.mxu1 %v2991_v26 }
 0x24e   : > { %v1431_v45 = vpop.permute.xlu0 %1430  ;;  %v1102_v57 = vpop.permute.xlu1 %1101  ;;  %v1713_v59 = vld [vmem:[#allocation3 + $0xa8] sm:$0xff]  ;;  %v1710_v60 = vld [vmem:[#allocation3 + $0x90] sm:$0xff]  ;;  %2800 = vmatpush3.msra.mxu1 %v2490_v48 }
 0x24f   : > { %1447 = vst.msk [vmem:[#allocation3 + $0xb8] sm:$0xff] %vm899_vm14, %v1431_v45  ;;  %1117 = vst.msk [vmem:[#allocation3 + $0xd0] sm:$0xff] %vm899_vm14, %v1102_v57  ;;  %1832 = vmatprep.mubr.f32.mxu0 %v1713_v59  ;;  %1927 = vmatprep.mubr.f32.mxu1 %v1710_v60 }
 0x252   : > { %v1712_v61 = vld [vmem:[#allocation3 + $0xa0] sm:$0xff]  ;;  %v1709_v62 = vld [vmem:[#allocation3 + $0x88] sm:$0xff] }
 0x253   : > { %1833 = vmatmul.mubr.f32.gmra.mxu0 %v1712_v61  ;;  %1928 = vmatmul.mubr.f32.gmra.mxu1 %v1709_v62 }
 0x256   : > { %v1718_v1 = vld [vmem:[#allocation3 + $0xd0] sm:$0xff]  ;;  %v1715_v13 = vld [vmem:[#allocation3 + $0xb8] sm:$0xff] }
 0x257   : > { %1837 = vmatprep.mubr.f32.mxu0 %v1718_v1  ;;  %1932 = vmatprep.mubr.f32.mxu1 %v1715_v13 }
 0x25b   : > { %v1473_v3 = vpop.permute.xlu0 %1472  ;;  %v1469_v4 = vpop.permute.xlu1 %1468 }
 0x25c   : > { %v1492_v56 = vrot.slane %v1473_v3, 4  ;;  %v1490_v63 = vrot.slane %v1469_v4, 4 }
 0x25e   : > { %v1491_v7 = vsel %vm1486_vm13, %v1488_v50, %v1490_v63  ;;  %v1493_v15 = vsel %vm1486_vm13, %v1490_v63, %v1492_v56 }
 0x25f   : > { %v1509_v16 = vmul.f32 %v1491_v7, %v3585_v11  ;;  %v1510_v18 = vmul.f32 %v1493_v15, %v3612_v8  ;;  %v1481_v19 = vpop.permute.xlu0 %1480  ;;  %v1477_v58 = vpop.permute.xlu1 %1476 }
 0x260   : > { %v1496_v6 = vrot.slane %v1481_v19, 4  ;;  %v1494_v20 = vrot.slane %v1477_v58, 4 }
 0x261   : > { %v1524_v22 = vrot.slane %v1509_v16, 4  ;;  %v1526_v23 = vrot.slane %v1510_v18, 4 }
 0x262   : > { %v1495_v24 = vsel %vm1486_vm13, %v1492_v56, %v1494_v20  ;;  %v1497_v25 = vsel %vm1486_vm13, %v1494_v20, %v1496_v6 }
 0x263   : > { %v1525_v54 = vsel %vm1486_vm13, %v1522_v5, %v1524_v22  ;;  %v1527_v50 = vsel %vm1486_vm13, %v1524_v22, %v1526_v23  ;;  %v1511_v11 = vmul.f32 %v1495_v24, %v3632_v2  ;;  %v1512_v8 = vmul.f32 %v1497_v25, %v3656_v28  ;;  %v1223_v10 = vpop.permute.xlu0 %1222  ;;  %v889_v43 = vpop.permute.xlu1 %888 }
 0x264   : > { %1542 = vst.msk [vmem:[#allocation3 + $0x48] sm:$0xff] %vm784_vm5, %v1525_v54  ;;  %1543 = vst.msk [vmem:[#allocation3 + $0x70] sm:$0xff] %vm784_vm5, %v1527_v50 }
 0x265   : > { %1239 = vst.msk [vmem:[#allocation3 + $0xb0] sm:$0xff] %vm899_vm14, %v1223_v10  ;;  %905 = vst.msk [vmem:[#allocation3 + $0xc8] sm:$0xff] %vm899_vm14, %v889_v43  ;;  %v1528_v27 = vrot.slane %v1511_v11, 4  ;;  %v1530_v0 = vrot.slane %v1512_v8, 4  ;;  %v3929_v8 = vld [vmem:[%s440_s26] ss:$0 sm:$0xff] }
 0x267   : > { %v1529_v5 = vsel %vm1486_vm13, %v1526_v23, %v1528_v27  ;;  %v1531_v29 = vsel %vm1486_vm13, %v1528_v27, %v1530_v0  ;;  %v1433_v2 = vpop.permute.xlu0 %1432  ;;  %v1104_v17 = vpop.permute.xlu1 %1103 }
 0x268   : > { %1544 = vst.msk [vmem:[#allocation3 + $0x98] sm:$0xff] %vm784_vm5, %v1529_v5  ;;  %1545 = vst.msk [vmem:[#allocation3 + $0xc0] sm:$0xff] %vm784_vm5, %v1531_v29 }
 0x269   : > { %1448 = vst.msk [vmem:[#allocation3 + $0xe0] sm:$0xff] %vm899_vm14, %v1433_v2 }
 0x26a   : > { %1118 = vst.msk [vmem:[#allocation3 + $0xf8] sm:$0x3] %vm906_vm15, %v1104_v17 }
 0x26b   : > { %v891_v28 = vpop.permute.xlu0 %890  ;;  %v1485_v21 = vpop.permute.xlu1 %1484  ;;  %v1701_v49 = vld [vmem:[#allocation3 + $0x48] sm:$0xff]  ;;  %v1706_v12 = vld [vmem:[#allocation3 + $0x70] sm:$0xff] }
 0x26c   : > { %v1717_v31 = vld [vmem:[#allocation3 + $0xc8] sm:$0xff]  ;;  %v1714_v33 = vld [vmem:[#allocation3 + $0xb0] sm:$0xff]  ;;  %907 = vst.msk [vmem:[#allocation3 + $0xf0] sm:$0x3] %vm906_vm15, %v891_v28  ;;  %v1498_v36 = vrot.slane %v1485_v21, 4 }
 0x26d   : > { %1838 = vmatmul.mubr.f32.gmra.mxu0 %v1717_v31  ;;  %1933 = vmatmul.mubr.f32.gmra.mxu1 %v1714_v33  ;;  %v3944_v31 = vld [vmem:[%s454_s30] ss:$0 sm:$0xff] }
 0x26e   : > { %v1499_v14 = vsel %vm1486_vm13, %v1496_v6, %v1498_v36 }
 0x26f   : > { %v1513_v38 = vmul.f32 0.0, %v1499_v14  ;;  %v1435_v32 = vpop.permute.xlu0 %1434  ;;  %v1225_v39 = vpop.permute.xlu1 %1224  ;;  %v1716_v51 = vld [vmem:[#allocation3 + $0xc0] sm:$0xff]  ;;  %v1711_v34 = vld [vmem:[#allocation3 + $0x98] sm:$0xff] }
 0x270   : > { %v1720_v37 = vld [vmem:[#allocation3 + $0xe0] sm:$0xff]  ;;  %1449 = vst.msk [vmem:[#allocation3 + $0x108] sm:$0x3] %vm906_vm15, %v1435_v32 }
 0x271   : > { %v1723_v30 = vld [vmem:[#allocation3 + $0xf8] sm:$0x3]  ;;  %1240 = vst.msk [vmem:[#allocation3 + $0xd8] sm:$0xff] %vm899_vm14, %v1225_v39  ;;  %1937 = vmatprep.mubr.f32.mxu1 %v1720_v37  ;;  %v1532_v42 = vrot.slane %v1513_v38, 4 }
 0x272   : > { %1842 = vmatprep.mubr.f32.mxu0 %v1723_v30 }
 0x273   : > { %v1533_v35 = vsel %vm1486_vm13, %v1530_v0, %v1532_v42  ;;  %1547 = vst.msk [vmem:[#allocation3 + $0x110] sm:$0x3] %vm791_vm6, %v1532_v42  ;;  %v1227_v40 = vpop.permute.xlu1 %1226  ;;  %v1722_v48 = vld [vmem:[#allocation3 + $0xf0] sm:$0x3]  ;;  %v3936_v0 = vld [vmem:[%s447_s2] ss:$0 sm:$0xff] }
 0x274   : > { %1546 = vst.msk [vmem:[#allocation3 + $0xe8] sm:$0xff] %vm784_vm5, %v1533_v35  ;;  %1843 = vmatmul.mubr.f32.gmra.mxu0 %v1722_v48 }
 0x275   : > { %1241 = vst.msk [vmem:[#allocation3 + $0x100] sm:$0x3] %vm906_vm15, %v1227_v40  ;;  %2750 = vmatprep.mubr.msk.f32.mxu0 %vm2992_vm0, %v2991_v26 }
 0x277   : > { %v1725_v47 = vld [vmem:[#allocation3 + $0x108] sm:$0x3] }
 0x278   : > { %v1719_v44 = vld [vmem:[#allocation3 + $0xd8] sm:$0xff]  ;;  %2751 = vmatmul.mubr.msk.f32.vlgmr.msra.gmra.mxu0 %vm784_vm5, %v1696_v46 }
 0x279   : > { %1938 = vmatmul.mubr.f32.gmra.mxu1 %v1719_v44  ;;  %2753 = vmatprep.mubr.msk.f32.mxu0 %vm2992_vm0, %v2991_v26 }
 0x27a   : > { %1942 = vmatprep.mubr.f32.mxu1 %v1725_v47  ;;  %v1726_v53 = vld [vmem:[#allocation3 + $0x110] sm:$0x3] }
 0x27b   : > { %v1721_v52 = vld [vmem:[#allocation3 + $0xe8] sm:$0xff] }
 0x27c   : > { %v1724_v9 = vld [vmem:[#allocation3 + $0x100] sm:$0x3]  ;;  %2754 = vmatmul.mubr.msk.f32.gmra.mxu0 %vm784_vm5, %v1701_v49 }
 0x27d   : > { %1943 = vmatmul.mubr.f32.gmra.mxu1 %v1724_v9  ;;  %2756 = vmatprep.mubr.msk.f32.mxu0 %vm2992_vm0, %v2991_v26 }
 0x27e   : > { %2762 = vmatprep.mubr.msk.f32.mxu1 %vm2992_vm0, %v2991_v26 }
 0x280   : > { %2757 = vmatmul.mubr.msk.f32.gmra.mxu0 %vm784_vm5, %v1706_v12 }
 0x281   : > { %2763 = vmatmul.mubr.msk.f32.vlgmr.msra.gmra.mxu1 %vm784_vm5, %v1716_v51  ;;  %2759 = vmatprep.mubr.msk.f32.mxu0 %vm2992_vm0, %v2991_v26 }
 0x282   : > { %2765 = vmatprep.mubr.msk.f32.mxu1 %vm2992_vm0, %v2991_v26 }
 0x284   : > { %2760 = vmatmul.mubr.msk.f32.gmra.mxu0 %vm784_vm5, %v1711_v34 }
 0x285   : > { %2766 = vmatmul.mubr.msk.f32.gmra.mxu1 %vm784_vm5, %v1721_v52 }
 0x286   : > { %2768 = vmatprep.mubr.msk.f32.mxu1 %vm2992_vm0, %v2991_v26 }
 0x289   : > { %2769 = vmatmul.mubr.msk.f32.gmra.mxu1 %vm784_vm5, %v1726_v53 }
 0x2f3   : > { %v2593_v55 = vpop.f32.mrf.mxu0 }
 0x2f5   : > { %v2594_v41 = vpop.f32.mrf.mxu0 }
 0x2f6   : > { %v2595_v22 = vadd.f32 %v2594_v41, %v2593_v55 }
 0x2fb   : > { %v2596_v45 = vpop.f32.mrf.mxu0  ;;  %v2646_v57 = vpop.f32.mrf.mxu1 }
 0x2fd   : > { %v2597_v59 = vpop.f32.mrf.mxu0  ;;  %v2647_v61 = vpop.f32.mrf.mxu1 }
 0x2fe   : > { %v2648_v6 = vadd.f32 %v2647_v61, %v2646_v57  ;;  %v2598_v10 = vadd.f32 %v2597_v59, %v2596_v45 }
 0x300   : > { %v1915_v54 = vadd.f32 %v2648_v6, %v2595_v22 }
 0x303   : > { %v2599_v60 = vpop.f32.mrf.mxu0  ;;  %v2649_v62 = vpop.f32.mrf.mxu1 }
 0x305   : > { %v2600_v1 = vpop.f32.mrf.mxu0  ;;  %v2650_v3 = vpop.f32.mrf.mxu1 }
 0x306   : > { %v2651_v25 = vadd.f32 %v2650_v3, %v2649_v62  ;;  %v2601_v21 = vadd.f32 %v2600_v1, %v2599_v60 }
 0x308   : > { %v1920_v28 = vadd.f32 %v2651_v25, %v2598_v10 }
 0x30b   : > { %v2602_v13 = vpop.f32.mrf.mxu0  ;;  %v2652_v4 = vpop.f32.mrf.mxu1 }
 0x30d   : > { %v2603_v56 = vpop.f32.mrf.mxu0  ;;  %v2653_v7 = vpop.f32.mrf.mxu1 }
 0x30e   : > { %v2654_v27 = vadd.f32 %v2653_v7, %v2652_v4  ;;  %v2604_v44 = vadd.f32 %v2603_v56, %v2602_v13 }
 0x310   : > { %v1925_v42 = vadd.f32 %v2654_v27, %v2601_v21 }
 0x313   : > { %v2605_v63 = vpop.f32.mrf.mxu0  ;;  %v2655_v26 = vpop.f32.mrf.mxu1 }
 0x315   : > { %v2606_v15 = vpop.f32.mrf.mxu0  ;;  %v2656_v18 = vpop.f32.mrf.mxu1 }
 0x316   : > { %v2607_v14 = vadd.f32 %v2606_v15, %v2605_v63  ;;  %v2657_v39 = vadd.f32 %v2656_v18, %v2655_v26 }
 0x318   : > { %v1930_v45 = vadd.f32 %v2657_v39, %v2604_v44 }
 0x32d   : > { %v2608_v16 = vpop.f32.mrf.mxu0  ;;  %v2658_v19 = vpop.f32.mrf.mxu1 }
 0x32f   : > { %v2609_v58 = vpop.f32.mrf.mxu0  ;;  %v2659_v23 = vpop.f32.mrf.mxu1 }
 0x330   : > { %v2660_v2 = vadd.f32 %v2659_v23, %v2658_v19  ;;  %v2610_v52 = vadd.f32 %v2609_v58, %v2608_v16 }
 0x332   : > { %v1935_v48 = vadd.f32 %v2660_v2, %v2607_v14 }
 0x334   : > { %v2611_v20 = vpop.f32.mrf.mxu0 }
 0x336   : > { %v2612_v24 = vpop.f32.mrf.mxu0 }
 0x337   : > { %v2613_v61 = vadd.f32 %v2612_v24, %v2611_v20 }
 0x338   : > { %v2014_v11 = vpop.f32.mrf.mxu0 }
 0x339   : > { %v2661_v50 = vpop.f32.mrf.mxu1  ;;  %v2015_v43 = vadd.f32 %v2014_v11, %v1915_v54 }
 0x33a   : > { %v2752_v29 = vpop.f32.mrf.mxu0 }
 0x33b   : > { %v2662_v5 = vpop.f32.mrf.mxu1  ;;  %v2055_v17 = vmul.f32 %v3929_v8, %v2015_v43 }
 0x33c   : > { %v2019_v36 = vpop.f32.mrf.mxu0  ;;  %v2663_v46 = vadd.f32 %v2662_v5, %v2661_v50 }
 0x33d   : > { %v2664_v33 = vpop.f32.mrf.mxu1  ;;  %v2069_v38 = vadd.f32 %v3936_v0, %v2055_v17  ;;  %v2020_v32 = vadd.f32 %v2019_v36, %v1920_v28 }
 0x33e   : > { %v2755_v37 = vpop.f32.mrf.mxu0  ;;  %v1940_v1 = vadd.f32 %v2663_v46, %v2610_v52 }
 0x33f   : > { %v2665_v30 = vpop.f32.mrf.mxu1  ;;  %vm2076_vm1 = vcmp.ge.f32.partialorder %v2069_v38, 0.0  ;;  %v2090_v35 = vmul.f32 %v3944_v31, %v2069_v38  ;;  %v2056_v40 = vmul.f32 %v3929_v8, %v2020_v32 }
 0x340   : > { %v2024_v47 = vpop.f32.mrf.mxu0  ;;  %v2666_v53 = vadd.f32 %v2665_v30, %v2664_v33 }
 0x341   : > { %v2034_v9 = vpop.f32.mrf.mxu1  ;;  %v2097_v49 = vsel %vm2076_vm1, %v2069_v38, %v2090_v35  ;;  %v2070_v12 = vadd.f32 %v3936_v0, %v2056_v40  ;;  %v2025_v51 = vadd.f32 %v2024_v47, %v1925_v42 }
 0x342   : > { %v2035_v34 = vadd.f32 %v2034_v9, %v1935_v48  ;;  %2104 = vst.msk [vmem:[#allocation2] sm:$0xff] %vm784_vm5, %v2097_v49  ;;  %v2758_v55 = vpop.f32.mrf.mxu0  ;;  %v1945_v16 = vadd.f32 %v2666_v53, %v2613_v61 }
 0x343   : > { %v2764_v41 = vpop.f32.mrf.mxu1  ;;  %vm2077_vm2 = vcmp.ge.f32.partialorder %v2070_v12, 0.0  ;;  %v2091_v57 = vmul.f32 %v3944_v31, %v2070_v12  ;;  %v2057_v59 = vmul.f32 %v3929_v8, %v2025_v51 }
 0x344   : > { %v2059_v60 = vmul.f32 %v3929_v8, %v2035_v34  ;;  %v2029_v62 = vpop.f32.mrf.mxu0 }
 0x345   : > { %v2039_v13 = vpop.f32.mrf.mxu1  ;;  %v2098_v3 = vsel %vm2077_vm2, %v2070_v12, %v2091_v57  ;;  %v2071_v4 = vadd.f32 %v3936_v0, %v2057_v59  ;;  %v2030_v63 = vadd.f32 %v2029_v62, %v1930_v45 }
 0x346   : > { %v2073_v56 = vadd.f32 %v3936_v0, %v2059_v60  ;;  %2105 = vst.msk [vmem:[#allocation2 + $0x8] sm:$0xff] %vm784_vm5, %v2098_v3  ;;  %v2040_v7 = vadd.f32 %v2039_v13, %v1940_v1  ;;  %v2761_v26 = vpop.f32.mrf.mxu0 }
 0x347   : > { %v2767_v15 = vpop.f32.mrf.mxu1  ;;  %vm2078_vm3 = vcmp.ge.f32.partialorder %v2071_v4, 0.0  ;;  %v2092_v18 = vmul.f32 %v3944_v31, %v2071_v4  ;;  %v2058_v58 = vmul.f32 %v3929_v8, %v2030_v63 }
 0x348   : > { %vm2080_vm4 = vcmp.ge.f32.partialorder %v2073_v56, 0.0  ;;  %v2094_v19 = vmul.f32 %v3944_v31, %v2073_v56  ;;  %v2060_v6 = vmul.f32 %v3929_v8, %v2040_v7 }
 0x349   : > { %v2044_v20 = vpop.f32.mrf.mxu1  ;;  %v2099_v22 = vsel %vm2078_vm3, %v2071_v4, %v2092_v18  ;;  %v2072_v25 = vadd.f32 %v3936_v0, %v2058_v58 }
 0x34a   : > { %v2101_v23 = vsel %vm2080_vm4, %v2073_v56, %v2094_v19  ;;  %v2045_v24 = vadd.f32 %v2044_v20, %v1945_v16  ;;  %2106 = vst.msk [vmem:[#allocation2 + $0x10] sm:$0xff] %vm784_vm5, %v2099_v22  ;;  %v2074_v54 = vadd.f32 %v3936_v0, %v2060_v6 }
 0x34b   : > { %2108 = vst.msk [vmem:[#allocation2 + $0x20] sm:$0xff] %vm784_vm5, %v2101_v23  ;;  %v2770_v50 = vpop.f32.mrf.mxu1  ;;  %vm2079_vm7 = vcmp.ge.f32.partialorder %v2072_v25, 0.0  ;;  %v2093_v10 = vmul.f32 %v3944_v31, %v2072_v25 }
 0x34c   : > { %v2061_v11 = vmul.f32 %v3929_v8, %v2045_v24  ;;  %vm2081_vm8 = vcmp.ge.f32.partialorder %v2074_v54, 0.0  ;;  %v2095_v43 = vmul.f32 %v3944_v31, %v2074_v54 }
 0x34d   : > { %v2100_v5 = vsel %vm2079_vm7, %v2072_v25, %v2093_v10 }
 0x34e   : > { %v2075_v27 = vadd.f32 %v3936_v0, %v2061_v11  ;;  %v2102_v29 = vsel %vm2081_vm8, %v2074_v54, %v2095_v43  ;;  %2107 = vst.msk [vmem:[#allocation2 + $0x18] sm:$0xff] %vm784_vm5, %v2100_v5 }
 0x34f   : > { %2109 = vst.msk [vmem:[#allocation2 + $0x28] sm:$0xff] %vm784_vm5, %v2102_v29  ;;  %2114 = sbr.rel (%p2357_p11) target bundleno = 856 (0x358), region = 64 }
 0x350   : > { %vm2082_vm9 = vcmp.ge.f32.partialorder %v2075_v27, 0.0  ;;  %v2096_v2 = vmul.f32 %v3944_v31, %v2075_v27 }
 0x352   : > { %v2103_v17 = vsel %vm2082_vm9, %v2075_v27, %v2096_v2 }
 0x353   : > { %2110 = vst.msk [vmem:[#allocation2 + $0x30] sm:$0x3] %vm791_vm6, %v2103_v17 }
 0x354   : > { %2115 = vst.msk [vmem:[%s3157_s13] sm:$0xff] %vm784_vm5, %v2097_v49  ;;  %2116 = vst.msk [vmem:[%s3157_s13 + $0x8] sm:$0xff] %vm784_vm5, %v2098_v3 }
 0x355   : > { %2117 = vst.msk [vmem:[%s3157_s13 + $0x10] sm:$0xff] %vm784_vm5, %v2099_v22  ;;  %2118 = vst.msk [vmem:[%s3157_s13 + $0x18] sm:$0xff] %vm784_vm5, %v2100_v5 }
 0x356   : > { %2119 = vst.msk [vmem:[%s3157_s13 + $0x20] sm:$0xff] %vm784_vm5, %v2101_v23  ;;  %2120 = vst.msk [vmem:[%s3157_s13 + $0x28] sm:$0xff] %vm784_vm5, %v2102_v29 }
 0x357   : > { %2121 = vst.msk [vmem:[%s3157_s13 + $0x30] sm:$0x3] %vm791_vm6, %v2103_v17 }
 0x358 PF: > { %s23_s16 = sadd.s32 1, %s2982_s16   ;;  %s4038_s12 = sld [smem:[#allocation7_spill]] }
 0x359   : > { %p20_p12 = scmp.ge.s32.totalorder %s23_s16, 8   ;;  %s4039_s14 = sld [smem:[#allocation8_spill]] }
 0x35a   : > { %s4040_s24 = sld [smem:[#allocation9_spill]]  ;;  %s4041_s30 = smov %s2958_s10 }
 0x35b   : > { %s4042_s10 = smov %s2962_s11  ;;  %s4043_s11 = smov %s3109_s28 }
 0x35c   : > { %s4044_s13 = smov %s2978_s15  ;;  %22 = sbr.rel (!%p20_p12) target bundleno = 9 (0x9), region = 128 }
 0x360   : > { %s4045_s15 = smov %s4040_s24 }
 0x361   :  { %2157 = vsyncpa [#allocation5], 1 }
 0x362   :  { %2159 = vsyncpa [#allocation5 + $0x1], 1 }

// kernel: dwnet_forward.3
= control target key start
LH: loop header
LB: loop body
LE: loop exit
PB: predicated region body
PF: predicated region fallthrough
CT: control target
= control target key end

     0   :  { %s2162_s12 = smov 0   ;;  %s2164_s13 = smov 0   ;;  %s2343_s0 = inlined_call_operand.vmem [shape: f32[2,2,1600], index: 0, kind: input, shape index: {}]   ;;  %s2344_s1 = inlined_call_operand.vmem [shape: bf16[2,1600,128], index: 1, kind: input, shape index: {}]   ;;  %s2345_s2 = inlined_call_operand.vmem [shape: f32[2,1,128], index: 2, kind: input, shape index: {}]   ;;  %s2346_s3 = inlined_call_operand.vmem [shape: f32[2,2,128], index: 3, kind: output, shape index: {}]  }
   0x1   :  { %s2166_s14 = smov 0  }
   0x2 LB: > { %s25_s15 = sadd.s32 1, %s2133_s13  ;;  %p1337_p0 = scmp.ge.s32.totalorder %s2137_s14, 1  ;;  %s2137_s14 = sphi %s2166_s14, %s13_s14   ;;  %s2133_s13 = sphi %s2164_s13, %s2348_s13   ;;  %s2129_s12 = sphi %s2162_s12, %s2347_s12  }
   0x3   : > { %p27_p1 = scmp.ge.s32.totalorder %s25_s15, 2  ;;  %p181_p2 = scmp.lt.s32.totalorder %s2137_s14, 3 }
   0x5   : > { %s2350_s15 = smov (%p27_p1, %s25_s15), 0  ;;  %p182_p3 = pnand %p1337_p0, %p181_p2 }
   0x6   : > { %p221_p4 = scmp.lt.s32.totalorder (!%p182_p3), %s2129_s12, 1 }
   0x7   : > { %185 = sbr.rel (%p182_p3) target bundleno = 345 (0x159), region = 32 }
   0xc   : > { %v2139_v0 = vmov 0.0   ;;  %s2352_s12 = smov (!%p221_p4, %s2129_s12), 1  ;;  %v2140_v53 = vmov 1983009808   ;;  %v665_v55 = vlaneseq  ;;  %vm2141_vm0 = vmmov 0  }
   0xd   : > { %251 = vst [vmem:[#allocation2] sm:$0x3] %v2139_v0  ;;  %s2084_s16 = smul.u32 800, %s2352_s12  ;;  %v663_v54 = vunpack.c.l.s4 %v2140_v53  ;;  %vm731_vm1 = vcmask 523264   ;;  %s242_s26 = scalar_lea.vmem %s2345_s2, %s2352_s12 }
   0xe   : > { %s2083_s20 = smul.u32 26, %s2352_s12  ;;  %s1340_s27 = sshll.u32 %s2352_s12, 1 }
   0xf   : > { %s2187_s19 = scalar_lea.vmem %s2344_s1, %s2084_s16  ;;  %s246_s30 = scalar_lea.vmem %s2346_s3, %s1340_s27 }
  0x10   : > { %v1760_v1 = vld [vmem:[%s2187_s19 + $0x78] sm:$0xff]   ;;  %v1759_v9 = vld [vmem:[%s2187_s19 + $0x70] sm:$0xff]   ;;  %v1758_v21 = vld [vmem:[%s2187_s19 + $0x68] sm:$0xff]   ;;  %s2217_s23 = scalar_lea.vmem %s2343_s0, %s2083_s20 }
  0x11   : > { %v1776_v2 = vld [vmem:[%s2187_s19 + $0xf8] sm:$0xff]   ;;  %v1408_v4 = vunpack.c.l.bf16 %v1760_v1  ;;  %v1409_v5 = vunpack.c.h.bf16 %v1760_v1  ;;  %v1775_v10 = vld [vmem:[%s2187_s19 + $0xf0] sm:$0xff]   ;;  %v1405_v17 = vunpack.c.h.bf16 %v1759_v9  ;;  %v1774_v22 = vld [vmem:[%s2187_s19 + $0xe8] sm:$0xff]   ;;  %v1404_v23 = vunpack.c.l.bf16 %v1759_v9 }
  0x12   : > { %v1752_v3 = vld [vmem:[%s2187_s19 + $0x38] sm:$0xff]   ;;  %v1472_v6 = vunpack.c.l.bf16 %v1776_v2  ;;  %v1473_v7 = vunpack.c.h.bf16 %v1776_v2  ;;  %v1751_v15 = vld [vmem:[%s2187_s19 + $0x30] sm:$0xff]   ;;  %v1469_v18 = vunpack.c.h.bf16 %v1775_v10  ;;  %v1468_v24 = vunpack.c.l.bf16 %v1775_v10  ;;  %v1750_v25 = vld [vmem:[%s2187_s19 + $0x28] sm:$0xff]  }
  0x13   : > { %v1768_v8 = vld [vmem:[%s2187_s19 + $0xb8] sm:$0xff]   ;;  %v1376_v11 = vunpack.c.l.bf16 %v1752_v3  ;;  %v1377_v12 = vunpack.c.h.bf16 %v1752_v3  ;;  %v1767_v16 = vld [vmem:[%s2187_s19 + $0xb0] sm:$0xff]   ;;  %1845 = vmatprep.subr.mxu0 %v1409_v5  ;;  %v1373_v19 = vunpack.c.h.bf16 %v1751_v15  ;;  %v1766_v26 = vld [vmem:[%s2187_s19 + $0xa8] sm:$0xff]   ;;  %v1372_v27 = vunpack.c.l.bf16 %v1751_v15 }
  0x14   : > { %v1440_v13 = vunpack.c.l.bf16 %v1768_v8  ;;  %v1441_v14 = vunpack.c.h.bf16 %v1768_v8  ;;  %1880 = vmatprep.subr.mxu1 %v1473_v7  ;;  %v1437_v20 = vunpack.c.h.bf16 %v1767_v16  ;;  %v1436_v28 = vunpack.c.l.bf16 %v1767_v16  ;;  %v1757_v33 = vld [vmem:[%s2187_s19 + $0x60] sm:$0xff]   ;;  %v1756_v45 = vld [vmem:[%s2187_s19 + $0x58] sm:$0xff]   ;;  %v1755_v60 = vld [vmem:[%s2187_s19 + $0x50] sm:$0xff]  }
  0x15   : > { %1846 = vmatpush3.msra.mxu0 %v1377_v12  ;;  %v1401_v29 = vunpack.c.h.bf16 %v1758_v21  ;;  %v1465_v30 = vunpack.c.h.bf16 %v1774_v22  ;;  %v1369_v31 = vunpack.c.h.bf16 %v1750_v25  ;;  %v1433_v32 = vunpack.c.h.bf16 %v1766_v26  ;;  %v1773_v34 = vld [vmem:[%s2187_s19 + $0xe0] sm:$0xff]   ;;  %v1772_v46 = vld [vmem:[%s2187_s19 + $0xd8] sm:$0xff]   ;;  %v1771_v61 = vld [vmem:[%s2187_s19 + $0xd0] sm:$0xff]  }
  0x16   : > { %1881 = vmatpush3.msra.mxu1 %v1441_v14  ;;  %1847 = vmatprep.subr.mxu0 %v1408_v4  ;;  %v1400_v35 = vunpack.c.l.bf16 %v1758_v21  ;;  %v1464_v36 = vunpack.c.l.bf16 %v1774_v22  ;;  %v1749_v37 = vld [vmem:[%s2187_s19 + $0x20] sm:$0xff]   ;;  %v1368_v39 = vunpack.c.l.bf16 %v1750_v25  ;;  %v1432_v40 = vunpack.c.l.bf16 %v1766_v26  ;;  %v1748_v49 = vld [vmem:[%s2187_s19 + $0x18] sm:$0xff]   ;;  %v1747_v1 = vld [vmem:[%s2187_s19 + $0x10] sm:$0xff]  }
  0x17   : > { %1882 = vmatprep.subr.mxu1 %v1472_v6  ;;  %1848 = vmatpush3.msra.mxu0 %v1376_v11  ;;  %v1765_v38 = vld [vmem:[%s2187_s19 + $0xa0] sm:$0xff]   ;;  %v1397_v41 = vunpack.c.h.bf16 %v1757_v33  ;;  %v1461_v42 = vunpack.c.h.bf16 %v1773_v34  ;;  %v1365_v43 = vunpack.c.h.bf16 %v1749_v37  ;;  %v1396_v47 = vunpack.c.l.bf16 %v1757_v33  ;;  %v1764_v50 = vld [vmem:[%s2187_s19 + $0x98] sm:$0xff]   ;;  %v1763_v2 = vld [vmem:[%s2187_s19 + $0x90] sm:$0xff]  }
  0x18   : > { %1883 = vmatpush3.msra.mxu1 %v1440_v13  ;;  %1849 = vmatprep.subr.mxu0 %v1405_v17  ;;  %v1429_v44 = vunpack.c.h.bf16 %v1765_v38  ;;  %v1460_v48 = vunpack.c.l.bf16 %v1773_v34  ;;  %v1364_v51 = vunpack.c.l.bf16 %v1749_v37  ;;  %v1428_v52 = vunpack.c.l.bf16 %v1765_v38  ;;  %v1754_v11 = vld [vmem:[%s2187_s19 + $0x48] sm:$0xff]   ;;  %v253_v13 = vld [vmem:[%s2217_s23] sm:$0xff] }
  0x19   : > { %1884 = vmatprep.subr.mxu1 %v1469_v18  ;;  %1850 = vmatpush3.msra.mxu0 %v1373_v19  ;;  %v1393_v56 = vunpack.c.h.bf16 %v1756_v45  ;;  %v1457_v57 = vunpack.c.h.bf16 %v1772_v46  ;;  %v1361_v58 = vunpack.c.h.bf16 %v1748_v49  ;;  %v1425_v59 = vunpack.c.h.bf16 %v1764_v50  ;;  %v1770_v12 = vld [vmem:[%s2187_s19 + $0xc8] sm:$0xff]   ;;  %v1753_v26 = vld [vmem:[%s2187_s19 + $0x40] sm:$0xff]  }
  0x1a   : > { %1885 = vmatpush3.msra.mxu1 %v1437_v20  ;;  %1851 = vmatprep.subr.mxu0 %v1404_v23  ;;  %v1392_v62 = vunpack.c.l.bf16 %v1756_v45  ;;  %v1456_v63 = vunpack.c.l.bf16 %v1772_v46  ;;  %v1360_v3 = vunpack.c.l.bf16 %v1748_v49  ;;  %v1424_v4 = vunpack.c.l.bf16 %v1764_v50  ;;  %v1746_v16 = vld [vmem:[%s2187_s19 + $0x8] sm:$0xff]   ;;  %v1808_v45 = vld [vmem:[%s2187_s19 + $0x1f8] sm:$0xff]  }
  0x1b   : > { %1886 = vmatprep.subr.mxu1 %v1468_v24  ;;  %1852 = vmatpush3.msra.mxu0 %v1372_v27  ;;  %v664_v5 = vunpack.c.0.s8 %v663_v54  ;;  %v666_v6 = vshrl.u32 %v665_v55, 7  ;;  %v1389_v7 = vunpack.c.h.bf16 %v1755_v60  ;;  %v1453_v8 = vunpack.c.h.bf16 %v1771_v61  ;;  %v1762_v17 = vld [vmem:[%s2187_s19 + $0x88] sm:$0xff]   ;;  %v1769_v27 = vld [vmem:[%s2187_s19 + $0xc0] sm:$0xff]   ;;  %v1800_v49 = vld [vmem:[%s2187_s19 + $0x1b8] sm:$0xff]  }
  0x1c   : > { %1887 = vmatpush3.msra.mxu1 %v1436_v28  ;;  %1853 = vmatprep.subr.mxu0 %v1401_v29  ;;  %v1357_v9 = vunpack.c.h.bf16 %v1747_v1  ;;  %v1421_v10 = vunpack.c.h.bf16 %v1763_v2  ;;  %v1388_v14 = vunpack.c.l.bf16 %v1755_v60  ;;  %v1452_v15 = vunpack.c.l.bf16 %v1771_v61  ;;  %v1791_v54 = vld [vmem:[%s2187_s19 + $0x170] sm:$0xff]  }
  0x1d   : > { %1888 = vmatprep.subr.mxu1 %v1465_v30  ;;  %1854 = vmatpush3.msra.mxu0 %v1369_v31  ;;  %v1356_v18 = vunpack.c.l.bf16 %v1747_v1  ;;  %v1420_v19 = vunpack.c.l.bf16 %v1763_v2  ;;  %v2224_v20 = vsub.s32 %v664_v5, %v666_v6  ;;  %v1385_v21 = vunpack.c.h.bf16 %v1754_v11  ;;  %v1347_v30 = vld [vmem:[%s2187_s19] sm:$0xff]   ;;  %v1807_v55 = vld [vmem:[%s2187_s19 + $0x1f0] sm:$0xff]  }
  0x1e   : > { %1889 = vmatpush3.msra.mxu1 %v1433_v32  ;;  %1855 = vmatprep.subr.mxu0 %v1400_v35  ;;  %v1449_v22 = vunpack.c.h.bf16 %v1770_v12  ;;  %v661_v23 = vcombine.high %v253_v13, %v253_v13  ;;  %v1353_v24 = vunpack.c.h.bf16 %v1746_v16  ;;  %v1417_v25 = vunpack.c.h.bf16 %v1762_v17  ;;  %v1761_v31 = vld [vmem:[%s2187_s19 + $0x80] sm:$0xff]  }
  0x1f   : > { %1890 = vmatprep.subr.mxu1 %v1464_v36  ;;  %1856 = vmatpush3.msra.mxu0 %v1368_v39  ;;  %v1384_v28 = vunpack.c.l.bf16 %v1754_v11  ;;  %v1448_v29 = vunpack.c.l.bf16 %v1770_v12  ;;  %v1352_v32 = vunpack.c.l.bf16 %v1746_v16  ;;  %v1416_v33 = vunpack.c.l.bf16 %v1762_v17  ;;  %v1805_v16 = vld [vmem:[%s2187_s19 + $0x1e0] sm:$0xff]  }
  0x20   : > { %1891 = vmatpush3.msra.mxu1 %v1432_v40  ;;  %1857 = vmatprep.subr.mxu0 %v1397_v41  ;;  %v668_v34 = vrot.slane %v253_v13, %v2224_v20  ;;  %v1381_v35 = vunpack.c.h.bf16 %v1753_v26  ;;  %v1445_v36 = vunpack.c.h.bf16 %v1769_v27  ;;  %v675_v37 = vrot.slane %v661_v23, %v2224_v20 }
  0x21   : > { %1892 = vmatprep.subr.mxu1 %v1461_v42  ;;  %1858 = vmatpush3.msra.mxu0 %v1365_v43  ;;  %v1349_v38 = vunpack.c.h.bf16 %v1347_v30  ;;  %v1413_v39 = vunpack.c.h.bf16 %v1761_v31  ;;  %v1380_v40 = vunpack.c.l.bf16 %v1753_v26  ;;  %v1444_v41 = vunpack.c.l.bf16 %v1769_v27 }
  0x22   : > { %1893 = vmatpush3.msra.mxu1 %v1429_v44  ;;  %1859 = vmatprep.subr.mxu0 %v1396_v47  ;;  %v1348_v42 = vunpack.c.l.bf16 %v1347_v30  ;;  %v676_v43 = vcombine.high %v668_v34, %v668_v34  ;;  %v1792_v44 = vld [vmem:[%s2187_s19 + $0x178] sm:$0xff]   ;;  %v1412_v46 = vunpack.c.l.bf16 %v1761_v31  ;;  %v677_v47 = vcombine.high %v675_v37, %v675_v37 }
  0x23   : > { %1894 = vmatprep.subr.mxu1 %v1460_v48  ;;  %1860 = vmatpush3.msra.mxu0 %v1364_v51  ;;  %v1784_v48 = vld [vmem:[%s2187_s19 + $0x138] sm:$0xff]   ;;  %v1537_v50 = vunpack.c.h.bf16 %v1792_v44  ;;  %v1601_v51 = vunpack.c.h.bf16 %v1808_v45  ;;  %v1569_v53 = vunpack.c.h.bf16 %v1800_v49  ;;  %v1568_v61 = vunpack.c.l.bf16 %v1800_v49 }
  0x24   : > { %1895 = vmatpush3.msra.mxu1 %v1428_v52  ;;  %1861 = vmatprep.subr.mxu0 %v1393_v56  ;;  %v1505_v52 = vunpack.c.h.bf16 %v1784_v48  ;;  %v1536_v56 = vunpack.c.l.bf16 %v1792_v44  ;;  %v1504_v60 = vunpack.c.l.bf16 %v1784_v48  ;;  %v1532_v5 = vunpack.c.l.bf16 %v1791_v54 }
  0x25   : > { %1896 = vmatprep.subr.mxu1 %v1457_v57  ;;  %1862 = vmatpush3.msra.mxu0 %v1361_v58  ;;  %v1600_v57 = vunpack.c.l.bf16 %v1808_v45  ;;  %v1783_v58 = vld [vmem:[%s2187_s19 + $0x130] sm:$0xff]   ;;  %v1596_v6 = vunpack.c.l.bf16 %v1807_v55  ;;  %v1588_v31 = vunpack.c.l.bf16 %v1805_v16 }
  0x26   : > { %1897 = vmatpush3.msra.mxu1 %v1425_v59  ;;  %1863 = vmatprep.subr.mxu0 %v1392_v62  ;;  %v1799_v59 = vld [vmem:[%s2187_s19 + $0x1b0] sm:$0xff]   ;;  %v1533_v62 = vunpack.c.h.bf16 %v1791_v54  ;;  %v1501_v1 = vunpack.c.h.bf16 %v1783_v58 }
  0x27   : > { %1898 = vmatprep.subr.mxu1 %v1456_v63  ;;  %1864 = vmatpush3.msra.mxu0 %v1360_v3  ;;  %v1597_v63 = vunpack.c.h.bf16 %v1807_v55  ;;  %v1565_v2 = vunpack.c.h.bf16 %v1799_v59  ;;  %v1790_v3 = vld [vmem:[%s2187_s19 + $0x168] sm:$0xff]  }
  0x28   : > { %1899 = vmatpush3.msra.mxu1 %v1424_v4  ;;  %1865 = vmatprep.subr.mxu0 %v1389_v7  ;;  %v1806_v4 = vld [vmem:[%s2187_s19 + $0x1e8] sm:$0xff]   ;;  %v1529_v11 = vunpack.c.h.bf16 %v1790_v3  ;;  %v1528_v17 = vunpack.c.l.bf16 %v1790_v3 }
  0x29   : > { %1900 = vmatprep.subr.mxu1 %v1453_v8  ;;  %1866 = vmatpush3.msra.mxu0 %v1357_v9  ;;  %v1782_v7 = vld [vmem:[%s2187_s19 + $0x128] sm:$0xff]   ;;  %v1500_v9 = vunpack.c.l.bf16 %v1783_v58  ;;  %v1593_v12 = vunpack.c.h.bf16 %v1806_v4 }
  0x2a   : > { %1901 = vmatpush3.msra.mxu1 %v1421_v10  ;;  %1867 = vmatprep.subr.mxu0 %v1388_v14  ;;  %v1798_v8 = vld [vmem:[%s2187_s19 + $0x1a8] sm:$0xff]   ;;  %v1564_v10 = vunpack.c.l.bf16 %v1799_v59  ;;  %v1497_v13 = vunpack.c.h.bf16 %v1782_v7 }
  0x2b   : > { %1902 = vmatprep.subr.mxu1 %v1452_v15  ;;  %1868 = vmatpush3.msra.mxu0 %v1356_v18  ;;  %v1561_v14 = vunpack.c.h.bf16 %v1798_v8  ;;  %v1789_v15 = vld [vmem:[%s2187_s19 + $0x160] sm:$0xff]   ;;  %v1592_v18 = vunpack.c.l.bf16 %v1806_v4  ;;  %v1560_v23 = vunpack.c.l.bf16 %v1798_v8 }
  0x2c   : > { %1903 = vmatpush3.msra.mxu1 %v1420_v19  ;;  %1869 = vmatprep.subr.mxu0 %v1385_v21  ;;  %v1781_v19 = vld [vmem:[%s2187_s19 + $0x120] sm:$0xff]   ;;  %v1524_v30 = vunpack.c.l.bf16 %v1789_v15 }
  0x2d   : > { %1904 = vmatprep.subr.mxu1 %v1449_v22  ;;  %1870 = vmatpush3.msra.mxu0 %v1353_v24  ;;  %v1797_v21 = vld [vmem:[%s2187_s19 + $0x1a0] sm:$0xff]   ;;  %v1496_v22 = vunpack.c.l.bf16 %v1782_v7  ;;  %v1525_v24 = vunpack.c.h.bf16 %v1789_v15  ;;  %v1493_v26 = vunpack.c.h.bf16 %v1781_v19 }
  0x2e   : > { %1905 = vmatpush3.msra.mxu1 %v1417_v25  ;;  %1871 = vmatprep.subr.mxu0 %v1384_v28  ;;  %v1589_v25 = vunpack.c.h.bf16 %v1805_v16  ;;  %v1557_v27 = vunpack.c.h.bf16 %v1797_v21  ;;  %v1788_v28 = vld [vmem:[%s2187_s19 + $0x158] sm:$0xff]   ;;  %v1801_v7 = vld [vmem:[%s2187_s19 + $0x1c0] sm:$0xff]  }
  0x2f   : > { %1906 = vmatprep.subr.mxu1 %v1448_v29  ;;  %1872 = vmatpush3.msra.mxu0 %v1352_v32  ;;  %v1804_v29 = vld [vmem:[%s2187_s19 + $0x1d8] sm:$0xff]   ;;  %v1520_v44 = vunpack.c.l.bf16 %v1788_v28  ;;  %v1793_v15 = vld [vmem:[%s2187_s19 + $0x180] sm:$0xff]  }
  0x30   : > { %1907 = vmatpush3.msra.mxu1 %v1416_v33  ;;  %1873 = vmatprep.subr.mxu0 %v1381_v35  ;;  %v1780_v32 = vld [vmem:[%s2187_s19 + $0x118] sm:$0xff]   ;;  %v1492_v35 = vunpack.c.l.bf16 %v1781_v19  ;;  %v1584_v45 = vunpack.c.l.bf16 %v1804_v29 }
  0x31   : > { %1908 = vmatprep.subr.mxu1 %v1445_v36  ;;  %1874 = vmatpush3.msra.mxu0 %v1349_v38  ;;  %v1796_v33 = vld [vmem:[%s2187_s19 + $0x198] sm:$0xff]   ;;  %v1556_v36 = vunpack.c.l.bf16 %v1797_v21  ;;  %v1585_v38 = vunpack.c.h.bf16 %v1804_v29  ;;  %v1488_v49 = vunpack.c.l.bf16 %v1780_v32 }
  0x32   : > { %1909 = vmatpush3.msra.mxu1 %v1413_v39  ;;  %1875 = vmatprep.subr.mxu0 %v1380_v40  ;;  %v1489_v39 = vunpack.c.h.bf16 %v1780_v32  ;;  %v1553_v40 = vunpack.c.h.bf16 %v1796_v33  ;;  %v1824_v21 = vld [vmem:[%s2187_s19 + $0x278] sm:$0xff]  }
  0x33   : > { %1910 = vmatprep.subr.mxu1 %v1444_v41  ;;  %1876 = vmatpush3.msra.mxu0 %v1348_v42  ;;  %v1787_v41 = vld [vmem:[%s2187_s19 + $0x150] sm:$0xff]   ;;  %v1840_v29 = vld [vmem:[%s2187_s19 + $0x2f8] sm:$0xff]  }
  0x34   : > { %798 = vmatprep.mubr.f32.mxu0 %v676_v43  ;;  %1911 = vmatpush3.msra.mxu1 %v1412_v46  ;;  %v1803_v42 = vld [vmem:[%s2187_s19 + $0x1d0] sm:$0xff]   ;;  %v1516_v58 = vunpack.c.l.bf16 %v1787_v41 }
  0x35   : > { %868 = vmatprep.mubr.f32.mxu1 %v677_v47  ;;  %799 = vmatmul.mubr.f32.vlgmr.msra.gmra.mxu0 %v668_v34  ;;  %v255_v34 = vld [vmem:[%s2217_s23 + $0x10] sm:$0xff]  ;;  %v1580_v59 = vunpack.c.l.bf16 %v1803_v42 }
  0x36   : > { %869 = vmatmul.mubr.f32.vlgmr.msra.gmra.mxu1 %v675_v37  ;;  %1915 = vmatprep.subr.mxu0 %v1537_v50  ;;  %v1521_v37 = vunpack.c.h.bf16 %v1788_v28  ;;  %v2256_v43 = vrot.slane %v255_v34, %v2224_v20  ;;  %v1779_v46 = vld [vmem:[%s2187_s19 + $0x110] sm:$0xff]   ;;  %v695_v48 = vcombine.high %v255_v34, %v255_v34  ;;  %v1552_v50 = vunpack.c.l.bf16 %v1796_v33 }
  0x37   : > { %1950 = vmatprep.subr.mxu1 %v1601_v51  ;;  %1916 = vmatpush3.msra.mxu0 %v1505_v52  ;;  %v1795_v47 = vld [vmem:[%s2187_s19 + $0x190] sm:$0xff]   ;;  %v1517_v51 = vunpack.c.h.bf16 %v1787_v41  ;;  %v1581_v52 = vunpack.c.h.bf16 %v1803_v42  ;;  %v1485_v54 = vunpack.c.h.bf16 %v1779_v46  ;;  %v1665_v28 = vunpack.c.h.bf16 %v1824_v21 }
  0x38   : > { %1951 = vmatpush3.msra.mxu1 %v1569_v53  ;;  %1917 = vmatprep.subr.mxu0 %v1536_v56  ;;  %v2261_v53 = vrot.slane %v695_v48, %v2224_v20  ;;  %v1549_v55 = vunpack.c.h.bf16 %v1795_v47  ;;  %v1786_v56 = vld [vmem:[%s2187_s19 + $0x148] sm:$0xff]   ;;  %v1823_v33 = vld [vmem:[%s2187_s19 + $0x270] sm:$0xff]   ;;  %v1664_v34 = vunpack.c.l.bf16 %v1824_v21  ;;  %v1728_v41 = vunpack.c.l.bf16 %v1840_v29 }
  0x39   : > { %1952 = vmatprep.subr.mxu1 %v1600_v57  ;;  %1918 = vmatpush3.msra.mxu0 %v1504_v60  ;;  %v1802_v57 = vld [vmem:[%s2187_s19 + $0x1c8] sm:$0xff]   ;;  %v1831_v42 = vld [vmem:[%s2187_s19 + $0x2b0] sm:$0xff]  }
  0x3a   : > { %1953 = vmatpush3.msra.mxu1 %v1568_v61  ;;  %1919 = vmatprep.subr.mxu0 %v1533_v62  ;;  %v1778_v60 = vld [vmem:[%s2187_s19 + $0x108] sm:$0xff]   ;;  %v1577_v3 = vunpack.c.h.bf16 %v1802_v57  ;;  %v1819_v21 = vld [vmem:[%s2187_s19 + $0x250] sm:$0xff]  }
  0x3b   : > { %1954 = vmatprep.subr.mxu1 %v1597_v63  ;;  %1920 = vmatpush3.msra.mxu0 %v1501_v1  ;;  %v1794_v61 = vld [vmem:[%s2187_s19 + $0x188] sm:$0xff]   ;;  %v1484_v63 = vunpack.c.l.bf16 %v1779_v46  ;;  %v1548_v1 = vunpack.c.l.bf16 %v1795_v47  ;;  %v1481_v4 = vunpack.c.h.bf16 %v1778_v60  ;;  %v1660_v47 = vunpack.c.l.bf16 %v1823_v33 }
  0x3c   : > { %1955 = vmatpush3.msra.mxu1 %v1565_v2  ;;  %1921 = vmatprep.subr.mxu0 %v1532_v5  ;;  %v254_v62 = vld [vmem:[%s2217_s23 + $0x8] sm:$0xff]  ;;  %v1513_v2 = vunpack.c.h.bf16 %v1786_v56  ;;  %v1545_v5 = vunpack.c.h.bf16 %v1794_v61 }
  0x3d   : > { %1956 = vmatprep.subr.mxu1 %v1596_v6  ;;  %1922 = vmatpush3.msra.mxu0 %v1500_v9  ;;  %v1785_v6 = vld [vmem:[%s2187_s19 + $0x140] sm:$0xff]   ;;  %v685_v8 = vrot.slane %v254_v62, %v2224_v20  ;;  %v678_v9 = vcombine.high %v254_v62, %v254_v62  ;;  %v1822_v46 = vld [vmem:[%s2187_s19 + $0x268] sm:$0xff]  }
  0x3e   : > { %1957 = vmatpush3.msra.mxu1 %v1564_v10  ;;  %1923 = vmatprep.subr.mxu0 %v1529_v11  ;;  %v1512_v10 = vunpack.c.l.bf16 %v1786_v56  ;;  %v1576_v11 = vunpack.c.l.bf16 %v1802_v57  ;;  %v1509_v16 = vunpack.c.h.bf16 %v1785_v6  ;;  %v1830_v56 = vld [vmem:[%s2187_s19 + $0x2a8] sm:$0xff]   ;;  %v1813_v62 = vld [vmem:[%s2187_s19 + $0x220] sm:$0xff]  }
  0x3f   : > { %1958 = vmatprep.subr.mxu1 %v1593_v12  ;;  %1924 = vmatpush3.msra.mxu0 %v1497_v13  ;;  %v1777_v12 = vld [vmem:[%s2187_s19 + $0x100] sm:$0xff]   ;;  %v1480_v13 = vunpack.c.l.bf16 %v1778_v60  ;;  %v693_v19 = vcombine.high %v685_v8, %v685_v8  ;;  %v1656_v60 = vunpack.c.l.bf16 %v1822_v46 }
  0x40   : > { %1959 = vmatpush3.msra.mxu1 %v1561_v14  ;;  %1925 = vmatprep.subr.mxu0 %v1528_v17  ;;  %v1544_v14 = vunpack.c.l.bf16 %v1794_v61  ;;  %v1573_v17 = vunpack.c.h.bf16 %v1801_v7 }
  0x41   : > { %1960 = vmatprep.subr.mxu1 %v1592_v18  ;;  %1926 = vmatpush3.msra.mxu0 %v1496_v22  ;;  %v1477_v18 = vunpack.c.h.bf16 %v1777_v12  ;;  %v692_v22 = vrot.slane %v678_v9, %v2224_v20 }
  0x42   : > { %1961 = vmatpush3.msra.mxu1 %v1560_v23  ;;  %1927 = vmatprep.subr.mxu0 %v1525_v24  ;;  %v1508_v23 = vunpack.c.l.bf16 %v1785_v6  ;;  %v1541_v24 = vunpack.c.h.bf16 %v1793_v15  ;;  %v1621_v6 = vunpack.c.h.bf16 %v1813_v62 }
  0x43   : > { %1962 = vmatprep.subr.mxu1 %v1589_v25  ;;  %1928 = vmatpush3.msra.mxu0 %v1493_v26  ;;  %v1476_v25 = vunpack.c.l.bf16 %v1777_v12  ;;  %v1572_v26 = vunpack.c.l.bf16 %v1801_v7  ;;  %v694_v20 = vcombine.high %v692_v22, %v692_v22  ;;  %v1688_v7 = vunpack.c.l.bf16 %v1830_v56 }
  0x44   : > { %1963 = vmatpush3.msra.mxu1 %v1557_v27  ;;  %1929 = vmatprep.subr.mxu0 %v1524_v30  ;;  %v1816_v27 = vld [vmem:[%s2187_s19 + $0x238] sm:$0xff]   ;;  %v1540_v30 = vunpack.c.l.bf16 %v1793_v15  ;;  %v1620_v12 = vunpack.c.l.bf16 %v1813_v62 }
  0x45   : > { %1964 = vmatprep.subr.mxu1 %v1588_v31  ;;  %1930 = vmatpush3.msra.mxu0 %v1492_v35  ;;  %v1832_v31 = vld [vmem:[%s2187_s19 + $0x2b8] sm:$0xff]   ;;  %v1633_v32 = vunpack.c.h.bf16 %v1816_v27  ;;  %v1729_v35 = vunpack.c.h.bf16 %v1840_v29 }
  0x46   : > { %1965 = vmatpush3.msra.mxu1 %v1556_v36  ;;  %1931 = vmatprep.subr.mxu0 %v1521_v37  ;;  %v1815_v36 = vld [vmem:[%s2187_s19 + $0x230] sm:$0xff]   ;;  %v1632_v37 = vunpack.c.l.bf16 %v1816_v27 }
  0x47   : > { %1966 = vmatprep.subr.mxu1 %v1585_v38  ;;  %1932 = vmatpush3.msra.mxu0 %v1489_v39  ;;  %v1697_v38 = vunpack.c.h.bf16 %v1832_v31  ;;  %v1839_v39 = vld [vmem:[%s2187_s19 + $0x2f0] sm:$0xff]  }
  0x48   : > { %1967 = vmatpush3.msra.mxu1 %v1553_v40  ;;  %1933 = vmatprep.subr.mxu0 %v1520_v44  ;;  %v1661_v40 = vunpack.c.h.bf16 %v1823_v33  ;;  %v1629_v44 = vunpack.c.h.bf16 %v1815_v36  ;;  %v1725_v48 = vunpack.c.h.bf16 %v1839_v39  ;;  %v1835_v27 = vld [vmem:[%s2187_s19 + $0x2d0] sm:$0xff]   ;;  %v1644_v33 = vunpack.c.l.bf16 %v1819_v21 }
  0x49   : > { %1968 = vmatprep.subr.mxu1 %v1584_v45  ;;  %1934 = vmatpush3.msra.mxu0 %v1488_v49  ;;  %v1696_v45 = vunpack.c.l.bf16 %v1832_v31  ;;  %v1814_v49 = vld [vmem:[%s2187_s19 + $0x228] sm:$0xff]  }
  0x4a   : > { %1969 = vmatpush3.msra.mxu1 %v1552_v50  ;;  %1935 = vmatprep.subr.mxu0 %v1517_v51  ;;  %v1628_v50 = vunpack.c.l.bf16 %v1815_v36  ;;  %v1693_v51 = vunpack.c.h.bf16 %v1831_v42  ;;  %v1625_v57 = vunpack.c.h.bf16 %v1814_v49 }
  0x4b   : > { %1970 = vmatprep.subr.mxu1 %v1581_v52  ;;  %1936 = vmatpush3.msra.mxu0 %v1485_v54  ;;  %v1838_v52 = vld [vmem:[%s2187_s19 + $0x2e8] sm:$0xff]   ;;  %v1657_v54 = vunpack.c.h.bf16 %v1822_v46 }
  0x4c   : > { %1971 = vmatpush3.msra.mxu1 %v1549_v55  ;;  %1937 = vmatprep.subr.mxu0 %v1516_v58  ;;  %v1724_v55 = vunpack.c.l.bf16 %v1839_v39  ;;  %v1692_v58 = vunpack.c.l.bf16 %v1831_v42  ;;  %v1721_v61 = vunpack.c.h.bf16 %v1838_v52 }
  0x4d   : > { %1972 = vmatprep.subr.mxu1 %v1580_v59  ;;  %1938 = vmatpush3.msra.mxu0 %v1484_v63  ;;  %v1821_v59 = vld [vmem:[%s2187_s19 + $0x260] sm:$0xff]   ;;  %v1624_v63 = vunpack.c.l.bf16 %v1814_v49 }
  0x4e   : > { %1973 = vmatpush3.msra.mxu1 %v1548_v1  ;;  %1939 = vmatprep.subr.mxu0 %v1513_v2  ;;  %v1689_v1 = vunpack.c.h.bf16 %v1830_v56  ;;  %v1837_v2 = vld [vmem:[%s2187_s19 + $0x2e0] sm:$0xff]   ;;  %v1652_v9 = vunpack.c.l.bf16 %v1821_v59 }
  0x4f   : > { %1974 = vmatprep.subr.mxu1 %v1577_v3  ;;  %1940 = vmatpush3.msra.mxu0 %v1481_v4  ;;  %v1653_v3 = vunpack.c.h.bf16 %v1821_v59  ;;  %v1720_v4 = vunpack.c.l.bf16 %v1838_v52 }
  0x50   : > { %1975 = vmatpush3.msra.mxu1 %v1545_v5  ;;  %1941 = vmatprep.subr.mxu0 %v1512_v10  ;;  %v1829_v5 = vld [vmem:[%s2187_s19 + $0x2a0] sm:$0xff]   ;;  %v1717_v10 = vunpack.c.h.bf16 %v1837_v2 }
  0x51   : > { %1976 = vmatprep.subr.mxu1 %v1576_v11  ;;  %1942 = vmatpush3.msra.mxu0 %v1480_v13  ;;  %v1812_v11 = vld [vmem:[%s2187_s19 + $0x218] sm:$0xff]   ;;  %v1685_v13 = vunpack.c.h.bf16 %v1829_v5 }
  0x52   : > { %1977 = vmatpush3.msra.mxu1 %v1544_v14  ;;  %1943 = vmatprep.subr.mxu0 %v1509_v16  ;;  %v1836_v14 = vld [vmem:[%s2187_s19 + $0x2d8] sm:$0xff]   ;;  %v1716_v16 = vunpack.c.l.bf16 %v1837_v2 }
  0x53   : > { %1978 = vmatprep.subr.mxu1 %v1573_v17  ;;  %1944 = vmatpush3.msra.mxu0 %v1477_v18  ;;  %v1828_v17 = vld [vmem:[%s2187_s19 + $0x298] sm:$0xff]   ;;  %v1617_v18 = vunpack.c.h.bf16 %v1812_v11  ;;  %v1712_v29 = vunpack.c.l.bf16 %v1836_v14 }
  0x54   : > { %938 = vmatprep.mubr.f32.mxu0 %v693_v19  ;;  %1945 = vmatprep.subr.mxu0 %v1508_v23  ;;  %v1684_v19 = vunpack.c.l.bf16 %v1829_v5  ;;  %v1713_v23 = vunpack.c.h.bf16 %v1836_v14  ;;  %v1680_v31 = vunpack.c.l.bf16 %v1828_v17  ;;  %v1843_v5 = vld [vmem:[%s2187_s19 + $0x310] sm:$0xff]  }
  0x55   : > { %1979 = vmatpush3.msra.mxu1 %v1541_v24  ;;  %1946 = vmatpush3.msra.mxu0 %v1476_v25  ;;  %v1811_v24 = vld [vmem:[%s2187_s19 + $0x210] sm:$0xff]   ;;  %v1616_v25 = vunpack.c.l.bf16 %v1812_v11 }
  0x56   : > { %1980 = vmatprep.subr.mxu1 %v1572_v26  ;;  %939 = vmatmul.mubr.f32.vlgmr.msra.gmra.mxu0 %v685_v8  ;;  %v1820_v8 = vld [vmem:[%s2187_s19 + $0x258] sm:$0xff]   ;;  %v1681_v26 = vunpack.c.h.bf16 %v1828_v17  ;;  %v1612_v36 = vunpack.c.l.bf16 %v1811_v24 }
  0x57   : > { %1985 = vmatprep.subr.mxu0 %v1665_v28  ;;  %1981 = vmatpush3.msra.mxu1 %v1540_v30  ;;  %v1649_v15 = vunpack.c.h.bf16 %v1820_v8  ;;  %v1645_v28 = vunpack.c.h.bf16 %v1819_v21  ;;  %v1827_v30 = vld [vmem:[%s2187_s19 + $0x290] sm:$0xff]  }
  0x58   : > { %1008 = vmatprep.mubr.f32.mxu1 %v694_v20  ;;  %1986 = vmatpush3.msra.mxu0 %v1633_v32  ;;  %v1613_v20 = vunpack.c.h.bf16 %v1811_v24  ;;  %v1818_v32 = vld [vmem:[%s2187_s19 + $0x248] sm:$0xff]  }
  0x59   : > { %1009 = vmatmul.mubr.f32.vlgmr.msra.gmra.mxu1 %v692_v22  ;;  %1987 = vmatprep.subr.mxu0 %v1664_v34  ;;  %v1648_v22 = vunpack.c.l.bf16 %v1820_v8  ;;  %v1709_v34 = vunpack.c.h.bf16 %v1835_v27  ;;  %v1641_v39 = vunpack.c.h.bf16 %v1818_v32  ;;  %v1640_v46 = vunpack.c.l.bf16 %v1818_v32  ;;  %v1842_v8 = vld [vmem:[%s2187_s19 + $0x308] sm:$0xff]  }
  0x5a   : > { %2020 = vmatprep.subr.mxu1 %v1729_v35  ;;  %1988 = vmatpush3.msra.mxu0 %v1632_v37  ;;  %v1810_v35 = vld [vmem:[%s2187_s19 + $0x208] sm:$0xff]   ;;  %v1677_v37 = vunpack.c.h.bf16 %v1827_v30  ;;  %v1736_v11 = vunpack.c.l.bf16 %v1842_v8 }
  0x5b   : > { %2021 = vmatpush3.msra.mxu1 %v1697_v38  ;;  %1989 = vmatprep.subr.mxu0 %v1661_v40  ;;  %v1834_v38 = vld [vmem:[%s2187_s19 + $0x2c8] sm:$0xff]   ;;  %v1708_v40 = vunpack.c.l.bf16 %v1835_v27  ;;  %v1609_v42 = vunpack.c.h.bf16 %v1810_v35  ;;  %v1608_v49 = vunpack.c.l.bf16 %v1810_v35 }
  0x5c   : > { %2022 = vmatprep.subr.mxu1 %v1728_v41  ;;  %1990 = vmatpush3.msra.mxu0 %v1629_v44  ;;  %v1826_v41 = vld [vmem:[%s2187_s19 + $0x288] sm:$0xff]   ;;  %v1676_v44 = vunpack.c.l.bf16 %v1827_v30 }
  0x5d   : > { %2023 = vmatpush3.msra.mxu1 %v1696_v45  ;;  %1991 = vmatprep.subr.mxu0 %v1660_v47  ;;  %v1817_v45 = vld [vmem:[%s2187_s19 + $0x240] sm:$0xff]   ;;  %v1705_v47 = vunpack.c.h.bf16 %v1834_v38  ;;  %v1672_v56 = vunpack.c.l.bf16 %v1826_v41 }
  0x5e   : > { %2024 = vmatprep.subr.mxu1 %v1725_v48  ;;  %1992 = vmatpush3.msra.mxu0 %v1628_v50  ;;  %v1809_v48 = vld [vmem:[%s2187_s19 + $0x200] sm:$0xff]   ;;  %v1673_v50 = vunpack.c.h.bf16 %v1826_v41  ;;  %v1637_v52 = vunpack.c.h.bf16 %v1817_v45 }
  0x5f   : > { %2025 = vmatpush3.msra.mxu1 %v1693_v51  ;;  %1993 = vmatprep.subr.mxu0 %v1657_v54  ;;  %v1833_v51 = vld [vmem:[%s2187_s19 + $0x2c0] sm:$0xff]   ;;  %v1704_v54 = vunpack.c.l.bf16 %v1834_v38 }
  0x60   : > { %2026 = vmatprep.subr.mxu1 %v1724_v55  ;;  %1994 = vmatpush3.msra.mxu0 %v1625_v57  ;;  %v1605_v55 = vunpack.c.h.bf16 %v1809_v48  ;;  %v1825_v57 = vld [vmem:[%s2187_s19 + $0x280] sm:$0xff]   ;;  %v1701_v59 = vunpack.c.h.bf16 %v1833_v51 }
  0x61   : > { %2027 = vmatpush3.msra.mxu1 %v1692_v58  ;;  %1995 = vmatprep.subr.mxu0 %v1656_v60  ;;  %v1636_v58 = vunpack.c.l.bf16 %v1817_v45  ;;  %v1604_v60 = vunpack.c.l.bf16 %v1809_v48  ;;  %v1669_v62 = vunpack.c.h.bf16 %v1825_v57  ;;  %v1668_v2 = vunpack.c.l.bf16 %v1825_v57  ;;  %v1343_v41 = vld [vmem:[%s242_s26] ss:$0 sm:$0xff] }
  0x62   : > { %2028 = vmatprep.subr.mxu1 %v1721_v61  ;;  %1996 = vmatpush3.msra.mxu0 %v1624_v63  ;;  %v710_v61 = vcombine.high %v2256_v43, %v2256_v43  ;;  %v1844_v63 = vld [vmem:[%s2187_s19 + $0x318] sm:$0xff]  }
  0x63   : > { %2029 = vmatpush3.msra.mxu1 %v1689_v1  ;;  %1997 = vmatprep.subr.mxu0 %v1653_v3  ;;  %v1700_v1 = vunpack.c.l.bf16 %v1833_v51  ;;  %v711_v3 = vcombine.high %v2261_v53, %v2261_v53 }
  0x64   : > { %2030 = vmatprep.subr.mxu1 %v1720_v4  ;;  %1998 = vmatpush3.msra.mxu0 %v1621_v6  ;;  %v1745_v4 = vunpack.c.h.bf16 %v1844_v63  ;;  %v1744_v6 = vunpack.c.l.bf16 %v1844_v63 }
  0x65   : > { %2031 = vmatpush3.msra.mxu1 %v1688_v7  ;;  %1999 = vmatprep.subr.mxu0 %v1652_v9  ;;  %v1741_v7 = vunpack.c.h.bf16 %v1843_v5  ;;  %v1737_v9 = vunpack.c.h.bf16 %v1842_v8 }
  0x66   : > { %2032 = vmatprep.subr.mxu1 %v1717_v10  ;;  %2000 = vmatpush3.msra.mxu0 %v1620_v12  ;;  %v1841_v10 = vld [vmem:[%s2187_s19 + $0x300] sm:$0xff]  }
  0x67   : > { %2033 = vmatpush3.msra.mxu1 %v1685_v13  ;;  %2001 = vmatprep.subr.mxu0 %v1649_v15  ;;  %v1732_v12 = vunpack.c.l.bf16 %v1841_v10  ;;  %v1341_v13 = vld.sshfl [vmem:[%s2217_s23 + $0x18] sm:$0x3 pattern:$0x76325410] }
  0x68   : > { %2034 = vmatprep.subr.mxu1 %v1716_v16  ;;  %2002 = vmatpush3.msra.mxu0 %v1617_v18 }
  0x69   : > { %2035 = vmatpush3.msra.mxu1 %v1684_v19  ;;  %2003 = vmatprep.subr.mxu0 %v1648_v22 }
  0x6a   : > { %2036 = vmatprep.subr.mxu1 %v1713_v23  ;;  %2004 = vmatpush3.msra.mxu0 %v1616_v25 }
  0x6b   : > { %2037 = vmatpush3.msra.mxu1 %v1681_v26  ;;  %2005 = vmatprep.subr.mxu0 %v1645_v28 }
  0x6c   : > { %2038 = vmatprep.subr.mxu1 %v1712_v29  ;;  %2006 = vmatpush3.msra.mxu0 %v1613_v20 }
  0x6d   : > { %2039 = vmatpush3.msra.mxu1 %v1680_v31  ;;  %2007 = vmatprep.subr.mxu0 %v1644_v33 }
  0x6e   : > { %2040 = vmatprep.subr.mxu1 %v1709_v34  ;;  %2008 = vmatpush3.msra.mxu0 %v1612_v36  ;;  %v252_v36 = vld [vmem:[#allocation2] sm:$0x3] }
  0x6f   : > { %2041 = vmatpush3.msra.mxu1 %v1677_v37  ;;  %2009 = vmatprep.subr.mxu0 %v1641_v39 }
  0x70   : > { %2042 = vmatprep.subr.mxu1 %v1708_v40  ;;  %2010 = vmatpush3.msra.mxu0 %v1609_v42 }
  0x71   : > { %2043 = vmatpush3.msra.mxu1 %v1676_v44  ;;  %2011 = vmatprep.subr.mxu0 %v1640_v46 }
  0x72   : > { %2044 = vmatprep.subr.mxu1 %v1705_v47  ;;  %2012 = vmatpush3.msra.mxu0 %v1608_v49 }
  0x73   : > { %2045 = vmatpush3.msra.mxu1 %v1673_v50  ;;  %2013 = vmatprep.subr.mxu0 %v1637_v52 }
  0x74   : > { %2046 = vmatprep.subr.mxu1 %v1704_v54  ;;  %2014 = vmatpush3.msra.mxu0 %v1605_v55 }
  0x75   : > { %2047 = vmatpush3.msra.mxu1 %v1672_v56  ;;  %2015 = vmatprep.subr.mxu0 %v1636_v58 }
  0x76   : > { %2048 = vmatprep.subr.mxu1 %v1701_v59  ;;  %2016 = vmatpush3.msra.mxu0 %v1604_v60 }
  0x77   : > { %1078 = vmatprep.mubr.f32.mxu0 %v710_v61  ;;  %2049 = vmatpush3.msra.mxu1 %v1669_v62 }
  0x78   : > { %1079 = vmatmul.mubr.f32.vlgmr.msra.gmra.mxu0 %v2256_v43  ;;  %2050 = vmatprep.subr.mxu1 %v1700_v1  ;;  %v1740_v43 = vunpack.c.l.bf16 %v1843_v5 }
  0x79   : > { %2064 = vmatprep.subr.mxu0 %v2139_v0  ;;  %2051 = vmatpush3.msra.mxu1 %v1668_v2 }
  0x7a   : > { %1148 = vmatprep.mubr.f32.mxu1 %v711_v3  ;;  %2065 = vmatpush3.msra.mxu0 %v1745_v4 }
  0x7b   : > { %1149 = vmatmul.mubr.f32.vlgmr.msra.gmra.mxu1 %v2261_v53  ;;  %2066 = vmatprep.subr.mxu0 %v2139_v0  ;;  %v1733_v53 = vunpack.c.h.bf16 %v1841_v10 }
  0x7c   : > { %2080 = vmatprep.mubr.msk.f32.mxu0 %vm2141_vm0, %v2139_v0  ;;  %2067 = vmatpush3.msra.mxu0 %v1744_v6 }
  0x7d   : > { %2068 = vmatprep.subr.mxu0 %v2139_v0 }
  0x7e   : > { %2069 = vmatpush3.msra.mxu0 %v1741_v7 }
  0x7f   : > { %2070 = vmatprep.subr.mxu0 %v2139_v0 }
  0x80   : > { %2071 = vmatpush3.msra.mxu0 %v1740_v43 }
  0x81   : > { %2072 = vmatprep.subr.mxu0 %v2139_v0 }
  0x82   : > { %2073 = vmatpush3.msra.mxu0 %v1737_v9 }
  0x83   : > { %2074 = vmatprep.subr.mxu0 %v2139_v0 }
  0x84   : > { %2075 = vmatpush3.msra.mxu0 %v1736_v11 }
  0x85   : > { %2076 = vmatprep.subr.mxu0 %v2139_v0 }
  0x86   : > { %2077 = vmatpush3.msra.mxu0 %v1733_v53 }
  0x87   : > { %2078 = vmatprep.subr.mxu0 %v2139_v0 }
  0x88   : > { %2079 = vmatpush3.msra.mxu0 %v1732_v12 }
  0x89   : > { %2081 = vmatmul.mubr.msk.f32.vlgmr.msra.gmra.mxu0 %vm731_vm1, %v1341_v13 }
  0xf5   : > { %v1877_v14 = vpop.f32.mrf.mxu0 }
  0xf6   : > { %v1912_v15 = vpop.f32.mrf.mxu1 }
  0xf7   : > { %v1878_v16 = vpop.f32.mrf.mxu0 }
  0xf8   : > { %v1913_v18 = vpop.f32.mrf.mxu1  ;;  %v1879_v22 = vadd.f32 %v1878_v16, %v1877_v14 }
  0xf9   : > { %v1914_v23 = vadd.f32 %v1913_v18, %v1912_v15 }
  0xfb   : > { %v871_v27 = vadd.f32 %v1914_v23, %v1879_v22 }
 0x116   : > { %v1947_v17 = vpop.f32.mrf.mxu0 }
 0x118   : > { %v1948_v19 = vpop.f32.mrf.mxu0 }
 0x119   : > { %v1982_v21 = vpop.f32.mrf.mxu1  ;;  %v1949_v25 = vadd.f32 %v1948_v19, %v1947_v17 }
 0x11b   : > { %v1983_v26 = vpop.f32.mrf.mxu1  ;;  %v941_v0 = vadd.f32 %v1949_v25, %v871_v27 }
 0x11c   : > { %v1984_v30 = vadd.f32 %v1983_v26, %v1982_v21 }
 0x11e   : > { %v1011_v32 = vadd.f32 %v1984_v30, %v941_v0 }
 0x138   : > { %v2017_v24 = vpop.f32.mrf.mxu0 }
 0x13a   : > { %v2018_v28 = vpop.f32.mrf.mxu0 }
 0x13b   : > { %v2052_v29 = vpop.f32.mrf.mxu1  ;;  %v2019_v20 = vadd.f32 %v2018_v28, %v2017_v24 }
 0x13d   : > { %v2053_v31 = vpop.f32.mrf.mxu1  ;;  %v1081_v33 = vadd.f32 %v2019_v20, %v1011_v32 }
 0x13e   : > { %v2054_v34 = vadd.f32 %v2053_v31, %v2052_v29 }
 0x140   : > { %v1151_v35 = vadd.f32 %v2054_v34, %v1081_v33 }
 0x149   : > { %v1220_v37 = vpop.f32.mrf.mxu0 }
 0x14a   : > { %v1221_v38 = vadd.f32 %v1220_v37, %v1151_v35 }
 0x14b   : > { %v2082_v39 = vpop.f32.mrf.mxu0 }
 0x14c   : > { %v1224_v40 = vadd.f32 %v1221_v38, %v252_v36 }
 0x14e   : > { %1225 = vst [vmem:[#allocation2] sm:$0x3] %v1224_v40 }
 0x155   : > { %v1229_v42 = vld [vmem:[#allocation2] sm:$0x3] }
 0x156   : > { %v1237_v44 = vadd.f32 %v1343_v41, %v1229_v42 }
 0x158   : > { %1238 = vst [vmem:[%s246_s30] sm:$0x3] %v1237_v44 }
 0x159 PF: > { %s13_s14 = sadd.s32 1, %s2137_s14   ;;  %s2347_s12 = smov %s2133_s13 }
 0x15a   : > { %p10_p5 = scmp.ge.s32.totalorder %s13_s14, 4   ;;  %s2348_s13 = smov %s2350_s15 }
 0x15c   :  { %12 = sbr.rel (!%p10_p5) target bundleno = 2 (0x2), region = 76 }

</bundles_post_ra>
